<compile_context>
chip_gen: v5e
topology: v5e:2x2
jax: 0.10.0
libtpu: 0.0.40
codegen_flags: <defaults>
</compile_context>

<pallas_src>
import math
import functools

import jax
import jax.numpy as jnp
import numpy as np
from jax.experimental import pallas as pl
from jax.experimental.pallas import tpu as pltpu

BF16 = jnp.bfloat16
F32 = jnp.float32
NEG_BIG = -1e30          # finite "-inf": no NaN even on fully-masked tiles
LN_EPS = 1e-5            # PyTorch nn.LayerNorm default

_PARALLEL1 = pltpu.CompilerParams(dimension_semantics=("parallel",))


def _layernorm(x, g, b):
    mu = jnp.mean(x, axis=-1, keepdims=True)
    var = jnp.mean(jnp.square(x - mu), axis=-1, keepdims=True)
    return (x - mu) * jax.lax.rsqrt(var + LN_EPS) * g + b


# ----------------------------------------------------------------------------
# Pallas kernels
# ----------------------------------------------------------------------------

def _multi_linear_kernel(x_ref, *refs, n_out):
    # y_i = x @ W_i + b_i for i in range(n_out); x tile is read once.
    # refs = (W_0..W_{n-1}, b_0..b_{n-1}, out_0..out_{n-1})
    w_refs = refs[:n_out]
    b_refs = refs[n_out:2 * n_out]
    o_refs = refs[2 * n_out:]
    x = x_ref[...].astype(BF16)
    for w, b, o in zip(w_refs, b_refs, o_refs):
        o[...] = (jnp.dot(x, w[...], preferred_element_type=F32)
                  + b[...]).astype(o.dtype)


def _attn_kernel(q_ref, k_ref, v_ref, o_ref, m_sc, l_sc, acc_sc,
                 *, causal, kv_tile):
    # One (batch, head) pair per (parallel, parallel) grid point; kv tiles on
    # the last ("arbitrary") axis with flash-style online softmax.
    #   q: (1, S_q, hd) bf16   k, v: (1, kv_tile, hd) bf16   o: (1, S_q, hd)
    # Note: 1/sqrt(hd) is already folded into the Q projection weights.
    kv = pl.program_id(2)

    @pl.when(kv == 0)
    def _():
        m_sc[...] = jnp.full(m_sc.shape, NEG_BIG, F32)
        l_sc[...] = jnp.zeros(l_sc.shape, F32)
        acc_sc[...] = jnp.zeros(acc_sc.shape, F32)

    q = q_ref[0]
    k = k_ref[0]
    v = v_ref[0]

    # q @ k^T without an explicit transpose (contract the head_dim axes).
    s = jax.lax.dot_general(q, k, (((1,), (1,)), ((), ())),
                            preferred_element_type=F32)     # (S_q, kv_tile) f32
    if causal:
        row = jax.lax.broadcasted_iota(jnp.int32, s.shape, 0)
        col = jax.lax.broadcasted_iota(jnp.int32, s.shape, 1) + kv * kv_tile
        s = jnp.where(col <= row, s, NEG_BIG)

    m_prev = m_sc[...]
    m_new = jnp.maximum(m_prev, jnp.max(s, axis=-1, keepdims=True))
    alpha = jnp.exp(m_prev - m_new)
    p = jnp.exp(s - m_new)
    l_sc[...] = alpha * l_sc[...] + jnp.sum(p, axis=-1, keepdims=True)
    acc_sc[...] = alpha * acc_sc[...] + jax.lax.dot_general(
        p.astype(BF16), v, (((1,), (0,)), ((), ())),
        preferred_element_type=F32)
    m_sc[...] = m_new

    @pl.when(kv == pl.num_programs(2) - 1)
    def _():
        o_ref[0] = (acc_sc[...] * pl.reciprocal(l_sc[...], approx=True)
                    ).astype(o_ref.dtype)


def _proj_addln_q_kernel(attn_ref, res_ref, wp_ref, bp_ref, g1_ref, be1_ref,
                         wq_ref, bq_ref, x_out_ref, q_out_ref):
    # x_out = LN1(attn @ Wproj + bproj + residual)          (f32 residual stream)
    # q_out = x_out @ Wq_cross + bq_cross                   (bf16, scale folded)
    proj = (jnp.dot(attn_ref[...], wp_ref[...],
                    preferred_element_type=F32) + bp_ref[...])
    y = _layernorm(proj + res_ref[...], g1_ref[...], be1_ref[...])
    x_out_ref[...] = y
    q_out_ref[...] = (jnp.dot(y.astype(BF16), wq_ref[...],
                              preferred_element_type=F32)
                      + bq_ref[...]).astype(q_out_ref.dtype)


def _proj_addln_ffn_addln_kernel(attn_ref, res_ref, wp_ref, bp_ref,
                                 g2_ref, be2_ref, w1_ref, b1_ref,
                                 w2_ref, b2f_ref, g3_ref, be3_ref, o_ref):
    # y = LN2(attn @ Wproj + bproj + residual)
    # o = LN3(relu(y @ W1 + b1) @ W2 + b2 + y)    (dropout = identity in eval)
    proj = (jnp.dot(attn_ref[...], wp_ref[...],
                    preferred_element_type=F32) + bp_ref[...])
    y = _layernorm(proj + res_ref[...], g2_ref[...], be2_ref[...])
    h = jnp.maximum(jnp.dot(y.astype(BF16), w1_ref[...],
                            preferred_element_type=F32) + b1_ref[...], 0.0)
    f = (jnp.dot(h.astype(BF16), w2_ref[...],
                 preferred_element_type=F32) + b2f_ref[...])
    o_ref[...] = _layernorm(f + y, g3_ref[...], be3_ref[...])


# ----------------------------------------------------------------------------
# pallas_call wrappers
# ----------------------------------------------------------------------------

def _row_tile(n):
    # Largest row tile in {512..16} dividing n while keeping grid length >= 2
    # (keeps both v7x TensorCores busy and amortizes per-step pipeline cost).
    for t in (512, 256, 128, 64, 32, 16):
        if n % t == 0 and n // t >= 2:
            return t
    return n


def _kv_tile(s_kv):
    for t in (512, 256, 128, 64, 32, 16):
        if s_kv % t == 0:
            return t
    return s_kv


def _full_spec(arr):
    nd = arr.ndim
    return pl.BlockSpec(arr.shape, lambda i, _nd=nd: (0,) * _nd)


def pallas_multi_linear(x2d, ws, bs):
    """out_i = x2d @ ws[i] + bs[i]  (bf16 outputs, x read from HBM once)."""
    n, din = x2d.shape
    tm = _row_tile(n)
    n_out = len(ws)
    kern = functools.partial(_multi_linear_kernel, n_out=n_out)
    row_in = pl.BlockSpec((tm, din), lambda i: (i, 0))
    out_shape = tuple(jax.ShapeDtypeStruct((n, w.shape[1]), BF16) for w in ws)
    out_specs = tuple(pl.BlockSpec((tm, w.shape[1]), lambda i: (i, 0))
                      for w in ws)
    return pl.pallas_call(
        kern,
        out_shape=out_shape,
        grid=(n // tm,),
        in_specs=[row_in]
        + [_full_spec(w) for w in ws]
        + [_full_spec(b) for b in bs],
        out_specs=out_specs,
        compiler_params=_PARALLEL1,
    )(x2d, *ws, *bs)


def pallas_attention(q, k, v, n_heads, causal):
    """q/k/v: (B, H*S, hd) bf16, heads folded in PyTorch-view order."""
    B, hsq, hd = q.shape
    s_q = hsq // n_heads
    s_kv = k.shape[1] // n_heads
    tk = _kv_tile(s_kv)
    n_kv = s_kv // tk
    kern = functools.partial(_attn_kernel, causal=causal, kv_tile=tk)
    return pl.pallas_call(
        kern,
        out_shape=jax.ShapeDtypeStruct((B, hsq, hd), BF16),
        grid=(B, n_heads, n_kv),
        in_specs=[
            pl.BlockSpec((1, s_q, hd), lambda b, h, j: (b, h, 0)),
            pl.BlockSpec((1, tk, hd),
                         lambda b, h, j, _nb=n_kv: (b, h * _nb + j, 0)),
            pl.BlockSpec((1, tk, hd),
                         lambda b, h, j, _nb=n_kv: (b, h * _nb + j, 0)),
        ],
        out_specs=pl.BlockSpec((1, s_q, hd), lambda b, h, j: (b, h, 0)),
        scratch_shapes=[pltpu.VMEM((s_q, 1), F32),    # m
                        pltpu.VMEM((s_q, 1), F32),    # l
                        pltpu.VMEM((s_q, hd), F32)],  # acc
        compiler_params=pltpu.CompilerParams(
            dimension_semantics=("parallel", "parallel", "arbitrary")),
    )(q, k, v)


def pallas_proj_addln_q(attn2d, res2d, lp):
    n, e = attn2d.shape
    tm = _row_tile(n)
    row = pl.BlockSpec((tm, e), lambda i: (i, 0))
    args = (attn2d, res2d, lp["self_proj_w"], lp["self_proj_b"],
            lp["ln1_g"], lp["ln1_b"], lp["cross_q_w"], lp["cross_q_b"])
    return pl.pallas_call(
        _proj_addln_q_kernel,
        out_shape=(jax.ShapeDtypeStruct((n, e), F32),
                   jax.ShapeDtypeStruct((n, e), BF16)),
        grid=(n // tm,),
        in_specs=[row, row] + [_full_spec(a) for a in args[2:]],
        out_specs=(row, row),
        compiler_params=_PARALLEL1,
    )(*args)


def pallas_proj_addln_ffn_addln(attn2d, res2d, lp):
    n, e = attn2d.shape
    tm = _row_tile(n)
    row = pl.BlockSpec((tm, e), lambda i: (i, 0))
    args = (attn2d, res2d, lp["cross_proj_w"], lp["cross_proj_b"],
            lp["ln2_g"], lp["ln2_b"], lp["ff_w1"], lp["ff_b1"],
            lp["ff_w2"], lp["ff_b2"], lp["ln3_g"], lp["ln3_b"])
    return pl.pallas_call(
        _proj_addln_ffn_addln_kernel,
        out_shape=jax.ShapeDtypeStruct((n, e), F32),
        grid=(n // tm,),
        in_specs=[row, row] + [_full_spec(a) for a in args[2:]],
        out_specs=row,
        compiler_params=_PARALLEL1,
    )(*args)


# ----------------------------------------------------------------------------
# Decoder forward (Pallas path)
# ----------------------------------------------------------------------------

def decoder_forward_pallas(prep, x, memory, n_heads):
    B, S, E = x.shape
    S_mem = memory.shape[1]
    hd = E // n_heads
    n_blocks = len(prep["layers"])
    x2d = x.reshape(B * S, E)              # f32 residual stream
    mem2d = memory.reshape(B * S_mem, E)

    # Cross-attention K/V of `memory` for ALL layers — one pallas_call,
    # memory read from HBM once, one bf16 output per (layer, K/V).
    kv_outs = pallas_multi_linear(mem2d, prep["cross_kv_ws"], prep["cross_kv_bs"])
    # Free metadata reshapes reproduce the PyTorch `.view(B, H, S_mem, hd)`
    # (NO transpose): heads stay folded into the row axis as (B, H*S_mem, hd).
    cross_kv = [(kv_outs[2 * l].reshape(B, n_heads * S_mem, hd),
                 kv_outs[2 * l + 1].reshape(B, n_heads * S_mem, hd))
                for l in range(n_blocks)]

    for l, lp in enumerate(prep["layers"]):
        # ---- masked self-attention + residual + LN1 (+ fused cross-Q proj) --
        q, k, v = pallas_multi_linear(
            x2d,
            [lp["self_q_w"], lp["self_k_w"], lp["self_v_w"]],
            [lp["self_q_b"], lp["self_k_b"], lp["self_v_b"]])
        q = q.reshape(B, n_heads * S, hd)
        k = k.reshape(B, n_heads * S, hd)
        v = v.reshape(B, n_heads * S, hd)
        attn = pallas_attention(q, k, v, n_heads, causal=True)
        x2d, q2 = pallas_proj_addln_q(attn.reshape(B * S, E), x2d, lp)

        # ---- cross-attention + residual + LN2 + FFN + residual + LN3 ----
        k2, v2 = cross_kv[l]
        attn2 = pallas_attention(q2.reshape(B, n_heads * S, hd), k2, v2,
                                 n_heads, causal=False)
        x2d = pallas_proj_addln_ffn_addln(attn2.reshape(B * S, E), x2d, lp)

    return x2d.reshape(B, S, E)


# ----------------------------------------------------------------------------
# Parameter init (original module layout) + Pallas-side preparation
# ----------------------------------------------------------------------------

def _w(key, shape, scale=0.05):
    return jax.random.normal(key, shape, F32) * scale


def init_mha_params(key, E):
    ks = jax.random.split(key, 8)
    return {
        "q_w": _w(ks[0], (E, E)), "q_b": _w(ks[1], (E,)),
        "k_w": _w(ks[2], (E, E)), "k_b": _w(ks[3], (E,)),
        "v_w": _w(ks[4], (E, E)), "v_b": _w(ks[5], (E,)),
        "proj_w": _w(ks[6], (E, E)), "proj_b": _w(ks[7], (E,)),
    }


def init_block_params(key, E, d_ff):
    ks = jax.random.split(key, 12)
    return {
        "mmha": init_mha_params(ks[0], E),
        "mha": init_mha_params(ks[1], E),
        "ff_w1": _w(ks[2], (E, d_ff)), "ff_b1": _w(ks[3], (d_ff,)),
        "ff_w2": _w(ks[4], (d_ff, E)), "ff_b2": _w(ks[5], (E,)),
        "ln1_g": 1.0 + _w(ks[6], (E,), 0.01), "ln1_b": _w(ks[7], (E,), 0.01),
        "ln2_g": 1.0 + _w(ks[8], (E,), 0.01), "ln2_b": _w(ks[9], (E,), 0.01),
        "ln3_g": 1.0 + _w(ks[10], (E,), 0.01), "ln3_b": _w(ks[11], (E,), 0.01),
    }


def init_decoder_params(key, n_blocks, E, d_ff):
    return [init_block_params(jax.random.fold_in(key, i), E, d_ff)
            for i in range(n_blocks)]


def prepare_pallas_params(params, n_heads):
    """Cast matmul weights to bf16 once; fold 1/sqrt(hd) into Q projections."""
    E = params[0]["ln1_g"].shape[0]
    scale = 1.0 / math.sqrt(E // n_heads)
    r = lambda a: a.reshape(1, -1).astype(F32)
    layers, kv_ws, kv_bs = [], [], []
    for p in params:
        mm, mh = p["mmha"], p["mha"]
        layers.append({
            "self_q_w": (mm["q_w"] * scale).astype(BF16),
            "self_q_b": r(mm["q_b"] * scale),
            "self_k_w": mm["k_w"].astype(BF16), "self_k_b": r(mm["k_b"]),
            "self_v_w": mm["v_w"].astype(BF16), "self_v_b": r(mm["v_b"]),
            "self_proj_w": mm["proj_w"].astype(BF16),
            "self_proj_b": r(mm["proj_b"]),
            "ln1_g": r(p["ln1_g"]), "ln1_b": r(p["ln1_b"]),
            "cross_q_w": (mh["q_w"] * scale).astype(BF16),
            "cross_q_b": r(mh["q_b"] * scale),
            "cross_proj_w": mh["proj_w"].astype(BF16),
            "cross_proj_b": r(mh["proj_b"]),
            "ln2_g": r(p["ln2_g"]), "ln2_b": r(p["ln2_b"]),
            "ff_w1": p["ff_w1"].astype(BF16), "ff_b1": r(p["ff_b1"]),
            "ff_w2": p["ff_w2"].astype(BF16), "ff_b2": r(p["ff_b2"]),
            "ln3_g": r(p["ln3_g"]), "ln3_b": r(p["ln3_b"]),
        })
        kv_ws += [mh["k_w"].astype(BF16), mh["v_w"].astype(BF16)]
        kv_bs += [r(mh["k_b"]), r(mh["v_b"])]
    return {"layers": layers, "cross_kv_ws": kv_ws, "cross_kv_bs": kv_bs}


# ----------------------------------------------------------------------------
# Pure-JAX f32 reference (original module semantics)
# ----------------------------------------------------------------------------

def ref_mha(p, q_in, k_in, v_in, mask, n_heads):
    B, Sq, E = q_in.shape
    Skv = k_in.shape[1]
    hd = E // n_heads
    q = (q_in @ p["q_w"] + p["q_b"]).reshape(B, n_heads, Sq, hd)
    k = (k_in @ p["k_w"] + p["k_b"]).reshape(B, n_heads, Skv, hd)
    v = (v_in @ p["v_w"] + p["v_b"]).reshape(B, n_heads, Skv, hd)
    s = jnp.einsum("bhqd,bhkd->bhqk", q, k) / math.sqrt(hd)
    if mask is not None:
        s = jnp.where(mask[None, None] == 0, -jnp.inf, s)
    a = jnp.einsum("bhqk,bhkd->bhqd", jax.nn.softmax(s, axis=-1), v)
    return a.reshape(B, Sq, E) @ p["proj_w"] + p["proj_b"]


def decoder_forward_ref(params, x, memory, n_heads):
    S = x.shape[1]
    causal = jnp.tril(jnp.ones((S, S), jnp.int32))
    for p in params:
        a1 = ref_mha(p["mmha"], x, x, x, causal, n_heads)
        x = _layernorm(a1 + x, p["ln1_g"], p["ln1_b"])
        a2 = ref_mha(p["mha"], x, memory, memory, None, n_heads)
        x = _layernorm(a2 + x, p["ln2_g"], p["ln2_b"])
        f = jnp.maximum(x @ p["ff_w1"] + p["ff_b1"], 0.0) @ p["ff_w2"] + p["ff_b2"]
        x = _layernorm(f + x, p["ln3_g"], p["ln3_b"])
    return x


# ----------------------------------------------------------------------------
# Main
# ----------------------------------------------------------------------------

if __name__ == "__main__":
    n_blocks, n_heads, embed_size, d_ff = 2, 4, 32, 64
    B, S, S_mem = 2, 16, 16
    assert embed_size % n_heads == 0

    key = jax.random.PRNGKey(0)
    k_x, k_mem, k_par = jax.random.split(key, 3)
    x = jax.random.normal(k_x, (B, S, embed_size), F32)
    memory = jax.random.normal(k_mem, (B, S_mem, embed_size), F32)
    params = init_decoder_params(k_par, n_blocks, embed_size, d_ff)
    prep = prepare_pallas_params(params, n_heads)

    fwd = jax.jit(functools.partial(decoder_forward_pallas, n_heads=n_heads))
    out = jax.block_until_ready(fwd(prep, x, memory))

    ref = jax.block_until_ready(decoder_forward_ref(params, x, memory, n_heads))

    assert out.shape == (B, S, embed_size)
    # Tolerance reflects bf16 matmul operands/activations + approx reciprocal in
    # the softmax vs. the pure-f32 reference; structural errors would be O(1).
    np.testing.assert_allclose(np.asarray(out), np.asarray(ref),
                               rtol=4e-2, atol=4e-2)
    print("KERNEL_OK")
</pallas_src>

<mosaic_0001>
module attributes {stable_mosaic.version = 11 : i64} {
  func.func @_attn_kernel(%arg0: i32, %arg1: i32, %arg2: i32, %arg3: memref<1x16x8xbf16, #tpu.memory_space<vmem>>, %arg4: memref<1x16x8xbf16, #tpu.memory_space<vmem>>, %arg5: memref<1x16x8xbf16, #tpu.memory_space<vmem>>, %arg6: memref<1x16x8xbf16, #tpu.memory_space<vmem>>, %arg7: memref<16x1xf32, #tpu.memory_space<vmem>>, %arg8: memref<16x1xf32, #tpu.memory_space<vmem>>, %arg9: memref<16x8xf32, #tpu.memory_space<vmem>>) attributes {dimension_semantics = [#tpu.dimension_semantics<parallel>, #tpu.dimension_semantics<parallel>, #tpu.dimension_semantics<arbitrary>], iteration_bounds = array<i64: 2, 4, 1>, scalar_prefetch = 0 : i64, scratch_operands = 3 : i64, tpu.core_type = #tpu.core_type<tc>, window_params = [{transform_indices = @transform_0, window_bounds = array<i64: 1, 16, 8>}, {transform_indices = @transform_1, window_bounds = array<i64: 1, 16, 8>}, {transform_indices = @transform_2, window_bounds = array<i64: 1, 16, 8>}, {transform_indices = @transform_3, window_bounds = array<i64: 1, 16, 8>}]} {
    %c0_i32 = arith.constant 0 : i32
    %0 = arith.cmpi eq, %arg2, %c0_i32 : i32
    %1 = arith.extui %0 : i1 to i32
    %c0_i32_0 = arith.constant 0 : i32
    %2 = arith.cmpi ne, %1, %c0_i32_0 : i32
    scf.if %2 {
      %cst_27 = arith.constant -1.000000e+30 : f32
      %44 = vector.broadcast %cst_27 : f32 to vector<16x1xf32>
      %c0_28 = arith.constant 0 : index
      %c0_29 = arith.constant 0 : index
      %45 = vector.load %arg7[%c0_28, %c0_29] : memref<16x1xf32, #tpu.memory_space<vmem>>, vector<16x1xf32>
      tpu.vector_store %arg7[%c0_28, %c0_29], %44 {strides = array<i32>} : memref<16x1xf32, #tpu.memory_space<vmem>>, vector<16x1xf32>,
      %cst_30 = arith.constant 0.000000e+00 : f32
      %46 = vector.broadcast %cst_30 : f32 to vector<16x1xf32>
      %c0_31 = arith.constant 0 : index
      %c0_32 = arith.constant 0 : index
      %47 = vector.load %arg8[%c0_31, %c0_32] : memref<16x1xf32, #tpu.memory_space<vmem>>, vector<16x1xf32>
      tpu.vector_store %arg8[%c0_31, %c0_32], %46 {strides = array<i32>} : memref<16x1xf32, #tpu.memory_space<vmem>>, vector<16x1xf32>,
      %cst_33 = arith.constant 0.000000e+00 : f32
      %48 = vector.broadcast %cst_33 : f32 to vector<16x8xf32>
      %c0_34 = arith.constant 0 : index
      %c0_35 = arith.constant 0 : index
      %49 = vector.load %arg9[%c0_34, %c0_35] : memref<16x8xf32, #tpu.memory_space<vmem>>, vector<16x8xf32>
      tpu.vector_store %arg9[%c0_34, %c0_35], %48 {strides = array<i32>} : memref<16x8xf32, #tpu.memory_space<vmem>>, vector<16x8xf32>,
    } else {
    }
    %c0 = arith.constant 0 : index
    %c0_1 = arith.constant 0 : index
    %c0_2 = arith.constant 0 : index
    %3 = vector.load %arg3[%c0, %c0_1, %c0_2] : memref<1x16x8xbf16, #tpu.memory_space<vmem>>, vector<1x16x8xbf16>
    %4 = vector.shape_cast %3 : vector<1x16x8xbf16> to vector<16x8xbf16>
    %c0_3 = arith.constant 0 : index
    %c0_4 = arith.constant 0 : index
    %c0_5 = arith.constant 0 : index
    %5 = vector.load %arg4[%c0_3, %c0_4, %c0_5] : memref<1x16x8xbf16, #tpu.memory_space<vmem>>, vector<1x16x8xbf16>
    %6 = vector.shape_cast %5 : vector<1x16x8xbf16> to vector<16x8xbf16>
    %c0_6 = arith.constant 0 : index
    %c0_7 = arith.constant 0 : index
    %c0_8 = arith.constant 0 : index
    %7 = vector.load %arg5[%c0_6, %c0_7, %c0_8] : memref<1x16x8xbf16, #tpu.memory_space<vmem>>, vector<1x16x8xbf16>
    %8 = vector.shape_cast %7 : vector<1x16x8xbf16> to vector<16x8xbf16>
    %cst = arith.constant dense<0.000000e+00> : vector<16x16xf32>
    %9 = tpu.matmul %4, %6, %cst {dimension_numbers = #tpu.dot_dimension_numbers<[1], [1], [0], [0], [0, 0, 1, 0], [], []>} : vector<16x8xbf16>, vector<16x8xbf16>, vector<16x16xf32> -> vector<16x16xf32>
    %10 = tpu.iota {dimensions = array<i32: 0>} : vector<16x16xi32>
    %11 = tpu.iota {dimensions = array<i32: 1>} : vector<16x16xi32>
    %c16_i32 = arith.constant 16 : i32
    %12 = arith.muli %arg2, %c16_i32 : i32
    %13 = vector.broadcast %12 : i32 to vector<16x16xi32>
    %14 = arith.addi %11, %13 : vector<16x16xi32>
    %15 = arith.cmpi sle, %14, %10 : vector<16x16xi32>
    %cst_9 = arith.constant -1.000000e+30 : f32
    %16 = vector.broadcast %cst_9 : f32 to vector<16x16xf32>
    %17 = arith.select %15, %9, %16 : vector<16x16xi1>, vector<16x16xf32>
    %c0_10 = arith.constant 0 : index
    %c0_11 = arith.constant 0 : index
    %18 = vector.load %arg7[%c0_10, %c0_11] : memref<16x1xf32, #tpu.memory_space<vmem>>, vector<16x1xf32>
    %cst_12 = arith.constant dense<0xFF800000> : vector<16xf32>
    %19 = vector.multi_reduction <maximumf>, %17, %cst_12 [1] : vector<16x16xf32> to vector<16xf32>
    %20 = vector.shape_cast %19 : vector<16xf32> to vector<16x1xf32>
    %21 = arith.maximumf %18, %20 : vector<16x1xf32>
    %22 = arith.subf %18, %21 : vector<16x1xf32>
    %23 = math.exp %22 : vector<16x1xf32>
    %24 = vector.broadcast %21 : vector<16x1xf32> to vector<16x16xf32>
    %25 = arith.subf %17, %24 : vector<16x16xf32>
    %26 = math.exp %25 : vector<16x16xf32>
    %c0_13 = arith.constant 0 : index
    %c0_14 = arith.constant 0 : index
    %27 = vector.load %arg8[%c0_13, %c0_14] : memref<16x1xf32, #tpu.memory_space<vmem>>, vector<16x1xf32>
    %28 = arith.mulf %23, %27 : vector<16x1xf32>
    %cst_15 = arith.constant dense<0.000000e+00> : vector<16xf32>
    %29 = vector.multi_reduction <add>, %26, %cst_15 [1] : vector<16x16xf32> to vector<16xf32>
    %30 = vector.shape_cast %29 : vector<16xf32> to vector<16x1xf32>
    %31 = arith.addf %28, %30 : vector<16x1xf32>
    %c0_16 = arith.constant 0 : index
    %c0_17 = arith.constant 0 : index
    %32 = vector.load %arg8[%c0_16, %c0_17] : memref<16x1xf32, #tpu.memory_space<vmem>>, vector<16x1xf32>
    tpu.vector_store %arg8[%c0_16, %c0_17], %31 {strides = array<i32>} : memref<16x1xf32, #tpu.memory_space<vmem>>, vector<16x1xf32>,
    %c0_18 = arith.constant 0 : index
    %c0_19 = arith.constant 0 : index
    %33 = vector.load %arg9[%c0_18, %c0_19] : memref<16x8xf32, #tpu.memory_space<vmem>>, vector<16x8xf32>
    %34 = vector.broadcast %23 : vector<16x1xf32> to vector<16x8xf32>
    %35 = arith.mulf %34, %33 : vector<16x8xf32>
    %36 = arith.truncf %26 : vector<16x16xf32> to vector<16x16xbf16>
    %cst_20 = arith.constant dense<0.000000e+00> : vector<16x8xf32>
    %37 = tpu.matmul %36, %8, %cst_20 {dimension_numbers = #tpu.dot_dimension_numbers<[1], [0], [0], [1], [0, 0, 1, 1], [], []>} : vector<16x16xbf16>, vector<16x8xbf16>, vector<16x8xf32> -> vector<16x8xf32>
    %38 = arith.addf %35, %37 : vector<16x8xf32>
    %c0_21 = arith.constant 0 : index
    %c0_22 = arith.constant 0 : index
    %39 = vector.load %arg9[%c0_21, %c0_22] : memref<16x8xf32, #tpu.memory_space<vmem>>, vector<16x8xf32>
    tpu.vector_store %arg9[%c0_21, %c0_22], %38 {strides = array<i32>} : memref<16x8xf32, #tpu.memory_space<vmem>>, vector<16x8xf32>,
    %c0_23 = arith.constant 0 : index
    %c0_24 = arith.constant 0 : index
    %40 = vector.load %arg7[%c0_23, %c0_24] : memref<16x1xf32, #tpu.memory_space<vmem>>, vector<16x1xf32>
    tpu.vector_store %arg7[%c0_23, %c0_24], %21 {strides = array<i32>} : memref<16x1xf32, #tpu.memory_space<vmem>>, vector<16x1xf32>,
    %c0_i32_25 = arith.constant 0 : i32
    %41 = arith.cmpi eq, %arg2, %c0_i32_25 : i32
    %42 = arith.extui %41 : i1 to i32
    %c0_i32_26 = arith.constant 0 : i32
    %43 = arith.cmpi ne, %42, %c0_i32_26 : i32
    scf.if %43 {
      %c0_27 = arith.constant 0 : index
      %c0_28 = arith.constant 0 : index
      %44 = vector.load %arg9[%c0_27, %c0_28] : memref<16x8xf32, #tpu.memory_space<vmem>>, vector<16x8xf32>
      %c0_29 = arith.constant 0 : index
      %c0_30 = arith.constant 0 : index
      %45 = vector.load %arg8[%c0_29, %c0_30] : memref<16x1xf32, #tpu.memory_space<vmem>>, vector<16x1xf32>
      %46 = tpu.reciprocal %45 {approx = true} : vector<16x1xf32> -> vector<16x1xf32>
      %47 = vector.broadcast %46 : vector<16x1xf32> to vector<16x8xf32>
      %48 = arith.mulf %44, %47 : vector<16x8xf32>
      %49 = arith.truncf %48 : vector<16x8xf32> to vector<16x8xbf16>
      %c0_31 = arith.constant 0 : index
      %c0_32 = arith.constant 0 : index
      %c0_33 = arith.constant 0 : index
      %50 = vector.load %arg6[%c0_31, %c0_32, %c0_33] : memref<1x16x8xbf16, #tpu.memory_space<vmem>>, vector<1x16x8xbf16>
      %51 = vector.shape_cast %50 : vector<1x16x8xbf16> to vector<16x8xbf16>
      %52 = vector.shape_cast %49 : vector<16x8xbf16> to vector<1x16x8xbf16>
      tpu.vector_store %arg6[%c0_31, %c0_32, %c0_33], %52 {strides = array<i32>} : memref<1x16x8xbf16, #tpu.memory_space<vmem>>, vector<1x16x8xbf16>,
    } else {
    }
    return
  }
  func.func @transform_0(%arg0: i32, %arg1: i32, %arg2: i32) -> (i32, i32, i32) {
    %c0_i32 = arith.constant 0 : i32
    %c0_i32_0 = arith.constant 0 : i32
    return %arg0, %arg1, %c0_i32 : i32, i32, i32
  }
  func.func @transform_1(%arg0: i32, %arg1: i32, %arg2: i32) -> (i32, i32, i32) {
    %c1_i32 = arith.constant 1 : i32
    %0 = arith.muli %arg1, %c1_i32 : i32
    %1 = arith.addi %0, %arg2 : i32
    %c0_i32 = arith.constant 0 : i32
    %c0_i32_0 = arith.constant 0 : i32
    return %arg0, %1, %c0_i32 : i32, i32, i32
  }
  func.func @transform_2(%arg0: i32, %arg1: i32, %arg2: i32) -> (i32, i32, i32) {
    %c1_i32 = arith.constant 1 : i32
    %0 = arith.muli %arg1, %c1_i32 : i32
    %1 = arith.addi %0, %arg2 : i32
    %c0_i32 = arith.constant 0 : i32
    %c0_i32_0 = arith.constant 0 : i32
    return %arg0, %1, %c0_i32 : i32, i32, i32
  }
  func.func @transform_3(%arg0: i32, %arg1: i32, %arg2: i32) -> (i32, i32, i32) {
    %c0_i32 = arith.constant 0 : i32
    %c0_i32_0 = arith.constant 0 : i32
    return %arg0, %arg1, %c0_i32 : i32, i32, i32
  }
}

module attributes {stable_mosaic.version = 11 : i64} {
  func.func @_multi_linear_kernel(%arg0: i32, %arg1: memref<16x32xf32, #tpu.memory_space<vmem>>, %arg2: memref<32x32xbf16, #tpu.memory_space<vmem>>, %arg3: memref<32x32xbf16, #tpu.memory_space<vmem>>, %arg4: memref<32x32xbf16, #tpu.memory_space<vmem>>, %arg5: memref<1x32xf32, #tpu.memory_space<vmem>>, %arg6: memref<1x32xf32, #tpu.memory_space<vmem>>, %arg7: memref<1x32xf32, #tpu.memory_space<vmem>>, %arg8: memref<16x32xbf16, #tpu.memory_space<vmem>>, %arg9: memref<16x32xbf16, #tpu.memory_space<vmem>>, %arg10: memref<16x32xbf16, #tpu.memory_space<vmem>>) attributes {dimension_semantics = [#tpu.dimension_semantics<parallel>], iteration_bounds = array<i64: 2>, scalar_prefetch = 0 : i64, scratch_operands = 0 : i64, tpu.core_type = #tpu.core_type<tc>, window_params = [{transform_indices = @transform_0, window_bounds = array<i64: 16, 32>}, {pipeline_mode = #tpu.pipeline_mode<synchronous>, transform_indices = @transform_1, window_bounds = array<i64: 32, 32>}, {pipeline_mode = #tpu.pipeline_mode<synchronous>, transform_indices = @transform_2, window_bounds = array<i64: 32, 32>}, {pipeline_mode = #tpu.pipeline_mode<synchronous>, transform_indices = @transform_3, window_bounds = array<i64: 32, 32>}, {pipeline_mode = #tpu.pipeline_mode<synchronous>, transform_indices = @transform_4, window_bounds = array<i64: 1, 32>}, {pipeline_mode = #tpu.pipeline_mode<synchronous>, transform_indices = @transform_5, window_bounds = array<i64: 1, 32>}, {pipeline_mode = #tpu.pipeline_mode<synchronous>, transform_indices = @transform_6, window_bounds = array<i64: 1, 32>}, {transform_indices = @transform_7, window_bounds = array<i64: 16, 32>}, {transform_indices = @transform_8, window_bounds = array<i64: 16, 32>}, {transform_indices = @transform_9, window_bounds = array<i64: 16, 32>}]} {
    %c0 = arith.constant 0 : index
    %c0_0 = arith.constant 0 : index
    %0 = vector.load %arg1[%c0, %c0_0] : memref<16x32xf32, #tpu.memory_space<vmem>>, vector<16x32xf32>
    %1 = arith.truncf %0 : vector<16x32xf32> to vector<16x32xbf16>
    %c0_1 = arith.constant 0 : index
    %c0_2 = arith.constant 0 : index
    %2 = vector.load %arg2[%c0_1, %c0_2] : memref<32x32xbf16, #tpu.memory_space<vmem>>, vector<32x32xbf16>
    %cst = arith.constant dense<0.000000e+00> : vector<16x32xf32>
    %3 = tpu.matmul %1, %2, %cst {dimension_numbers = #tpu.dot_dimension_numbers<[1], [0], [0], [1], [0, 0, 1, 1], [], []>} : vector<16x32xbf16>, vector<32x32xbf16>, vector<16x32xf32> -> vector<16x32xf32>
    %c0_3 = arith.constant 0 : index
    %c0_4 = arith.constant 0 : index
    %4 = vector.load %arg5[%c0_3, %c0_4] : memref<1x32xf32, #tpu.memory_space<vmem>>, vector<1x32xf32>
    %5 = vector.broadcast %4 : vector<1x32xf32> to vector<16x32xf32>
    %6 = arith.addf %3, %5 : vector<16x32xf32>
    %7 = arith.truncf %6 : vector<16x32xf32> to vector<16x32xbf16>
    %c0_5 = arith.constant 0 : index
    %c0_6 = arith.constant 0 : index
    %8 = vector.load %arg8[%c0_5, %c0_6] : memref<16x32xbf16, #tpu.memory_space<vmem>>, vector<16x32xbf16>
    tpu.vector_store %arg8[%c0_5, %c0_6], %7 {strides = array<i32>} : memref<16x32xbf16, #tpu.memory_space<vmem>>, vector<16x32xbf16>,
    %c0_7 = arith.constant 0 : index
    %c0_8 = arith.constant 0 : index
    %9 = vector.load %arg3[%c0_7, %c0_8] : memref<32x32xbf16, #tpu.memory_space<vmem>>, vector<32x32xbf16>
    %cst_9 = arith.constant dense<0.000000e+00> : vector<16x32xf32>
    %10 = tpu.matmul %1, %9, %cst_9 {dimension_numbers = #tpu.dot_dimension_numbers<[1], [0], [0], [1], [0, 0, 1, 1], [], []>} : vector<16x32xbf16>, vector<32x32xbf16>, vector<16x32xf32> -> vector<16x32xf32>
    %c0_10 = arith.constant 0 : index
    %c0_11 = arith.constant 0 : index
    %11 = vector.load %arg6[%c0_10, %c0_11] : memref<1x32xf32, #tpu.memory_space<vmem>>, vector<1x32xf32>
    %12 = vector.broadcast %11 : vector<1x32xf32> to vector<16x32xf32>
    %13 = arith.addf %10, %12 : vector<16x32xf32>
    %14 = arith.truncf %13 : vector<16x32xf32> to vector<16x32xbf16>
    %c0_12 = arith.constant 0 : index
    %c0_13 = arith.constant 0 : index
    %15 = vector.load %arg9[%c0_12, %c0_13] : memref<16x32xbf16, #tpu.memory_space<vmem>>, vector<16x32xbf16>
    tpu.vector_store %arg9[%c0_12, %c0_13], %14 {strides = array<i32>} : memref<16x32xbf16, #tpu.memory_space<vmem>>, vector<16x32xbf16>,
    %c0_14 = arith.constant 0 : index
    %c0_15 = arith.constant 0 : index
    %16 = vector.load %arg4[%c0_14, %c0_15] : memref<32x32xbf16, #tpu.memory_space<vmem>>, vector<32x32xbf16>
    %cst_16 = arith.constant dense<0.000000e+00> : vector<16x32xf32>
    %17 = tpu.matmul %1, %16, %cst_16 {dimension_numbers = #tpu.dot_dimension_numbers<[1], [0], [0], [1], [0, 0, 1, 1], [], []>} : vector<16x32xbf16>, vector<32x32xbf16>, vector<16x32xf32> -> vector<16x32xf32>
    %c0_17 = arith.constant 0 : index
    %c0_18 = arith.constant 0 : index
    %18 = vector.load %arg7[%c0_17, %c0_18] : memref<1x32xf32, #tpu.memory_space<vmem>>, vector<1x32xf32>
    %19 = vector.broadcast %18 : vector<1x32xf32> to vector<16x32xf32>
    %20 = arith.addf %17, %19 : vector<16x32xf32>
    %21 = arith.truncf %20 : vector<16x32xf32> to vector<16x32xbf16>
    %c0_19 = arith.constant 0 : index
    %c0_20 = arith.constant 0 : index
    %22 = vector.load %arg10[%c0_19, %c0_20] : memref<16x32xbf16, #tpu.memory_space<vmem>>, vector<16x32xbf16>
    tpu.vector_store %arg10[%c0_19, %c0_20], %21 {strides = array<i32>} : memref<16x32xbf16, #tpu.memory_space<vmem>>, vector<16x32xbf16>,
    return
  }
  func.func @transform_0(%arg0: i32) -> (i32, i32) {
    %c0_i32 = arith.constant 0 : i32
    %c0_i32_0 = arith.constant 0 : i32
    return %arg0, %c0_i32 : i32, i32
  }
  func.func @transform_1(%arg0: i32) -> (i32, i32) {
    %c0_i32 = arith.constant 0 : i32
    %c0_i32_0 = arith.constant 0 : i32
    %c0_i32_1 = arith.constant 0 : i32
    return %c0_i32, %c0_i32_0 : i32, i32
  }
  func.func @transform_2(%arg0: i32) -> (i32, i32) {
    %c0_i32 = arith.constant 0 : i32
    %c0_i32_0 = arith.constant 0 : i32
    %c0_i32_1 = arith.constant 0 : i32
    return %c0_i32, %c0_i32_0 : i32, i32
  }
  func.func @transform_3(%arg0: i32) -> (i32, i32) {
    %c0_i32 = arith.constant 0 : i32
    %c0_i32_0 = arith.constant 0 : i32
    %c0_i32_1 = arith.constant 0 : i32
    return %c0_i32, %c0_i32_0 : i32, i32
  }
  func.func @transform_4(%arg0: i32) -> (i32, i32) {
    %c0_i32 = arith.constant 0 : i32
    %c0_i32_0 = arith.constant 0 : i32
    %c0_i32_1 = arith.constant 0 : i32
    return %c0_i32, %c0_i32_0 : i32, i32
  }
  func.func @transform_5(%arg0: i32) -> (i32, i32) {
    %c0_i32 = arith.constant 0 : i32
    %c0_i32_0 = arith.constant 0 : i32
    %c0_i32_1 = arith.constant 0 : i32
    return %c0_i32, %c0_i32_0 : i32, i32
  }
  func.func @transform_6(%arg0: i32) -> (i32, i32) {
    %c0_i32 = arith.constant 0 : i32
    %c0_i32_0 = arith.constant 0 : i32
    %c0_i32_1 = arith.constant 0 : i32
    return %c0_i32, %c0_i32_0 : i32, i32
  }
  func.func @transform_7(%arg0: i32) -> (i32, i32) {
    %c0_i32 = arith.constant 0 : i32
    %c0_i32_0 = arith.constant 0 : i32
    return %arg0, %c0_i32 : i32, i32
  }
  func.func @transform_8(%arg0: i32) -> (i32, i32) {
    %c0_i32 = arith.constant 0 : i32
    %c0_i32_0 = arith.constant 0 : i32
    return %arg0, %c0_i32 : i32, i32
  }
  func.func @transform_9(%arg0: i32) -> (i32, i32) {
    %c0_i32 = arith.constant 0 : i32
    %c0_i32_0 = arith.constant 0 : i32
    return %arg0, %c0_i32 : i32, i32
  }
}

module attributes {stable_mosaic.version = 11 : i64} {
  func.func @_proj_addln_q_kernel(%arg0: i32, %arg1: memref<16x32xbf16, #tpu.memory_space<vmem>>, %arg2: memref<16x32xf32, #tpu.memory_space<vmem>>, %arg3: memref<32x32xbf16, #tpu.memory_space<vmem>>, %arg4: memref<1x32xf32, #tpu.memory_space<vmem>>, %arg5: memref<1x32xf32, #tpu.memory_space<vmem>>, %arg6: memref<1x32xf32, #tpu.memory_space<vmem>>, %arg7: memref<32x32xbf16, #tpu.memory_space<vmem>>, %arg8: memref<1x32xf32, #tpu.memory_space<vmem>>, %arg9: memref<16x32xf32, #tpu.memory_space<vmem>>, %arg10: memref<16x32xbf16, #tpu.memory_space<vmem>>) attributes {dimension_semantics = [#tpu.dimension_semantics<parallel>], iteration_bounds = array<i64: 2>, scalar_prefetch = 0 : i64, scratch_operands = 0 : i64, tpu.core_type = #tpu.core_type<tc>, window_params = [{transform_indices = @transform_0, window_bounds = array<i64: 16, 32>}, {transform_indices = @transform_1, window_bounds = array<i64: 16, 32>}, {pipeline_mode = #tpu.pipeline_mode<synchronous>, transform_indices = @transform_2, window_bounds = array<i64: 32, 32>}, {pipeline_mode = #tpu.pipeline_mode<synchronous>, transform_indices = @transform_3, window_bounds = array<i64: 1, 32>}, {pipeline_mode = #tpu.pipeline_mode<synchronous>, transform_indices = @transform_4, window_bounds = array<i64: 1, 32>}, {pipeline_mode = #tpu.pipeline_mode<synchronous>, transform_indices = @transform_5, window_bounds = array<i64: 1, 32>}, {pipeline_mode = #tpu.pipeline_mode<synchronous>, transform_indices = @transform_6, window_bounds = array<i64: 32, 32>}, {pipeline_mode = #tpu.pipeline_mode<synchronous>, transform_indices = @transform_7, window_bounds = array<i64: 1, 32>}, {transform_indices = @transform_8, window_bounds = array<i64: 16, 32>}, {transform_indices = @transform_9, window_bounds = array<i64: 16, 32>}]} {
    %c0 = arith.constant 0 : index
    %c0_0 = arith.constant 0 : index
    %0 = vector.load %arg1[%c0, %c0_0] : memref<16x32xbf16, #tpu.memory_space<vmem>>, vector<16x32xbf16>
    %c0_1 = arith.constant 0 : index
    %c0_2 = arith.constant 0 : index
    %1 = vector.load %arg3[%c0_1, %c0_2] : memref<32x32xbf16, #tpu.memory_space<vmem>>, vector<32x32xbf16>
    %cst = arith.constant dense<0.000000e+00> : vector<16x32xf32>
    %2 = tpu.matmul %0, %1, %cst {dimension_numbers = #tpu.dot_dimension_numbers<[1], [0], [0], [1], [0, 0, 1, 1], [], []>} : vector<16x32xbf16>, vector<32x32xbf16>, vector<16x32xf32> -> vector<16x32xf32>
    %c0_3 = arith.constant 0 : index
    %c0_4 = arith.constant 0 : index
    %3 = vector.load %arg4[%c0_3, %c0_4] : memref<1x32xf32, #tpu.memory_space<vmem>>, vector<1x32xf32>
    %4 = vector.broadcast %3 : vector<1x32xf32> to vector<16x32xf32>
    %5 = arith.addf %2, %4 : vector<16x32xf32>
    %c0_5 = arith.constant 0 : index
    %c0_6 = arith.constant 0 : index
    %6 = vector.load %arg2[%c0_5, %c0_6] : memref<16x32xf32, #tpu.memory_space<vmem>>, vector<16x32xf32>
    %7 = arith.addf %5, %6 : vector<16x32xf32>
    %c0_7 = arith.constant 0 : index
    %c0_8 = arith.constant 0 : index
    %8 = vector.load %arg5[%c0_7, %c0_8] : memref<1x32xf32, #tpu.memory_space<vmem>>, vector<1x32xf32>
    %c0_9 = arith.constant 0 : index
    %c0_10 = arith.constant 0 : index
    %9 = vector.load %arg6[%c0_9, %c0_10] : memref<1x32xf32, #tpu.memory_space<vmem>>, vector<1x32xf32>
    %cst_11 = arith.constant dense<0.000000e+00> : vector<16xf32>
    %10 = vector.multi_reduction <add>, %7, %cst_11 [1] : vector<16x32xf32> to vector<16xf32>
    %11 = vector.shape_cast %10 : vector<16xf32> to vector<16x1xf32>
    %cst_12 = arith.constant 3.200000e+01 : f32
    %12 = vector.broadcast %cst_12 : f32 to vector<16x1xf32>
    %13 = arith.divf %11, %12 : vector<16x1xf32>
    %14 = vector.broadcast %13 : vector<16x1xf32> to vector<16x32xf32>
    %15 = arith.subf %7, %14 : vector<16x32xf32>
    %16 = arith.mulf %15, %15 : vector<16x32xf32>
    %cst_13 = arith.constant dense<0.000000e+00> : vector<16xf32>
    %17 = vector.multi_reduction <add>, %16, %cst_13 [1] : vector<16x32xf32> to vector<16xf32>
    %18 = vector.shape_cast %17 : vector<16xf32> to vector<16x1xf32>
    %cst_14 = arith.constant 3.200000e+01 : f32
    %19 = vector.broadcast %cst_14 : f32 to vector<16x1xf32>
    %20 = arith.divf %18, %19 : vector<16x1xf32>
    %21 = vector.broadcast %13 : vector<16x1xf32> to vector<16x32xf32>
    %22 = arith.subf %7, %21 : vector<16x32xf32>
    %cst_15 = arith.constant 9.99999974E-6 : f32
    %23 = vector.broadcast %cst_15 : f32 to vector<16x1xf32>
    %24 = arith.addf %20, %23 : vector<16x1xf32>
    %25 = math.rsqrt %24 : vector<16x1xf32>
    %26 = vector.broadcast %25 : vector<16x1xf32> to vector<16x32xf32>
    %27 = arith.mulf %22, %26 : vector<16x32xf32>
    %28 = vector.broadcast %8 : vector<1x32xf32> to vector<16x32xf32>
    %29 = arith.mulf %27, %28 : vector<16x32xf32>
    %30 = vector.broadcast %9 : vector<1x32xf32> to vector<16x32xf32>
    %31 = arith.addf %29, %30 : vector<16x32xf32>
    %c0_16 = arith.constant 0 : index
    %c0_17 = arith.constant 0 : index
    %32 = vector.load %arg9[%c0_16, %c0_17] : memref<16x32xf32, #tpu.memory_space<vmem>>, vector<16x32xf32>
    tpu.vector_store %arg9[%c0_16, %c0_17], %31 {strides = array<i32>} : memref<16x32xf32, #tpu.memory_space<vmem>>, vector<16x32xf32>,
    %33 = arith.truncf %31 : vector<16x32xf32> to vector<16x32xbf16>
    %c0_18 = arith.constant 0 : index
    %c0_19 = arith.constant 0 : index
    %34 = vector.load %arg7[%c0_18, %c0_19] : memref<32x32xbf16, #tpu.memory_space<vmem>>, vector<32x32xbf16>
    %cst_20 = arith.constant dense<0.000000e+00> : vector<16x32xf32>
    %35 = tpu.matmul %33, %34, %cst_20 {dimension_numbers = #tpu.dot_dimension_numbers<[1], [0], [0], [1], [0, 0, 1, 1], [], []>} : vector<16x32xbf16>, vector<32x32xbf16>, vector<16x32xf32> -> vector<16x32xf32>
    %c0_21 = arith.constant 0 : index
    %c0_22 = arith.constant 0 : index
    %36 = vector.load %arg8[%c0_21, %c0_22] : memref<1x32xf32, #tpu.memory_space<vmem>>, vector<1x32xf32>
    %37 = vector.broadcast %36 : vector<1x32xf32> to vector<16x32xf32>
    %38 = arith.addf %35, %37 : vector<16x32xf32>
    %39 = arith.truncf %38 : vector<16x32xf32> to vector<16x32xbf16>
    %c0_23 = arith.constant 0 : index
    %c0_24 = arith.constant 0 : index
    %40 = vector.load %arg10[%c0_23, %c0_24] : memref<16x32xbf16, #tpu.memory_space<vmem>>, vector<16x32xbf16>
    tpu.vector_store %arg10[%c0_23, %c0_24], %39 {strides = array<i32>} : memref<16x32xbf16, #tpu.memory_space<vmem>>, vector<16x32xbf16>,
    return
  }
  func.func @transform_0(%arg0: i32) -> (i32, i32) {
    %c0_i32 = arith.constant 0 : i32
    %c0_i32_0 = arith.constant 0 : i32
    return %arg0, %c0_i32 : i32, i32
  }
  func.func @transform_1(%arg0: i32) -> (i32, i32) {
    %c0_i32 = arith.constant 0 : i32
    %c0_i32_0 = arith.constant 0 : i32
    return %arg0, %c0_i32 : i32, i32
  }
  func.func @transform_2(%arg0: i32) -> (i32, i32) {
    %c0_i32 = arith.constant 0 : i32
    %c0_i32_0 = arith.constant 0 : i32
    %c0_i32_1 = arith.constant 0 : i32
    return %c0_i32, %c0_i32_0 : i32, i32
  }
  func.func @transform_3(%arg0: i32) -> (i32, i32) {
    %c0_i32 = arith.constant 0 : i32
    %c0_i32_0 = arith.constant 0 : i32
    %c0_i32_1 = arith.constant 0 : i32
    return %c0_i32, %c0_i32_0 : i32, i32
  }
  func.func @transform_4(%arg0: i32) -> (i32, i32) {
    %c0_i32 = arith.constant 0 : i32
    %c0_i32_0 = arith.constant 0 : i32
    %c0_i32_1 = arith.constant 0 : i32
    return %c0_i32, %c0_i32_0 : i32, i32
  }
  func.func @transform_5(%arg0: i32) -> (i32, i32) {
    %c0_i32 = arith.constant 0 : i32
    %c0_i32_0 = arith.constant 0 : i32
    %c0_i32_1 = arith.constant 0 : i32
    return %c0_i32, %c0_i32_0 : i32, i32
  }
  func.func @transform_6(%arg0: i32) -> (i32, i32) {
    %c0_i32 = arith.constant 0 : i32
    %c0_i32_0 = arith.constant 0 : i32
    %c0_i32_1 = arith.constant 0 : i32
    return %c0_i32, %c0_i32_0 : i32, i32
  }
  func.func @transform_7(%arg0: i32) -> (i32, i32) {
    %c0_i32 = arith.constant 0 : i32
    %c0_i32_0 = arith.constant 0 : i32
    %c0_i32_1 = arith.constant 0 : i32
    return %c0_i32, %c0_i32_0 : i32, i32
  }
  func.func @transform_8(%arg0: i32) -> (i32, i32) {
    %c0_i32 = arith.constant 0 : i32
    %c0_i32_0 = arith.constant 0 : i32
    return %arg0, %c0_i32 : i32, i32
  }
  func.func @transform_9(%arg0: i32) -> (i32, i32) {
    %c0_i32 = arith.constant 0 : i32
    %c0_i32_0 = arith.constant 0 : i32
    return %arg0, %c0_i32 : i32, i32
  }
}

module attributes {stable_mosaic.version = 11 : i64} {
  func.func @_multi_linear_kernel(%arg0: i32, %arg1: memref<16x32xf32, #tpu.memory_space<vmem>>, %arg2: memref<32x32xbf16, #tpu.memory_space<vmem>>, %arg3: memref<32x32xbf16, #tpu.memory_space<vmem>>, %arg4: memref<32x32xbf16, #tpu.memory_space<vmem>>, %arg5: memref<32x32xbf16, #tpu.memory_space<vmem>>, %arg6: memref<1x32xf32, #tpu.memory_space<vmem>>, %arg7: memref<1x32xf32, #tpu.memory_space<vmem>>, %arg8: memref<1x32xf32, #tpu.memory_space<vmem>>, %arg9: memref<1x32xf32, #tpu.memory_space<vmem>>, %arg10: memref<16x32xbf16, #tpu.memory_space<vmem>>, %arg11: memref<16x32xbf16, #tpu.memory_space<vmem>>, %arg12: memref<16x32xbf16, #tpu.memory_space<vmem>>, %arg13: memref<16x32xbf16, #tpu.memory_space<vmem>>) attributes {dimension_semantics = [#tpu.dimension_semantics<parallel>], iteration_bounds = array<i64: 2>, scalar_prefetch = 0 : i64, scratch_operands = 0 : i64, tpu.core_type = #tpu.core_type<tc>, window_params = [{transform_indices = @transform_0, window_bounds = array<i64: 16, 32>}, {pipeline_mode = #tpu.pipeline_mode<synchronous>, transform_indices = @transform_1, window_bounds = array<i64: 32, 32>}, {pipeline_mode = #tpu.pipeline_mode<synchronous>, transform_indices = @transform_2, window_bounds = array<i64: 32, 32>}, {pipeline_mode = #tpu.pipeline_mode<synchronous>, transform_indices = @transform_3, window_bounds = array<i64: 32, 32>}, {pipeline_mode = #tpu.pipeline_mode<synchronous>, transform_indices = @transform_4, window_bounds = array<i64: 32, 32>}, {pipeline_mode = #tpu.pipeline_mode<synchronous>, transform_indices = @transform_5, window_bounds = array<i64: 1, 32>}, {pipeline_mode = #tpu.pipeline_mode<synchronous>, transform_indices = @transform_6, window_bounds = array<i64: 1, 32>}, {pipeline_mode = #tpu.pipeline_mode<synchronous>, transform_indices = @transform_7, window_bounds = array<i64: 1, 32>}, {pipeline_mode = #tpu.pipeline_mode<synchronous>, transform_indices = @transform_8, window_bounds = array<i64: 1, 32>}, {transform_indices = @transform_9, window_bounds = array<i64: 16, 32>}, {transform_indices = @transform_10, window_bounds = array<i64: 16, 32>}, {transform_indices = @transform_11, window_bounds = array<i64: 16, 32>}, {transform_indices = @transform_12, window_bounds = array<i64: 16, 32>}]} {
    %c0 = arith.constant 0 : index
    %c0_0 = arith.constant 0 : index
    %0 = vector.load %arg1[%c0, %c0_0] : memref<16x32xf32, #tpu.memory_space<vmem>>, vector<16x32xf32>
    %1 = arith.truncf %0 : vector<16x32xf32> to vector<16x32xbf16>
    %c0_1 = arith.constant 0 : index
    %c0_2 = arith.constant 0 : index
    %2 = vector.load %arg2[%c0_1, %c0_2] : memref<32x32xbf16, #tpu.memory_space<vmem>>, vector<32x32xbf16>
    %cst = arith.constant dense<0.000000e+00> : vector<16x32xf32>
    %3 = tpu.matmul %1, %2, %cst {dimension_numbers = #tpu.dot_dimension_numbers<[1], [0], [0], [1], [0, 0, 1, 1], [], []>} : vector<16x32xbf16>, vector<32x32xbf16>, vector<16x32xf32> -> vector<16x32xf32>
    %c0_3 = arith.constant 0 : index
    %c0_4 = arith.constant 0 : index
    %4 = vector.load %arg6[%c0_3, %c0_4] : memref<1x32xf32, #tpu.memory_space<vmem>>, vector<1x32xf32>
    %5 = vector.broadcast %4 : vector<1x32xf32> to vector<16x32xf32>
    %6 = arith.addf %3, %5 : vector<16x32xf32>
    %7 = arith.truncf %6 : vector<16x32xf32> to vector<16x32xbf16>
    %c0_5 = arith.constant 0 : index
    %c0_6 = arith.constant 0 : index
    %8 = vector.load %arg10[%c0_5, %c0_6] : memref<16x32xbf16, #tpu.memory_space<vmem>>, vector<16x32xbf16>
    tpu.vector_store %arg10[%c0_5, %c0_6], %7 {strides = array<i32>} : memref<16x32xbf16, #tpu.memory_space<vmem>>, vector<16x32xbf16>,
    %c0_7 = arith.constant 0 : index
    %c0_8 = arith.constant 0 : index
    %9 = vector.load %arg3[%c0_7, %c0_8] : memref<32x32xbf16, #tpu.memory_space<vmem>>, vector<32x32xbf16>
    %cst_9 = arith.constant dense<0.000000e+00> : vector<16x32xf32>
    %10 = tpu.matmul %1, %9, %cst_9 {dimension_numbers = #tpu.dot_dimension_numbers<[1], [0], [0], [1], [0, 0, 1, 1], [], []>} : vector<16x32xbf16>, vector<32x32xbf16>, vector<16x32xf32> -> vector<16x32xf32>
    %c0_10 = arith.constant 0 : index
    %c0_11 = arith.constant 0 : index
    %11 = vector.load %arg7[%c0_10, %c0_11] : memref<1x32xf32, #tpu.memory_space<vmem>>, vector<1x32xf32>
    %12 = vector.broadcast %11 : vector<1x32xf32> to vector<16x32xf32>
    %13 = arith.addf %10, %12 : vector<16x32xf32>
    %14 = arith.truncf %13 : vector<16x32xf32> to vector<16x32xbf16>
    %c0_12 = arith.constant 0 : index
    %c0_13 = arith.constant 0 : index
    %15 = vector.load %arg11[%c0_12, %c0_13] : memref<16x32xbf16, #tpu.memory_space<vmem>>, vector<16x32xbf16>
    tpu.vector_store %arg11[%c0_12, %c0_13], %14 {strides = array<i32>} : memref<16x32xbf16, #tpu.memory_space<vmem>>, vector<16x32xbf16>,
    %c0_14 = arith.constant 0 : index
    %c0_15 = arith.constant 0 : index
    %16 = vector.load %arg4[%c0_14, %c0_15] : memref<32x32xbf16, #tpu.memory_space<vmem>>, vector<32x32xbf16>
    %cst_16 = arith.constant dense<0.000000e+00> : vector<16x32xf32>
    %17 = tpu.matmul %1, %16, %cst_16 {dimension_numbers = #tpu.dot_dimension_numbers<[1], [0], [0], [1], [0, 0, 1, 1], [], []>} : vector<16x32xbf16>, vector<32x32xbf16>, vector<16x32xf32> -> vector<16x32xf32>
    %c0_17 = arith.constant 0 : index
    %c0_18 = arith.constant 0 : index
    %18 = vector.load %arg8[%c0_17, %c0_18] : memref<1x32xf32, #tpu.memory_space<vmem>>, vector<1x32xf32>
    %19 = vector.broadcast %18 : vector<1x32xf32> to vector<16x32xf32>
    %20 = arith.addf %17, %19 : vector<16x32xf32>
    %21 = arith.truncf %20 : vector<16x32xf32> to vector<16x32xbf16>
    %c0_19 = arith.constant 0 : index
    %c0_20 = arith.constant 0 : index
    %22 = vector.load %arg12[%c0_19, %c0_20] : memref<16x32xbf16, #tpu.memory_space<vmem>>, vector<16x32xbf16>
    tpu.vector_store %arg12[%c0_19, %c0_20], %21 {strides = array<i32>} : memref<16x32xbf16, #tpu.memory_space<vmem>>, vector<16x32xbf16>,
    %c0_21 = arith.constant 0 : index
    %c0_22 = arith.constant 0 : index
    %23 = vector.load %arg5[%c0_21, %c0_22] : memref<32x32xbf16, #tpu.memory_space<vmem>>, vector<32x32xbf16>
    %cst_23 = arith.constant dense<0.000000e+00> : vector<16x32xf32>
    %24 = tpu.matmul %1, %23, %cst_23 {dimension_numbers = #tpu.dot_dimension_numbers<[1], [0], [0], [1], [0, 0, 1, 1], [], []>} : vector<16x32xbf16>, vector<32x32xbf16>, vector<16x32xf32> -> vector<16x32xf32>
    %c0_24 = arith.constant 0 : index
    %c0_25 = arith.constant 0 : index
    %25 = vector.load %arg9[%c0_24, %c0_25] : memref<1x32xf32, #tpu.memory_space<vmem>>, vector<1x32xf32>
    %26 = vector.broadcast %25 : vector<1x32xf32> to vector<16x32xf32>
    %27 = arith.addf %24, %26 : vector<16x32xf32>
    %28 = arith.truncf %27 : vector<16x32xf32> to vector<16x32xbf16>
    %c0_26 = arith.constant 0 : index
    %c0_27 = arith.constant 0 : index
    %29 = vector.load %arg13[%c0_26, %c0_27] : memref<16x32xbf16, #tpu.memory_space<vmem>>, vector<16x32xbf16>
    tpu.vector_store %arg13[%c0_26, %c0_27], %28 {strides = array<i32>} : memref<16x32xbf16, #tpu.memory_space<vmem>>, vector<16x32xbf16>,
    return
  }
  func.func @transform_0(%arg0: i32) -> (i32, i32) {
    %c0_i32 = arith.constant 0 : i32
    %c0_i32_0 = arith.constant 0 : i32
    return %arg0, %c0_i32 : i32, i32
  }
  func.func @transform_1(%arg0: i32) -> (i32, i32) {
    %c0_i32 = arith.constant 0 : i32
    %c0_i32_0 = arith.constant 0 : i32
    %c0_i32_1 = arith.constant 0 : i32
    return %c0_i32, %c0_i32_0 : i32, i32
  }
  func.func @transform_2(%arg0: i32) -> (i32, i32) {
    %c0_i32 = arith.constant 0 : i32
    %c0_i32_0 = arith.constant 0 : i32
    %c0_i32_1 = arith.constant 0 : i32
    return %c0_i32, %c0_i32_0 : i32, i32
  }
  func.func @transform_3(%arg0: i32) -> (i32, i32) {
    %c0_i32 = arith.constant 0 : i32
    %c0_i32_0 = arith.constant 0 : i32
    %c0_i32_1 = arith.constant 0 : i32
    return %c0_i32, %c0_i32_0 : i32, i32
  }
  func.func @transform_4(%arg0: i32) -> (i32, i32) {
    %c0_i32 = arith.constant 0 : i32
    %c0_i32_0 = arith.constant 0 : i32
    %c0_i32_1 = arith.constant 0 : i32
    return %c0_i32, %c0_i32_0 : i32, i32
  }
  func.func @transform_5(%arg0: i32) -> (i32, i32) {
    %c0_i32 = arith.constant 0 : i32
    %c0_i32_0 = arith.constant 0 : i32
    %c0_i32_1 = arith.constant 0 : i32
    return %c0_i32, %c0_i32_0 : i32, i32
  }
  func.func @transform_6(%arg0: i32) -> (i32, i32) {
    %c0_i32 = arith.constant 0 : i32
    %c0_i32_0 = arith.constant 0 : i32
    %c0_i32_1 = arith.constant 0 : i32
    return %c0_i32, %c0_i32_0 : i32, i32
  }
  func.func @transform_7(%arg0: i32) -> (i32, i32) {
    %c0_i32 = arith.constant 0 : i32
    %c0_i32_0 = arith.constant 0 : i32
    %c0_i32_1 = arith.constant 0 : i32
    return %c0_i32, %c0_i32_0 : i32, i32
  }
  func.func @transform_8(%arg0: i32) -> (i32, i32) {
    %c0_i32 = arith.constant 0 : i32
    %c0_i32_0 = arith.constant 0 : i32
    %c0_i32_1 = arith.constant 0 : i32
    return %c0_i32, %c0_i32_0 : i32, i32
  }
  func.func @transform_9(%arg0: i32) -> (i32, i32) {
    %c0_i32 = arith.constant 0 : i32
    %c0_i32_0 = arith.constant 0 : i32
    return %arg0, %c0_i32 : i32, i32
  }
  func.func @transform_10(%arg0: i32) -> (i32, i32) {
    %c0_i32 = arith.constant 0 : i32
    %c0_i32_0 = arith.constant 0 : i32
    return %arg0, %c0_i32 : i32, i32
  }
  func.func @transform_11(%arg0: i32) -> (i32, i32) {
    %c0_i32 = arith.constant 0 : i32
    %c0_i32_0 = arith.constant 0 : i32
    return %arg0, %c0_i32 : i32, i32
  }
  func.func @transform_12(%arg0: i32) -> (i32, i32) {
    %c0_i32 = arith.constant 0 : i32
    %c0_i32_0 = arith.constant 0 : i32
    return %arg0, %c0_i32 : i32, i32
  }
}

module attributes {stable_mosaic.version = 11 : i64} {
  func.func @_attn_kernel(%arg0: i32, %arg1: i32, %arg2: i32, %arg3: memref<1x16x8xbf16, #tpu.memory_space<vmem>>, %arg4: memref<1x16x8xbf16, #tpu.memory_space<vmem>>, %arg5: memref<1x16x8xbf16, #tpu.memory_space<vmem>>, %arg6: memref<1x16x8xbf16, #tpu.memory_space<vmem>>, %arg7: memref<16x1xf32, #tpu.memory_space<vmem>>, %arg8: memref<16x1xf32, #tpu.memory_space<vmem>>, %arg9: memref<16x8xf32, #tpu.memory_space<vmem>>) attributes {dimension_semantics = [#tpu.dimension_semantics<parallel>, #tpu.dimension_semantics<parallel>, #tpu.dimension_semantics<arbitrary>], iteration_bounds = array<i64: 2, 4, 1>, scalar_prefetch = 0 : i64, scratch_operands = 3 : i64, tpu.core_type = #tpu.core_type<tc>, window_params = [{transform_indices = @transform_0, window_bounds = array<i64: 1, 16, 8>}, {transform_indices = @transform_1, window_bounds = array<i64: 1, 16, 8>}, {transform_indices = @transform_2, window_bounds = array<i64: 1, 16, 8>}, {transform_indices = @transform_3, window_bounds = array<i64: 1, 16, 8>}]} {
    %c0_i32 = arith.constant 0 : i32
    %0 = arith.cmpi eq, %arg2, %c0_i32 : i32
    %1 = arith.extui %0 : i1 to i32
    %c0_i32_0 = arith.constant 0 : i32
    %2 = arith.cmpi ne, %1, %c0_i32_0 : i32
    scf.if %2 {
      %cst_26 = arith.constant -1.000000e+30 : f32
      %36 = vector.broadcast %cst_26 : f32 to vector<16x1xf32>
      %c0_27 = arith.constant 0 : index
      %c0_28 = arith.constant 0 : index
      %37 = vector.load %arg7[%c0_27, %c0_28] : memref<16x1xf32, #tpu.memory_space<vmem>>, vector<16x1xf32>
      tpu.vector_store %arg7[%c0_27, %c0_28], %36 {strides = array<i32>} : memref<16x1xf32, #tpu.memory_space<vmem>>, vector<16x1xf32>,
      %cst_29 = arith.constant 0.000000e+00 : f32
      %38 = vector.broadcast %cst_29 : f32 to vector<16x1xf32>
      %c0_30 = arith.constant 0 : index
      %c0_31 = arith.constant 0 : index
      %39 = vector.load %arg8[%c0_30, %c0_31] : memref<16x1xf32, #tpu.memory_space<vmem>>, vector<16x1xf32>
      tpu.vector_store %arg8[%c0_30, %c0_31], %38 {strides = array<i32>} : memref<16x1xf32, #tpu.memory_space<vmem>>, vector<16x1xf32>,
      %cst_32 = arith.constant 0.000000e+00 : f32
      %40 = vector.broadcast %cst_32 : f32 to vector<16x8xf32>
      %c0_33 = arith.constant 0 : index
      %c0_34 = arith.constant 0 : index
      %41 = vector.load %arg9[%c0_33, %c0_34] : memref<16x8xf32, #tpu.memory_space<vmem>>, vector<16x8xf32>
      tpu.vector_store %arg9[%c0_33, %c0_34], %40 {strides = array<i32>} : memref<16x8xf32, #tpu.memory_space<vmem>>, vector<16x8xf32>,
    } else {
    }
    %c0 = arith.constant 0 : index
    %c0_1 = arith.constant 0 : index
    %c0_2 = arith.constant 0 : index
    %3 = vector.load %arg3[%c0, %c0_1, %c0_2] : memref<1x16x8xbf16, #tpu.memory_space<vmem>>, vector<1x16x8xbf16>
    %4 = vector.shape_cast %3 : vector<1x16x8xbf16> to vector<16x8xbf16>
    %c0_3 = arith.constant 0 : index
    %c0_4 = arith.constant 0 : index
    %c0_5 = arith.constant 0 : index
    %5 = vector.load %arg4[%c0_3, %c0_4, %c0_5] : memref<1x16x8xbf16, #tpu.memory_space<vmem>>, vector<1x16x8xbf16>
    %6 = vector.shape_cast %5 : vector<1x16x8xbf16> to vector<16x8xbf16>
    %c0_6 = arith.constant 0 : index
    %c0_7 = arith.constant 0 : index
    %c0_8 = arith.constant 0 : index
    %7 = vector.load %arg5[%c0_6, %c0_7, %c0_8] : memref<1x16x8xbf16, #tpu.memory_space<vmem>>, vector<1x16x8xbf16>
    %8 = vector.shape_cast %7 : vector<1x16x8xbf16> to vector<16x8xbf16>
    %cst = arith.constant dense<0.000000e+00> : vector<16x16xf32>
    %9 = tpu.matmul %4, %6, %cst {dimension_numbers = #tpu.dot_dimension_numbers<[1], [1], [0], [0], [0, 0, 1, 0], [], []>} : vector<16x8xbf16>, vector<16x8xbf16>, vector<16x16xf32> -> vector<16x16xf32>
    %c0_9 = arith.constant 0 : index
    %c0_10 = arith.constant 0 : index
    %10 = vector.load %arg7[%c0_9, %c0_10] : memref<16x1xf32, #tpu.memory_space<vmem>>, vector<16x1xf32>
    %cst_11 = arith.constant dense<0xFF800000> : vector<16xf32>
    %11 = vector.multi_reduction <maximumf>, %9, %cst_11 [1] : vector<16x16xf32> to vector<16xf32>
    %12 = vector.shape_cast %11 : vector<16xf32> to vector<16x1xf32>
    %13 = arith.maximumf %10, %12 : vector<16x1xf32>
    %14 = arith.subf %10, %13 : vector<16x1xf32>
    %15 = math.exp %14 : vector<16x1xf32>
    %16 = vector.broadcast %13 : vector<16x1xf32> to vector<16x16xf32>
    %17 = arith.subf %9, %16 : vector<16x16xf32>
    %18 = math.exp %17 : vector<16x16xf32>
    %c0_12 = arith.constant 0 : index
    %c0_13 = arith.constant 0 : index
    %19 = vector.load %arg8[%c0_12, %c0_13] : memref<16x1xf32, #tpu.memory_space<vmem>>, vector<16x1xf32>
    %20 = arith.mulf %15, %19 : vector<16x1xf32>
    %cst_14 = arith.constant dense<0.000000e+00> : vector<16xf32>
    %21 = vector.multi_reduction <add>, %18, %cst_14 [1] : vector<16x16xf32> to vector<16xf32>
    %22 = vector.shape_cast %21 : vector<16xf32> to vector<16x1xf32>
    %23 = arith.addf %20, %22 : vector<16x1xf32>
    %c0_15 = arith.constant 0 : index
    %c0_16 = arith.constant 0 : index
    %24 = vector.load %arg8[%c0_15, %c0_16] : memref<16x1xf32, #tpu.memory_space<vmem>>, vector<16x1xf32>
    tpu.vector_store %arg8[%c0_15, %c0_16], %23 {strides = array<i32>} : memref<16x1xf32, #tpu.memory_space<vmem>>, vector<16x1xf32>,
    %c0_17 = arith.constant 0 : index
    %c0_18 = arith.constant 0 : index
    %25 = vector.load %arg9[%c0_17, %c0_18] : memref<16x8xf32, #tpu.memory_space<vmem>>, vector<16x8xf32>
    %26 = vector.broadcast %15 : vector<16x1xf32> to vector<16x8xf32>
    %27 = arith.mulf %26, %25 : vector<16x8xf32>
    %28 = arith.truncf %18 : vector<16x16xf32> to vector<16x16xbf16>
    %cst_19 = arith.constant dense<0.000000e+00> : vector<16x8xf32>
    %29 = tpu.matmul %28, %8, %cst_19 {dimension_numbers = #tpu.dot_dimension_numbers<[1], [0], [0], [1], [0, 0, 1, 1], [], []>} : vector<16x16xbf16>, vector<16x8xbf16>, vector<16x8xf32> -> vector<16x8xf32>
    %30 = arith.addf %27, %29 : vector<16x8xf32>
    %c0_20 = arith.constant 0 : index
    %c0_21 = arith.constant 0 : index
    %31 = vector.load %arg9[%c0_20, %c0_21] : memref<16x8xf32, #tpu.memory_space<vmem>>, vector<16x8xf32>
    tpu.vector_store %arg9[%c0_20, %c0_21], %30 {strides = array<i32>} : memref<16x8xf32, #tpu.memory_space<vmem>>, vector<16x8xf32>,
    %c0_22 = arith.constant 0 : index
    %c0_23 = arith.constant 0 : index
    %32 = vector.load %arg7[%c0_22, %c0_23] : memref<16x1xf32, #tpu.memory_space<vmem>>, vector<16x1xf32>
    tpu.vector_store %arg7[%c0_22, %c0_23], %13 {strides = array<i32>} : memref<16x1xf32, #tpu.memory_space<vmem>>, vector<16x1xf32>,
    %c0_i32_24 = arith.constant 0 : i32
    %33 = arith.cmpi eq, %arg2, %c0_i32_24 : i32
    %34 = arith.extui %33 : i1 to i32
    %c0_i32_25 = arith.constant 0 : i32
    %35 = arith.cmpi ne, %34, %c0_i32_25 : i32
    scf.if %35 {
      %c0_26 = arith.constant 0 : index
      %c0_27 = arith.constant 0 : index
      %36 = vector.load %arg9[%c0_26, %c0_27] : memref<16x8xf32, #tpu.memory_space<vmem>>, vector<16x8xf32>
      %c0_28 = arith.constant 0 : index
      %c0_29 = arith.constant 0 : index
      %37 = vector.load %arg8[%c0_28, %c0_29] : memref<16x1xf32, #tpu.memory_space<vmem>>, vector<16x1xf32>
      %38 = tpu.reciprocal %37 {approx = true} : vector<16x1xf32> -> vector<16x1xf32>
      %39 = vector.broadcast %38 : vector<16x1xf32> to vector<16x8xf32>
      %40 = arith.mulf %36, %39 : vector<16x8xf32>
      %41 = arith.truncf %40 : vector<16x8xf32> to vector<16x8xbf16>
      %c0_30 = arith.constant 0 : index
      %c0_31 = arith.constant 0 : index
      %c0_32 = arith.constant 0 : index
      %42 = vector.load %arg6[%c0_30, %c0_31, %c0_32] : memref<1x16x8xbf16, #tpu.memory_space<vmem>>, vector<1x16x8xbf16>
      %43 = vector.shape_cast %42 : vector<1x16x8xbf16> to vector<16x8xbf16>
      %44 = vector.shape_cast %41 : vector<16x8xbf16> to vector<1x16x8xbf16>
      tpu.vector_store %arg6[%c0_30, %c0_31, %c0_32], %44 {strides = array<i32>} : memref<1x16x8xbf16, #tpu.memory_space<vmem>>, vector<1x16x8xbf16>,
    } else {
    }
    return
  }
  func.func @transform_0(%arg0: i32, %arg1: i32, %arg2: i32) -> (i32, i32, i32) {
    %c0_i32 = arith.constant 0 : i32
    %c0_i32_0 = arith.constant 0 : i32
    return %arg0, %arg1, %c0_i32 : i32, i32, i32
  }
  func.func @transform_1(%arg0: i32, %arg1: i32, %arg2: i32) -> (i32, i32, i32) {
    %c1_i32 = arith.constant 1 : i32
    %0 = arith.muli %arg1, %c1_i32 : i32
    %1 = arith.addi %0, %arg2 : i32
    %c0_i32 = arith.constant 0 : i32
    %c0_i32_0 = arith.constant 0 : i32
    return %arg0, %1, %c0_i32 : i32, i32, i32
  }
  func.func @transform_2(%arg0: i32, %arg1: i32, %arg2: i32) -> (i32, i32, i32) {
    %c1_i32 = arith.constant 1 : i32
    %0 = arith.muli %arg1, %c1_i32 : i32
    %1 = arith.addi %0, %arg2 : i32
    %c0_i32 = arith.constant 0 : i32
    %c0_i32_0 = arith.constant 0 : i32
    return %arg0, %1, %c0_i32 : i32, i32, i32
  }
  func.func @transform_3(%arg0: i32, %arg1: i32, %arg2: i32) -> (i32, i32, i32) {
    %c0_i32 = arith.constant 0 : i32
    %c0_i32_0 = arith.constant 0 : i32
    return %arg0, %arg1, %c0_i32 : i32, i32, i32
  }
}

module attributes {stable_mosaic.version = 11 : i64} {
  func.func @_multi_linear_kernel(%arg0: i32, %arg1: memref<16x32xf32, #tpu.memory_space<vmem>>, %arg2: memref<32x32xbf16, #tpu.memory_space<vmem>>, %arg3: memref<32x32xbf16, #tpu.memory_space<vmem>>, %arg4: memref<32x32xbf16, #tpu.memory_space<vmem>>, %arg5: memref<1x32xf32, #tpu.memory_space<vmem>>, %arg6: memref<1x32xf32, #tpu.memory_space<vmem>>, %arg7: memref<1x32xf32, #tpu.memory_space<vmem>>, %arg8: memref<16x32xbf16, #tpu.memory_space<vmem>>, %arg9: memref<16x32xbf16, #tpu.memory_space<vmem>>, %arg10: memref<16x32xbf16, #tpu.memory_space<vmem>>) attributes {dimension_semantics = [#tpu.dimension_semantics<parallel>], iteration_bounds = array<i64: 2>, scalar_prefetch = 0 : i64, scratch_operands = 0 : i64, tpu.core_type = #tpu.core_type<tc>, window_params = [{transform_indices = @transform_0, window_bounds = array<i64: 16, 32>}, {pipeline_mode = #tpu.pipeline_mode<synchronous>, transform_indices = @transform_1, window_bounds = array<i64: 32, 32>}, {pipeline_mode = #tpu.pipeline_mode<synchronous>, transform_indices = @transform_2, window_bounds = array<i64: 32, 32>}, {pipeline_mode = #tpu.pipeline_mode<synchronous>, transform_indices = @transform_3, window_bounds = array<i64: 32, 32>}, {pipeline_mode = #tpu.pipeline_mode<synchronous>, transform_indices = @transform_4, window_bounds = array<i64: 1, 32>}, {pipeline_mode = #tpu.pipeline_mode<synchronous>, transform_indices = @transform_5, window_bounds = array<i64: 1, 32>}, {pipeline_mode = #tpu.pipeline_mode<synchronous>, transform_indices = @transform_6, window_bounds = array<i64: 1, 32>}, {transform_indices = @transform_7, window_bounds = array<i64: 16, 32>}, {transform_indices = @transform_8, window_bounds = array<i64: 16, 32>}, {transform_indices = @transform_9, window_bounds = array<i64: 16, 32>}]} {
    %c0 = arith.constant 0 : index
    %c0_0 = arith.constant 0 : index
    %0 = vector.load %arg1[%c0, %c0_0] : memref<16x32xf32, #tpu.memory_space<vmem>>, vector<16x32xf32>
    %1 = arith.truncf %0 : vector<16x32xf32> to vector<16x32xbf16>
    %c0_1 = arith.constant 0 : index
    %c0_2 = arith.constant 0 : index
    %2 = vector.load %arg2[%c0_1, %c0_2] : memref<32x32xbf16, #tpu.memory_space<vmem>>, vector<32x32xbf16>
    %cst = arith.constant dense<0.000000e+00> : vector<16x32xf32>
    %3 = tpu.matmul %1, %2, %cst {dimension_numbers = #tpu.dot_dimension_numbers<[1], [0], [0], [1], [0, 0, 1, 1], [], []>} : vector<16x32xbf16>, vector<32x32xbf16>, vector<16x32xf32> -> vector<16x32xf32>
    %c0_3 = arith.constant 0 : index
    %c0_4 = arith.constant 0 : index
    %4 = vector.load %arg5[%c0_3, %c0_4] : memref<1x32xf32, #tpu.memory_space<vmem>>, vector<1x32xf32>
    %5 = vector.broadcast %4 : vector<1x32xf32> to vector<16x32xf32>
    %6 = arith.addf %3, %5 : vector<16x32xf32>
    %7 = arith.truncf %6 : vector<16x32xf32> to vector<16x32xbf16>
    %c0_5 = arith.constant 0 : index
    %c0_6 = arith.constant 0 : index
    %8 = vector.load %arg8[%c0_5, %c0_6] : memref<16x32xbf16, #tpu.memory_space<vmem>>, vector<16x32xbf16>
    tpu.vector_store %arg8[%c0_5, %c0_6], %7 {strides = array<i32>} : memref<16x32xbf16, #tpu.memory_space<vmem>>, vector<16x32xbf16>,
    %c0_7 = arith.constant 0 : index
    %c0_8 = arith.constant 0 : index
    %9 = vector.load %arg3[%c0_7, %c0_8] : memref<32x32xbf16, #tpu.memory_space<vmem>>, vector<32x32xbf16>
    %cst_9 = arith.constant dense<0.000000e+00> : vector<16x32xf32>
    %10 = tpu.matmul %1, %9, %cst_9 {dimension_numbers = #tpu.dot_dimension_numbers<[1], [0], [0], [1], [0, 0, 1, 1], [], []>} : vector<16x32xbf16>, vector<32x32xbf16>, vector<16x32xf32> -> vector<16x32xf32>
    %c0_10 = arith.constant 0 : index
    %c0_11 = arith.constant 0 : index
    %11 = vector.load %arg6[%c0_10, %c0_11] : memref<1x32xf32, #tpu.memory_space<vmem>>, vector<1x32xf32>
    %12 = vector.broadcast %11 : vector<1x32xf32> to vector<16x32xf32>
    %13 = arith.addf %10, %12 : vector<16x32xf32>
    %14 = arith.truncf %13 : vector<16x32xf32> to vector<16x32xbf16>
    %c0_12 = arith.constant 0 : index
    %c0_13 = arith.constant 0 : index
    %15 = vector.load %arg9[%c0_12, %c0_13] : memref<16x32xbf16, #tpu.memory_space<vmem>>, vector<16x32xbf16>
    tpu.vector_store %arg9[%c0_12, %c0_13], %14 {strides = array<i32>} : memref<16x32xbf16, #tpu.memory_space<vmem>>, vector<16x32xbf16>,
    %c0_14 = arith.constant 0 : index
    %c0_15 = arith.constant 0 : index
    %16 = vector.load %arg4[%c0_14, %c0_15] : memref<32x32xbf16, #tpu.memory_space<vmem>>, vector<32x32xbf16>
    %cst_16 = arith.constant dense<0.000000e+00> : vector<16x32xf32>
    %17 = tpu.matmul %1, %16, %cst_16 {dimension_numbers = #tpu.dot_dimension_numbers<[1], [0], [0], [1], [0, 0, 1, 1], [], []>} : vector<16x32xbf16>, vector<32x32xbf16>, vector<16x32xf32> -> vector<16x32xf32>
    %c0_17 = arith.constant 0 : index
    %c0_18 = arith.constant 0 : index
    %18 = vector.load %arg7[%c0_17, %c0_18] : memref<1x32xf32, #tpu.memory_space<vmem>>, vector<1x32xf32>
    %19 = vector.broadcast %18 : vector<1x32xf32> to vector<16x32xf32>
    %20 = arith.addf %17, %19 : vector<16x32xf32>
    %21 = arith.truncf %20 : vector<16x32xf32> to vector<16x32xbf16>
    %c0_19 = arith.constant 0 : index
    %c0_20 = arith.constant 0 : index
    %22 = vector.load %arg10[%c0_19, %c0_20] : memref<16x32xbf16, #tpu.memory_space<vmem>>, vector<16x32xbf16>
    tpu.vector_store %arg10[%c0_19, %c0_20], %21 {strides = array<i32>} : memref<16x32xbf16, #tpu.memory_space<vmem>>, vector<16x32xbf16>,
    return
  }
  func.func @transform_0(%arg0: i32) -> (i32, i32) {
    %c0_i32 = arith.constant 0 : i32
    %c0_i32_0 = arith.constant 0 : i32
    return %arg0, %c0_i32 : i32, i32
  }
  func.func @transform_1(%arg0: i32) -> (i32, i32) {
    %c0_i32 = arith.constant 0 : i32
    %c0_i32_0 = arith.constant 0 : i32
    %c0_i32_1 = arith.constant 0 : i32
    return %c0_i32, %c0_i32_0 : i32, i32
  }
  func.func @transform_2(%arg0: i32) -> (i32, i32) {
    %c0_i32 = arith.constant 0 : i32
    %c0_i32_0 = arith.constant 0 : i32
    %c0_i32_1 = arith.constant 0 : i32
    return %c0_i32, %c0_i32_0 : i32, i32
  }
  func.func @transform_3(%arg0: i32) -> (i32, i32) {
    %c0_i32 = arith.constant 0 : i32
    %c0_i32_0 = arith.constant 0 : i32
    %c0_i32_1 = arith.constant 0 : i32
    return %c0_i32, %c0_i32_0 : i32, i32
  }
  func.func @transform_4(%arg0: i32) -> (i32, i32) {
    %c0_i32 = arith.constant 0 : i32
    %c0_i32_0 = arith.constant 0 : i32
    %c0_i32_1 = arith.constant 0 : i32
    return %c0_i32, %c0_i32_0 : i32, i32
  }
  func.func @transform_5(%arg0: i32) -> (i32, i32) {
    %c0_i32 = arith.constant 0 : i32
    %c0_i32_0 = arith.constant 0 : i32
    %c0_i32_1 = arith.constant 0 : i32
    return %c0_i32, %c0_i32_0 : i32, i32
  }
  func.func @transform_6(%arg0: i32) -> (i32, i32) {
    %c0_i32 = arith.constant 0 : i32
    %c0_i32_0 = arith.constant 0 : i32
    %c0_i32_1 = arith.constant 0 : i32
    return %c0_i32, %c0_i32_0 : i32, i32
  }
  func.func @transform_7(%arg0: i32) -> (i32, i32) {
    %c0_i32 = arith.constant 0 : i32
    %c0_i32_0 = arith.constant 0 : i32
    return %arg0, %c0_i32 : i32, i32
  }
  func.func @transform_8(%arg0: i32) -> (i32, i32) {
    %c0_i32 = arith.constant 0 : i32
    %c0_i32_0 = arith.constant 0 : i32
    return %arg0, %c0_i32 : i32, i32
  }
  func.func @transform_9(%arg0: i32) -> (i32, i32) {
    %c0_i32 = arith.constant 0 : i32
    %c0_i32_0 = arith.constant 0 : i32
    return %arg0, %c0_i32 : i32, i32
  }
}

module attributes {stable_mosaic.version = 11 : i64} {
  func.func @_proj_addln_ffn_addln_kernel(%arg0: i32, %arg1: memref<16x32xbf16, #tpu.memory_space<vmem>>, %arg2: memref<16x32xf32, #tpu.memory_space<vmem>>, %arg3: memref<32x32xbf16, #tpu.memory_space<vmem>>, %arg4: memref<1x32xf32, #tpu.memory_space<vmem>>, %arg5: memref<1x32xf32, #tpu.memory_space<vmem>>, %arg6: memref<1x32xf32, #tpu.memory_space<vmem>>, %arg7: memref<32x64xbf16, #tpu.memory_space<vmem>>, %arg8: memref<1x64xf32, #tpu.memory_space<vmem>>, %arg9: memref<64x32xbf16, #tpu.memory_space<vmem>>, %arg10: memref<1x32xf32, #tpu.memory_space<vmem>>, %arg11: memref<1x32xf32, #tpu.memory_space<vmem>>, %arg12: memref<1x32xf32, #tpu.memory_space<vmem>>, %arg13: memref<16x32xf32, #tpu.memory_space<vmem>>) attributes {dimension_semantics = [#tpu.dimension_semantics<parallel>], iteration_bounds = array<i64: 2>, scalar_prefetch = 0 : i64, scratch_operands = 0 : i64, tpu.core_type = #tpu.core_type<tc>, window_params = [{transform_indices = @transform_0, window_bounds = array<i64: 16, 32>}, {transform_indices = @transform_1, window_bounds = array<i64: 16, 32>}, {pipeline_mode = #tpu.pipeline_mode<synchronous>, transform_indices = @transform_2, window_bounds = array<i64: 32, 32>}, {pipeline_mode = #tpu.pipeline_mode<synchronous>, transform_indices = @transform_3, window_bounds = array<i64: 1, 32>}, {pipeline_mode = #tpu.pipeline_mode<synchronous>, transform_indices = @transform_4, window_bounds = array<i64: 1, 32>}, {pipeline_mode = #tpu.pipeline_mode<synchronous>, transform_indices = @transform_5, window_bounds = array<i64: 1, 32>}, {pipeline_mode = #tpu.pipeline_mode<synchronous>, transform_indices = @transform_6, window_bounds = array<i64: 32, 64>}, {pipeline_mode = #tpu.pipeline_mode<synchronous>, transform_indices = @transform_7, window_bounds = array<i64: 1, 64>}, {pipeline_mode = #tpu.pipeline_mode<synchronous>, transform_indices = @transform_8, window_bounds = array<i64: 64, 32>}, {pipeline_mode = #tpu.pipeline_mode<synchronous>, transform_indices = @transform_9, window_bounds = array<i64: 1, 32>}, {pipeline_mode = #tpu.pipeline_mode<synchronous>, transform_indices = @transform_10, window_bounds = array<i64: 1, 32>}, {pipeline_mode = #tpu.pipeline_mode<synchronous>, transform_indices = @transform_11, window_bounds = array<i64: 1, 32>}, {transform_indices = @transform_12, window_bounds = array<i64: 16, 32>}]} {
    %c0 = arith.constant 0 : index
    %c0_0 = arith.constant 0 : index
    %0 = vector.load %arg1[%c0, %c0_0] : memref<16x32xbf16, #tpu.memory_space<vmem>>, vector<16x32xbf16>
    %c0_1 = arith.constant 0 : index
    %c0_2 = arith.constant 0 : index
    %1 = vector.load %arg3[%c0_1, %c0_2] : memref<32x32xbf16, #tpu.memory_space<vmem>>, vector<32x32xbf16>
    %cst = arith.constant dense<0.000000e+00> : vector<16x32xf32>
    %2 = tpu.matmul %0, %1, %cst {dimension_numbers = #tpu.dot_dimension_numbers<[1], [0], [0], [1], [0, 0, 1, 1], [], []>} : vector<16x32xbf16>, vector<32x32xbf16>, vector<16x32xf32> -> vector<16x32xf32>
    %c0_3 = arith.constant 0 : index
    %c0_4 = arith.constant 0 : index
    %3 = vector.load %arg4[%c0_3, %c0_4] : memref<1x32xf32, #tpu.memory_space<vmem>>, vector<1x32xf32>
    %4 = vector.broadcast %3 : vector<1x32xf32> to vector<16x32xf32>
    %5 = arith.addf %2, %4 : vector<16x32xf32>
    %c0_5 = arith.constant 0 : index
    %c0_6 = arith.constant 0 : index
    %6 = vector.load %arg2[%c0_5, %c0_6] : memref<16x32xf32, #tpu.memory_space<vmem>>, vector<16x32xf32>
    %7 = arith.addf %5, %6 : vector<16x32xf32>
    %c0_7 = arith.constant 0 : index
    %c0_8 = arith.constant 0 : index
    %8 = vector.load %arg5[%c0_7, %c0_8] : memref<1x32xf32, #tpu.memory_space<vmem>>, vector<1x32xf32>
    %c0_9 = arith.constant 0 : index
    %c0_10 = arith.constant 0 : index
    %9 = vector.load %arg6[%c0_9, %c0_10] : memref<1x32xf32, #tpu.memory_space<vmem>>, vector<1x32xf32>
    %cst_11 = arith.constant dense<0.000000e+00> : vector<16xf32>
    %10 = vector.multi_reduction <add>, %7, %cst_11 [1] : vector<16x32xf32> to vector<16xf32>
    %11 = vector.shape_cast %10 : vector<16xf32> to vector<16x1xf32>
    %cst_12 = arith.constant 3.200000e+01 : f32
    %12 = vector.broadcast %cst_12 : f32 to vector<16x1xf32>
    %13 = arith.divf %11, %12 : vector<16x1xf32>
    %14 = vector.broadcast %13 : vector<16x1xf32> to vector<16x32xf32>
    %15 = arith.subf %7, %14 : vector<16x32xf32>
    %16 = arith.mulf %15, %15 : vector<16x32xf32>
    %cst_13 = arith.constant dense<0.000000e+00> : vector<16xf32>
    %17 = vector.multi_reduction <add>, %16, %cst_13 [1] : vector<16x32xf32> to vector<16xf32>
    %18 = vector.shape_cast %17 : vector<16xf32> to vector<16x1xf32>
    %cst_14 = arith.constant 3.200000e+01 : f32
    %19 = vector.broadcast %cst_14 : f32 to vector<16x1xf32>
    %20 = arith.divf %18, %19 : vector<16x1xf32>
    %21 = vector.broadcast %13 : vector<16x1xf32> to vector<16x32xf32>
    %22 = arith.subf %7, %21 : vector<16x32xf32>
    %cst_15 = arith.constant 9.99999974E-6 : f32
    %23 = vector.broadcast %cst_15 : f32 to vector<16x1xf32>
    %24 = arith.addf %20, %23 : vector<16x1xf32>
    %25 = math.rsqrt %24 : vector<16x1xf32>
    %26 = vector.broadcast %25 : vector<16x1xf32> to vector<16x32xf32>
    %27 = arith.mulf %22, %26 : vector<16x32xf32>
    %28 = vector.broadcast %8 : vector<1x32xf32> to vector<16x32xf32>
    %29 = arith.mulf %27, %28 : vector<16x32xf32>
    %30 = vector.broadcast %9 : vector<1x32xf32> to vector<16x32xf32>
    %31 = arith.addf %29, %30 : vector<16x32xf32>
    %32 = arith.truncf %31 : vector<16x32xf32> to vector<16x32xbf16>
    %c0_16 = arith.constant 0 : index
    %c0_17 = arith.constant 0 : index
    %33 = vector.load %arg7[%c0_16, %c0_17] : memref<32x64xbf16, #tpu.memory_space<vmem>>, vector<32x64xbf16>
    %cst_18 = arith.constant dense<0.000000e+00> : vector<16x64xf32>
    %34 = tpu.matmul %32, %33, %cst_18 {dimension_numbers = #tpu.dot_dimension_numbers<[1], [0], [0], [1], [0, 0, 1, 1], [], []>} : vector<16x32xbf16>, vector<32x64xbf16>, vector<16x64xf32> -> vector<16x64xf32>
    %c0_19 = arith.constant 0 : index
    %c0_20 = arith.constant 0 : index
    %35 = vector.load %arg8[%c0_19, %c0_20] : memref<1x64xf32, #tpu.memory_space<vmem>>, vector<1x64xf32>
    %36 = vector.broadcast %35 : vector<1x64xf32> to vector<16x64xf32>
    %37 = arith.addf %34, %36 : vector<16x64xf32>
    %cst_21 = arith.constant 0.000000e+00 : f32
    %38 = vector.broadcast %cst_21 : f32 to vector<16x64xf32>
    %39 = arith.maximumf %37, %38 : vector<16x64xf32>
    %40 = arith.truncf %39 : vector<16x64xf32> to vector<16x64xbf16>
    %c0_22 = arith.constant 0 : index
    %c0_23 = arith.constant 0 : index
    %41 = vector.load %arg9[%c0_22, %c0_23] : memref<64x32xbf16, #tpu.memory_space<vmem>>, vector<64x32xbf16>
    %cst_24 = arith.constant dense<0.000000e+00> : vector<16x32xf32>
    %42 = tpu.matmul %40, %41, %cst_24 {dimension_numbers = #tpu.dot_dimension_numbers<[1], [0], [0], [1], [0, 0, 1, 1], [], []>} : vector<16x64xbf16>, vector<64x32xbf16>, vector<16x32xf32> -> vector<16x32xf32>
    %c0_25 = arith.constant 0 : index
    %c0_26 = arith.constant 0 : index
    %43 = vector.load %arg10[%c0_25, %c0_26] : memref<1x32xf32, #tpu.memory_space<vmem>>, vector<1x32xf32>
    %44 = vector.broadcast %43 : vector<1x32xf32> to vector<16x32xf32>
    %45 = arith.addf %42, %44 : vector<16x32xf32>
    %46 = arith.addf %45, %31 : vector<16x32xf32>
    %c0_27 = arith.constant 0 : index
    %c0_28 = arith.constant 0 : index
    %47 = vector.load %arg11[%c0_27, %c0_28] : memref<1x32xf32, #tpu.memory_space<vmem>>, vector<1x32xf32>
    %c0_29 = arith.constant 0 : index
    %c0_30 = arith.constant 0 : index
    %48 = vector.load %arg12[%c0_29, %c0_30] : memref<1x32xf32, #tpu.memory_space<vmem>>, vector<1x32xf32>
    %cst_31 = arith.constant dense<0.000000e+00> : vector<16xf32>
    %49 = vector.multi_reduction <add>, %46, %cst_31 [1] : vector<16x32xf32> to vector<16xf32>
    %50 = vector.shape_cast %49 : vector<16xf32> to vector<16x1xf32>
    %cst_32 = arith.constant 3.200000e+01 : f32
    %51 = vector.broadcast %cst_32 : f32 to vector<16x1xf32>
    %52 = arith.divf %50, %51 : vector<16x1xf32>
    %53 = vector.broadcast %52 : vector<16x1xf32> to vector<16x32xf32>
    %54 = arith.subf %46, %53 : vector<16x32xf32>
    %55 = arith.mulf %54, %54 : vector<16x32xf32>
    %cst_33 = arith.constant dense<0.000000e+00> : vector<16xf32>
    %56 = vector.multi_reduction <add>, %55, %cst_33 [1] : vector<16x32xf32> to vector<16xf32>
    %57 = vector.shape_cast %56 : vector<16xf32> to vector<16x1xf32>
    %cst_34 = arith.constant 3.200000e+01 : f32
    %58 = vector.broadcast %cst_34 : f32 to vector<16x1xf32>
    %59 = arith.divf %57, %58 : vector<16x1xf32>
    %60 = vector.broadcast %52 : vector<16x1xf32> to vector<16x32xf32>
    %61 = arith.subf %46, %60 : vector<16x32xf32>
    %cst_35 = arith.constant 9.99999974E-6 : f32
    %62 = vector.broadcast %cst_35 : f32 to vector<16x1xf32>
    %63 = arith.addf %59, %62 : vector<16x1xf32>
    %64 = math.rsqrt %63 : vector<16x1xf32>
    %65 = vector.broadcast %64 : vector<16x1xf32> to vector<16x32xf32>
    %66 = arith.mulf %61, %65 : vector<16x32xf32>
    %67 = vector.broadcast %47 : vector<1x32xf32> to vector<16x32xf32>
    %68 = arith.mulf %66, %67 : vector<16x32xf32>
    %69 = vector.broadcast %48 : vector<1x32xf32> to vector<16x32xf32>
    %70 = arith.addf %68, %69 : vector<16x32xf32>
    %c0_36 = arith.constant 0 : index
    %c0_37 = arith.constant 0 : index
    %71 = vector.load %arg13[%c0_36, %c0_37] : memref<16x32xf32, #tpu.memory_space<vmem>>, vector<16x32xf32>
    tpu.vector_store %arg13[%c0_36, %c0_37], %70 {strides = array<i32>} : memref<16x32xf32, #tpu.memory_space<vmem>>, vector<16x32xf32>,
    return
  }
  func.func @transform_0(%arg0: i32) -> (i32, i32) {
    %c0_i32 = arith.constant 0 : i32
    %c0_i32_0 = arith.constant 0 : i32
    return %arg0, %c0_i32 : i32, i32
  }
  func.func @transform_1(%arg0: i32) -> (i32, i32) {
    %c0_i32 = arith.constant 0 : i32
    %c0_i32_0 = arith.constant 0 : i32
    return %arg0, %c0_i32 : i32, i32
  }
  func.func @transform_2(%arg0: i32) -> (i32, i32) {
    %c0_i32 = arith.constant 0 : i32
    %c0_i32_0 = arith.constant 0 : i32
    %c0_i32_1 = arith.constant 0 : i32
    return %c0_i32, %c0_i32_0 : i32, i32
  }
  func.func @transform_3(%arg0: i32) -> (i32, i32) {
    %c0_i32 = arith.constant 0 : i32
    %c0_i32_0 = arith.constant 0 : i32
    %c0_i32_1 = arith.constant 0 : i32
    return %c0_i32, %c0_i32_0 : i32, i32
  }
  func.func @transform_4(%arg0: i32) -> (i32, i32) {
    %c0_i32 = arith.constant 0 : i32
    %c0_i32_0 = arith.constant 0 : i32
    %c0_i32_1 = arith.constant 0 : i32
    return %c0_i32, %c0_i32_0 : i32, i32
  }
  func.func @transform_5(%arg0: i32) -> (i32, i32) {
    %c0_i32 = arith.constant 0 : i32
    %c0_i32_0 = arith.constant 0 : i32
    %c0_i32_1 = arith.constant 0 : i32
    return %c0_i32, %c0_i32_0 : i32, i32
  }
  func.func @transform_6(%arg0: i32) -> (i32, i32) {
    %c0_i32 = arith.constant 0 : i32
    %c0_i32_0 = arith.constant 0 : i32
    %c0_i32_1 = arith.constant 0 : i32
    return %c0_i32, %c0_i32_0 : i32, i32
  }
  func.func @transform_7(%arg0: i32) -> (i32, i32) {
    %c0_i32 = arith.constant 0 : i32
    %c0_i32_0 = arith.constant 0 : i32
    %c0_i32_1 = arith.constant 0 : i32
    return %c0_i32, %c0_i32_0 : i32, i32
  }
  func.func @transform_8(%arg0: i32) -> (i32, i32) {
    %c0_i32 = arith.constant 0 : i32
    %c0_i32_0 = arith.constant 0 : i32
    %c0_i32_1 = arith.constant 0 : i32
    return %c0_i32, %c0_i32_0 : i32, i32
  }
  func.func @transform_9(%arg0: i32) -> (i32, i32) {
    %c0_i32 = arith.constant 0 : i32
    %c0_i32_0 = arith.constant 0 : i32
    %c0_i32_1 = arith.constant 0 : i32
    return %c0_i32, %c0_i32_0 : i32, i32
  }
  func.func @transform_10(%arg0: i32) -> (i32, i32) {
    %c0_i32 = arith.constant 0 : i32
    %c0_i32_0 = arith.constant 0 : i32
    %c0_i32_1 = arith.constant 0 : i32
    return %c0_i32, %c0_i32_0 : i32, i32
  }
  func.func @transform_11(%arg0: i32) -> (i32, i32) {
    %c0_i32 = arith.constant 0 : i32
    %c0_i32_0 = arith.constant 0 : i32
    %c0_i32_1 = arith.constant 0 : i32
    return %c0_i32, %c0_i32_0 : i32, i32
  }
  func.func @transform_12(%arg0: i32) -> (i32, i32) {
    %c0_i32 = arith.constant 0 : i32
    %c0_i32_0 = arith.constant 0 : i32
    return %arg0, %c0_i32 : i32, i32
  }
}

module attributes {stable_mosaic.version = 11 : i64} {
  func.func @_proj_addln_ffn_addln_kernel(%arg0: i32, %arg1: memref<16x32xbf16, #tpu.memory_space<vmem>>, %arg2: memref<16x32xf32, #tpu.memory_space<vmem>>, %arg3: memref<32x32xbf16, #tpu.memory_space<vmem>>, %arg4: memref<1x32xf32, #tpu.memory_space<vmem>>, %arg5: memref<1x32xf32, #tpu.memory_space<vmem>>, %arg6: memref<1x32xf32, #tpu.memory_space<vmem>>, %arg7: memref<32x64xbf16, #tpu.memory_space<vmem>>, %arg8: memref<1x64xf32, #tpu.memory_space<vmem>>, %arg9: memref<64x32xbf16, #tpu.memory_space<vmem>>, %arg10: memref<1x32xf32, #tpu.memory_space<vmem>>, %arg11: memref<1x32xf32, #tpu.memory_space<vmem>>, %arg12: memref<1x32xf32, #tpu.memory_space<vmem>>, %arg13: memref<16x32xf32, #tpu.memory_space<vmem>>) attributes {dimension_semantics = [#tpu.dimension_semantics<parallel>], iteration_bounds = array<i64: 2>, scalar_prefetch = 0 : i64, scratch_operands = 0 : i64, tpu.core_type = #tpu.core_type<tc>, window_params = [{transform_indices = @transform_0, window_bounds = array<i64: 16, 32>}, {transform_indices = @transform_1, window_bounds = array<i64: 16, 32>}, {pipeline_mode = #tpu.pipeline_mode<synchronous>, transform_indices = @transform_2, window_bounds = array<i64: 32, 32>}, {pipeline_mode = #tpu.pipeline_mode<synchronous>, transform_indices = @transform_3, window_bounds = array<i64: 1, 32>}, {pipeline_mode = #tpu.pipeline_mode<synchronous>, transform_indices = @transform_4, window_bounds = array<i64: 1, 32>}, {pipeline_mode = #tpu.pipeline_mode<synchronous>, transform_indices = @transform_5, window_bounds = array<i64: 1, 32>}, {pipeline_mode = #tpu.pipeline_mode<synchronous>, transform_indices = @transform_6, window_bounds = array<i64: 32, 64>}, {pipeline_mode = #tpu.pipeline_mode<synchronous>, transform_indices = @transform_7, window_bounds = array<i64: 1, 64>}, {pipeline_mode = #tpu.pipeline_mode<synchronous>, transform_indices = @transform_8, window_bounds = array<i64: 64, 32>}, {pipeline_mode = #tpu.pipeline_mode<synchronous>, transform_indices = @transform_9, window_bounds = array<i64: 1, 32>}, {pipeline_mode = #tpu.pipeline_mode<synchronous>, transform_indices = @transform_10, window_bounds = array<i64: 1, 32>}, {pipeline_mode = #tpu.pipeline_mode<synchronous>, transform_indices = @transform_11, window_bounds = array<i64: 1, 32>}, {transform_indices = @transform_12, window_bounds = array<i64: 16, 32>}]} {
    %c0 = arith.constant 0 : index
    %c0_0 = arith.constant 0 : index
    %0 = vector.load %arg1[%c0, %c0_0] : memref<16x32xbf16, #tpu.memory_space<vmem>>, vector<16x32xbf16>
    %c0_1 = arith.constant 0 : index
    %c0_2 = arith.constant 0 : index
    %1 = vector.load %arg3[%c0_1, %c0_2] : memref<32x32xbf16, #tpu.memory_space<vmem>>, vector<32x32xbf16>
    %cst = arith.constant dense<0.000000e+00> : vector<16x32xf32>
    %2 = tpu.matmul %0, %1, %cst {dimension_numbers = #tpu.dot_dimension_numbers<[1], [0], [0], [1], [0, 0, 1, 1], [], []>} : vector<16x32xbf16>, vector<32x32xbf16>, vector<16x32xf32> -> vector<16x32xf32>
    %c0_3 = arith.constant 0 : index
    %c0_4 = arith.constant 0 : index
    %3 = vector.load %arg4[%c0_3, %c0_4] : memref<1x32xf32, #tpu.memory_space<vmem>>, vector<1x32xf32>
    %4 = vector.broadcast %3 : vector<1x32xf32> to vector<16x32xf32>
    %5 = arith.addf %2, %4 : vector<16x32xf32>
    %c0_5 = arith.constant 0 : index
    %c0_6 = arith.constant 0 : index
    %6 = vector.load %arg2[%c0_5, %c0_6] : memref<16x32xf32, #tpu.memory_space<vmem>>, vector<16x32xf32>
    %7 = arith.addf %5, %6 : vector<16x32xf32>
    %c0_7 = arith.constant 0 : index
    %c0_8 = arith.constant 0 : index
    %8 = vector.load %arg5[%c0_7, %c0_8] : memref<1x32xf32, #tpu.memory_space<vmem>>, vector<1x32xf32>
    %c0_9 = arith.constant 0 : index
    %c0_10 = arith.constant 0 : index
    %9 = vector.load %arg6[%c0_9, %c0_10] : memref<1x32xf32, #tpu.memory_space<vmem>>, vector<1x32xf32>
    %cst_11 = arith.constant dense<0.000000e+00> : vector<16xf32>
    %10 = vector.multi_reduction <add>, %7, %cst_11 [1] : vector<16x32xf32> to vector<16xf32>
    %11 = vector.shape_cast %10 : vector<16xf32> to vector<16x1xf32>
    %cst_12 = arith.constant 3.200000e+01 : f32
    %12 = vector.broadcast %cst_12 : f32 to vector<16x1xf32>
    %13 = arith.divf %11, %12 : vector<16x1xf32>
    %14 = vector.broadcast %13 : vector<16x1xf32> to vector<16x32xf32>
    %15 = arith.subf %7, %14 : vector<16x32xf32>
    %16 = arith.mulf %15, %15 : vector<16x32xf32>
    %cst_13 = arith.constant dense<0.000000e+00> : vector<16xf32>
    %17 = vector.multi_reduction <add>, %16, %cst_13 [1] : vector<16x32xf32> to vector<16xf32>
    %18 = vector.shape_cast %17 : vector<16xf32> to vector<16x1xf32>
    %cst_14 = arith.constant 3.200000e+01 : f32
    %19 = vector.broadcast %cst_14 : f32 to vector<16x1xf32>
    %20 = arith.divf %18, %19 : vector<16x1xf32>
    %21 = vector.broadcast %13 : vector<16x1xf32> to vector<16x32xf32>
    %22 = arith.subf %7, %21 : vector<16x32xf32>
    %cst_15 = arith.constant 9.99999974E-6 : f32
    %23 = vector.broadcast %cst_15 : f32 to vector<16x1xf32>
    %24 = arith.addf %20, %23 : vector<16x1xf32>
    %25 = math.rsqrt %24 : vector<16x1xf32>
    %26 = vector.broadcast %25 : vector<16x1xf32> to vector<16x32xf32>
    %27 = arith.mulf %22, %26 : vector<16x32xf32>
    %28 = vector.broadcast %8 : vector<1x32xf32> to vector<16x32xf32>
    %29 = arith.mulf %27, %28 : vector<16x32xf32>
    %30 = vector.broadcast %9 : vector<1x32xf32> to vector<16x32xf32>
    %31 = arith.addf %29, %30 : vector<16x32xf32>
    %32 = arith.truncf %31 : vector<16x32xf32> to vector<16x32xbf16>
    %c0_16 = arith.constant 0 : index
    %c0_17 = arith.constant 0 : index
    %33 = vector.load %arg7[%c0_16, %c0_17] : memref<32x64xbf16, #tpu.memory_space<vmem>>, vector<32x64xbf16>
    %cst_18 = arith.constant dense<0.000000e+00> : vector<16x64xf32>
    %34 = tpu.matmul %32, %33, %cst_18 {dimension_numbers = #tpu.dot_dimension_numbers<[1], [0], [0], [1], [0, 0, 1, 1], [], []>} : vector<16x32xbf16>, vector<32x64xbf16>, vector<16x64xf32> -> vector<16x64xf32>
    %c0_19 = arith.constant 0 : index
    %c0_20 = arith.constant 0 : index
    %35 = vector.load %arg8[%c0_19, %c0_20] : memref<1x64xf32, #tpu.memory_space<vmem>>, vector<1x64xf32>
    %36 = vector.broadcast %35 : vector<1x64xf32> to vector<16x64xf32>
    %37 = arith.addf %34, %36 : vector<16x64xf32>
    %cst_21 = arith.constant 0.000000e+00 : f32
    %38 = vector.broadcast %cst_21 : f32 to vector<16x64xf32>
    %39 = arith.maximumf %37, %38 : vector<16x64xf32>
    %40 = arith.truncf %39 : vector<16x64xf32> to vector<16x64xbf16>
    %c0_22 = arith.constant 0 : index
    %c0_23 = arith.constant 0 : index
    %41 = vector.load %arg9[%c0_22, %c0_23] : memref<64x32xbf16, #tpu.memory_space<vmem>>, vector<64x32xbf16>
    %cst_24 = arith.constant dense<0.000000e+00> : vector<16x32xf32>
    %42 = tpu.matmul %40, %41, %cst_24 {dimension_numbers = #tpu.dot_dimension_numbers<[1], [0], [0], [1], [0, 0, 1, 1], [], []>} : vector<16x64xbf16>, vector<64x32xbf16>, vector<16x32xf32> -> vector<16x32xf32>
    %c0_25 = arith.constant 0 : index
    %c0_26 = arith.constant 0 : index
    %43 = vector.load %arg10[%c0_25, %c0_26] : memref<1x32xf32, #tpu.memory_space<vmem>>, vector<1x32xf32>
    %44 = vector.broadcast %43 : vector<1x32xf32> to vector<16x32xf32>
    %45 = arith.addf %42, %44 : vector<16x32xf32>
    %46 = arith.addf %45, %31 : vector<16x32xf32>
    %c0_27 = arith.constant 0 : index
    %c0_28 = arith.constant 0 : index
    %47 = vector.load %arg11[%c0_27, %c0_28] : memref<1x32xf32, #tpu.memory_space<vmem>>, vector<1x32xf32>
    %c0_29 = arith.constant 0 : index
    %c0_30 = arith.constant 0 : index
    %48 = vector.load %arg12[%c0_29, %c0_30] : memref<1x32xf32, #tpu.memory_space<vmem>>, vector<1x32xf32>
    %cst_31 = arith.constant dense<0.000000e+00> : vector<16xf32>
    %49 = vector.multi_reduction <add>, %46, %cst_31 [1] : vector<16x32xf32> to vector<16xf32>
    %50 = vector.shape_cast %49 : vector<16xf32> to vector<16x1xf32>
    %cst_32 = arith.constant 3.200000e+01 : f32
    %51 = vector.broadcast %cst_32 : f32 to vector<16x1xf32>
    %52 = arith.divf %50, %51 : vector<16x1xf32>
    %53 = vector.broadcast %52 : vector<16x1xf32> to vector<16x32xf32>
    %54 = arith.subf %46, %53 : vector<16x32xf32>
    %55 = arith.mulf %54, %54 : vector<16x32xf32>
    %cst_33 = arith.constant dense<0.000000e+00> : vector<16xf32>
    %56 = vector.multi_reduction <add>, %55, %cst_33 [1] : vector<16x32xf32> to vector<16xf32>
    %57 = vector.shape_cast %56 : vector<16xf32> to vector<16x1xf32>
    %cst_34 = arith.constant 3.200000e+01 : f32
    %58 = vector.broadcast %cst_34 : f32 to vector<16x1xf32>
    %59 = arith.divf %57, %58 : vector<16x1xf32>
    %60 = vector.broadcast %52 : vector<16x1xf32> to vector<16x32xf32>
    %61 = arith.subf %46, %60 : vector<16x32xf32>
    %cst_35 = arith.constant 9.99999974E-6 : f32
    %62 = vector.broadcast %cst_35 : f32 to vector<16x1xf32>
    %63 = arith.addf %59, %62 : vector<16x1xf32>
    %64 = math.rsqrt %63 : vector<16x1xf32>
    %65 = vector.broadcast %64 : vector<16x1xf32> to vector<16x32xf32>
    %66 = arith.mulf %61, %65 : vector<16x32xf32>
    %67 = vector.broadcast %47 : vector<1x32xf32> to vector<16x32xf32>
    %68 = arith.mulf %66, %67 : vector<16x32xf32>
    %69 = vector.broadcast %48 : vector<1x32xf32> to vector<16x32xf32>
    %70 = arith.addf %68, %69 : vector<16x32xf32>
    %c0_36 = arith.constant 0 : index
    %c0_37 = arith.constant 0 : index
    %71 = vector.load %arg13[%c0_36, %c0_37] : memref<16x32xf32, #tpu.memory_space<vmem>>, vector<16x32xf32>
    tpu.vector_store %arg13[%c0_36, %c0_37], %70 {strides = array<i32>} : memref<16x32xf32, #tpu.memory_space<vmem>>, vector<16x32xf32>,
    return
  }
  func.func @transform_0(%arg0: i32) -> (i32, i32) {
    %c0_i32 = arith.constant 0 : i32
    %c0_i32_0 = arith.constant 0 : i32
    return %arg0, %c0_i32 : i32, i32
  }
  func.func @transform_1(%arg0: i32) -> (i32, i32) {
    %c0_i32 = arith.constant 0 : i32
    %c0_i32_0 = arith.constant 0 : i32
    return %arg0, %c0_i32 : i32, i32
  }
  func.func @transform_2(%arg0: i32) -> (i32, i32) {
    %c0_i32 = arith.constant 0 : i32
    %c0_i32_0 = arith.constant 0 : i32
    %c0_i32_1 = arith.constant 0 : i32
    return %c0_i32, %c0_i32_0 : i32, i32
  }
  func.func @transform_3(%arg0: i32) -> (i32, i32) {
    %c0_i32 = arith.constant 0 : i32
    %c0_i32_0 = arith.constant 0 : i32
    %c0_i32_1 = arith.constant 0 : i32
    return %c0_i32, %c0_i32_0 : i32, i32
  }
  func.func @transform_4(%arg0: i32) -> (i32, i32) {
    %c0_i32 = arith.constant 0 : i32
    %c0_i32_0 = arith.constant 0 : i32
    %c0_i32_1 = arith.constant 0 : i32
    return %c0_i32, %c0_i32_0 : i32, i32
  }
  func.func @transform_5(%arg0: i32) -> (i32, i32) {
    %c0_i32 = arith.constant 0 : i32
    %c0_i32_0 = arith.constant 0 : i32
    %c0_i32_1 = arith.constant 0 : i32
    return %c0_i32, %c0_i32_0 : i32, i32
  }
  func.func @transform_6(%arg0: i32) -> (i32, i32) {
    %c0_i32 = arith.constant 0 : i32
    %c0_i32_0 = arith.constant 0 : i32
    %c0_i32_1 = arith.constant 0 : i32
    return %c0_i32, %c0_i32_0 : i32, i32
  }
  func.func @transform_7(%arg0: i32) -> (i32, i32) {
    %c0_i32 = arith.constant 0 : i32
    %c0_i32_0 = arith.constant 0 : i32
    %c0_i32_1 = arith.constant 0 : i32
    return %c0_i32, %c0_i32_0 : i32, i32
  }
  func.func @transform_8(%arg0: i32) -> (i32, i32) {
    %c0_i32 = arith.constant 0 : i32
    %c0_i32_0 = arith.constant 0 : i32
    %c0_i32_1 = arith.constant 0 : i32
    return %c0_i32, %c0_i32_0 : i32, i32
  }
  func.func @transform_9(%arg0: i32) -> (i32, i32) {
    %c0_i32 = arith.constant 0 : i32
    %c0_i32_0 = arith.constant 0 : i32
    %c0_i32_1 = arith.constant 0 : i32
    return %c0_i32, %c0_i32_0 : i32, i32
  }
  func.func @transform_10(%arg0: i32) -> (i32, i32) {
    %c0_i32 = arith.constant 0 : i32
    %c0_i32_0 = arith.constant 0 : i32
    %c0_i32_1 = arith.constant 0 : i32
    return %c0_i32, %c0_i32_0 : i32, i32
  }
  func.func @transform_11(%arg0: i32) -> (i32, i32) {
    %c0_i32 = arith.constant 0 : i32
    %c0_i32_0 = arith.constant 0 : i32
    %c0_i32_1 = arith.constant 0 : i32
    return %c0_i32, %c0_i32_0 : i32, i32
  }
  func.func @transform_12(%arg0: i32) -> (i32, i32) {
    %c0_i32 = arith.constant 0 : i32
    %c0_i32_0 = arith.constant 0 : i32
    return %arg0, %c0_i32 : i32, i32
  }
}

</mosaic_0001>

<bundles_post_ra>
// kernel: decoder_forward_pallas.13
= control target key start
LH: loop header
LB: loop body
LE: loop exit
PB: predicated region body
PF: predicated region fallthrough
CT: control target
= control target key end

     0   :  { %s769_s12 = smov 0   ;;  %s771_s13 = smov 0   ;;  %s851_s0 = inlined_call_operand.vmem [shape: bf16[2,64,8], index: 0, kind: input, shape index: {}]   ;;  %s852_s1 = inlined_call_operand.vmem [shape: bf16[2,64,8], index: 1, kind: input, shape index: {}]   ;;  %s853_s2 = inlined_call_operand.vmem [shape: bf16[2,64,8], index: 2, kind: input, shape index: {}]   ;;  %s854_s3 = inlined_call_operand.vmem [shape: bf16[2,64,8], index: 3, kind: output, shape index: {}]  }
   0x1   :  { %s773_s14 = smov 0   ;;  %s775_s15 = smov 0  }
   0x2   :  { %s777_s16 = smov 0  }
   0x3 LB: > { %s28_s17 = sadd.s32 1, %s736_s14  ;;  %s32_s18 = sadd.s32 1, %s740_s15  ;;  %s744_s16 = sphi %s777_s16, %s13_s16   ;;  %s740_s15 = sphi %s775_s15, %s858_s15   ;;  %s736_s14 = sphi %s773_s14, %s857_s14   ;;  %s732_s13 = sphi %s771_s13, %s856_s13   ;;  %s728_s12 = sphi %s769_s12, %s855_s12  }
   0x4   : > { %p30_p0 = scmp.ge.s32.totalorder %s28_s17, 4  ;;  %p616_p1 = scmp.ge.s32.totalorder %s744_s16, 1 }
   0x5   : > { %p207_p2 = scmp.lt.s32.totalorder %s744_s16, 9 }
   0x6   : > { %s860_s17 = smov (%p30_p0, %s28_s17), 0  ;;  %s862_s18 = smov (!%p30_p0, %s32_s18), %s740_s15 }
   0x7   : > { %p208_p3 = pnand %p616_p1, %p207_p2  ;;  %p34_p4 = scmp.ge.s32.totalorder %s862_s18, 2 }
   0x8   : > { %s617_s19 = sshll.u32 (!%p208_p3), %s728_s12, 1  ;;  %p260_p5 = scmp.lt.s32.totalorder (!%p208_p3), %s732_s13, 1 }
   0x9   : > { %s864_s18 = smov (%p34_p4, %s862_s18), 0  ;;  %211 = sbr.rel (%p208_p3) target bundleno = 662 (0x296), region = 32 }
   0xa   : > { %p262_p6 = scmp.lt.s32.totalorder (!%p208_p3), %s617_s19, 7 }
   0xe   : > { %vm313_vm0 = vcmask 64512   ;;  %v746_v0 = vmov 0.0   ;;  %s866_s13 = smov (!%p260_p5, %s732_s13), 1  ;;  %s868_s19 = smov (!%p262_p6, %s617_s19), 7  ;;  %vm308_vm1 = vcmask 7168   ;;  %v353_v5 = vlaneseq }
   0xf   : > { %314 = vst.msk [vmem:[#allocation4] sm:$0xff] %vm313_vm0, %v746_v0  ;;  %s618_s20 = sshll.u32 %s866_s13, 3  ;;  %v747_v4 = vmov -1e+30   ;;  %vm367_vm3 = vcmask 130048   ;;  %v748_v15 = vmov 0  }
  0x10   : > { %315 = vst.msk [vmem:[#allocation4 + $0x8] sm:$0xff] %vm313_vm0, %v746_v0  ;;  %s265_s21 = sadd.s32 %s618_s20, %s868_s19  ;;  %v354_v6 = vshrl.u32 %v353_v5, 7  ;;  %v357_v7 = vand.u32 127, %v353_v5  ;;  %691 = vset.pattern.permute.xlu1 %v748_v15  ;;  %692 = vset.pattern.permute.xlu0 %v748_v15  ;;  %vm480_vm5 = vcmask 60416  }
  0x11   : > { %s801_s22 = sshll.u32 %s265_s21, 2  ;;  %309 = vst.msk [vmem:[#allocation2] sm:$0xff] %vm308_vm1, %v747_v4  ;;  %693 = vset.pattern.permute.xlu2 %v748_v15 }
  0x12   : > { %s278_s25 = scalar_lea.vmem %s852_s1, %s801_s22  ;;  %s267_s28 = scalar_lea.vmem %s851_s0, %s801_s22  ;;  %310 = vst.msk [vmem:[#allocation2 + $0x8] sm:$0xff] %vm308_vm1, %v747_v4  ;;  %vm361_vm2 = vcmp.le.s32.totalorder %v357_v7, %v354_v6  ;;  %v355_v11 = vadd.s32 8, %v354_v6 }
  0x13   : > { %v646_v1 = vld [vmem:[%s278_s25] sm:$0xff]  ;;  %311 = vst.msk [vmem:[#allocation3] sm:$0xff] %vm308_vm1, %v746_v0  ;;  %s290_s4 = scalar_lea.vmem %s853_s2, %s801_s22  ;;  %s301_s7 = scalar_lea.vmem %s854_s3, %s801_s22 }
  0x14   : > { %v337_v2 = vsel %vm313_vm0, %v646_v1, 0  ;;  %v645_v3 = vld [vmem:[%s267_s28] sm:$0xff]  ;;  %312 = vst.msk [vmem:[#allocation3 + $0x8] sm:$0xff] %vm308_vm1, %v746_v0  ;;  %vm362_vm4 = vcmp.le.s32.totalorder %v357_v7, %v355_v11 }
  0x15   : > { %346 = vmatpush.bf16.xpose.msra.mxu0 %v337_v2  ;;  %v647_v28 = vld [vmem:[%s290_s4] sm:$0xff] }
  0x16   : > { %444 = vmatpush.bf16.msra.mxu1 %v647_v28  ;;  %v413_v49 = vld [vmem:[#allocation4] sm:$0xff] }
  0x17   : > { %v414_v56 = vld [vmem:[#allocation4 + $0x8] sm:$0xff] }
  0x18   : > { %v365_v16 = vld [vmem:[#allocation2] sm:$0xff] }
  0x19   : > { %v366_v21 = vld [vmem:[#allocation2 + $0x8] sm:$0xff] }
  0x1a   : > { %v398_v40 = vld [vmem:[#allocation3] sm:$0xff] }
  0x1b   : > { %v399_v44 = vld [vmem:[#allocation3 + $0x8] sm:$0xff] }
  0x1c   : > { %637 = vmatmul.msk.bf16.vlgmr.msra.gmra.mxu0 %vm313_vm0, %v645_v3 }
  0x99   : > { %v348_v8 = vpop.f32.mrf.mxu0 }
  0x9a   : > { %v363_v9 = vsel %vm361_vm2, %v348_v8, -1e+30 }
  0x9b   : > { %v368_v10 = vsel %vm367_vm3, %v363_v9, -inf }
  0x9c   : > { %369 = vmax.xlane.f32.xlu0 %v368_v10 }
  0xa1   : > { %v350_v12 = vpop.f32.mrf.mxu0 }
  0xa2   : > { %v364_v13 = vsel %vm362_vm4, %v350_v12, -1e+30 }
  0xa3   : > { %v371_v14 = vsel %vm367_vm3, %v364_v13, -inf }
  0xa4   : > { %372 = vmax.xlane.f32.xlu0 %v371_v14 }
 0x10f   : > { %v370_v17 = vpop.xlane.xlu0 %369 }
 0x110   : > { %v374_v18 = vmax.f32 %v365_v16, %v370_v17 }
 0x112   : > { %v376_v19 = vsub.f32 %v365_v16, %v374_v18  ;;  %455 = vst.msk [vmem:[#allocation2] sm:$0xff] %vm308_vm1, %v374_v18  ;;  %384 = vperm.xlu1 %691, %v374_v18  }
 0x114   : > { %v378_v20 = vmul.f32 1.442695, %v376_v19 }
 0x116   : > { %694 = vpow2.f32 %v378_v20 }
 0x117   : > { %v373_v22 = vpop.xlane.xlu0 %372 }
 0x118   : > { %v375_v23 = vmax.f32 %v366_v21, %v373_v22 }
 0x11a   : > { %v377_v24 = vsub.f32 %v366_v21, %v375_v23  ;;  %456 = vst.msk [vmem:[#allocation2 + $0x8] sm:$0xff] %vm308_vm1, %v375_v23  ;;  %389 = vperm.xlu1 %691, %v375_v23  }
 0x11c   : > { %v695_v25 = vpop.eup %694  ;;  %v380_v26 = vmul.f32 1.442695, %v377_v24 }
 0x11d   : > { %417 = vperm.xlu0 %692, %v695_v25   ;;  %v400_v41 = vmul.f32 %v695_v25, %v398_v40 }
 0x11e   : > { %696 = vpow2.f32 %v380_v26 }
 0x124   : > { %v697_v27 = vpop.eup %696 }
 0x125   : > { %422 = vperm.xlu1 %691, %v697_v27   ;;  %v401_v45 = vmul.f32 %v697_v27, %v399_v44 }
 0x184   : > { %v385_v29 = vpop.permute.xlu1 %384 }
 0x185   : > { %v392_v30 = vsub.f32 %v363_v9, %v385_v29 }
 0x187   : > { %v394_v31 = vmul.f32 1.442695, %v392_v30 }
 0x189   : > { %698 = vpow2.f32 %v394_v31 }
 0x18c   : > { %v390_v32 = vpop.permute.xlu1 %389 }
 0x18d   : > { %v393_v33 = vsub.f32 %v364_v13, %v390_v32 }
 0x18f   : > { %v699_v34 = vpop.eup %698  ;;  %v396_v35 = vmul.f32 1.442695, %v393_v33  ;;  %v418_v50 = vpop.permute.xlu0 %417 }
 0x190   : > { %v402_v36 = vsel %vm367_vm3, %v699_v34, 0.0  ;;  %v425_v52 = vmul.f32 %v418_v50, %v413_v49 }
 0x191   : > { %700 = vpow2.f32 %v396_v35  ;;  %403 = vadd.xlane.f32.xlu2 %v402_v36 }
 0x197   : > { %v701_v37 = vpop.eup %700  ;;  %v423_v57 = vpop.permute.xlu1 %422 }
 0x198   : > { %v405_v38 = vsel %vm367_vm3, %v701_v37, 0.0  ;;  %v427_v39 = vpack.c.bf16 %v701_v37, %v699_v34  ;;  %v426_v59 = vmul.f32 %v423_v57, %v414_v56 }
 0x199   : > { %406 = vadd.xlane.f32.xlu2 %v405_v38 }
 0x19a   : > { %642 = vmatmul.msk.bf16.vlgmr.msra.gmra.mxu1 %vm367_vm3, %v427_v39 }
 0x204   : > { %v404_v42 = vpop.xlane.xlu2 %403 }
 0x205   : > { %v408_v43 = vadd.f32 %v404_v42, %v400_v41 }
 0x207   : > { %411 = vst.msk [vmem:[#allocation3] sm:$0xff] %vm308_vm1, %v408_v43 }
 0x20c   : > { %v407_v46 = vpop.xlane.xlu2 %406 }
 0x20d   : > { %v409_v47 = vadd.f32 %v407_v46, %v401_v45 }
 0x20e   : > { %v462_v48 = vld [vmem:[#allocation3] sm:$0xff] }
 0x20f   : > { %412 = vst.msk [vmem:[#allocation3 + $0x8] sm:$0xff] %vm308_vm1, %v409_v47  ;;  %702 = vrcp.f32 %v462_v48 }
 0x215   : > { %v703_v51 = vpop.eup %702 }
 0x216   : > { %468 = vperm.xlu2 %693, %v703_v51   ;;  %v463_v53 = vld [vmem:[#allocation3 + $0x8] sm:$0xff] }
 0x217   : > { %v446_v54 = vpop.f32.mrf.mxu1  ;;  %704 = vrcp.f32 %v463_v53 }
 0x218   : > { %v451_v55 = vadd.f32 %v446_v54, %v425_v52 }
 0x21a   : > { %453 = vst.msk [vmem:[#allocation4] sm:$0xff] %vm313_vm0, %v451_v55 }
 0x21d   : > { %v705_v58 = vpop.eup %704 }
 0x21e   : > { %473 = vperm.xlu1 %691, %v705_v58  }
 0x21f   : > { %v448_v60 = vpop.f32.mrf.mxu1 }
 0x220   : > { %v452_v61 = vadd.f32 %v448_v60, %v426_v59 }
 0x221   : > { %v460_v63 = vld [vmem:[#allocation4] sm:$0xff] }
 0x222   : > { %454 = vst.msk [vmem:[#allocation4 + $0x8] sm:$0xff] %vm313_vm0, %v452_v61 }
 0x229   : > { %v461_v2 = vld [vmem:[#allocation4 + $0x8] sm:$0xff] }
 0x270   : > { %v469_v62 = vpop.permute.xlu2 %468 }
 0x271   : > { %v476_v0 = vmul.f32 %v469_v62, %v460_v63 }
 0x273   : > { %v478_v1 = vpack.c.bf16 %v476_v0, %v476_v0 }
 0x275   : > { %481 = vst.msk [vmem:[%s301_s7] sm:$0xf] %vm480_vm5, %v478_v1 }
 0x290   : > { %v474_v3 = vpop.permute.xlu1 %473 }
 0x291   : > { %v477_v4 = vmul.f32 %v474_v3, %v461_v2 }
 0x293   : > { %v479_v5 = vpack.c.bf16 %v477_v4, %v477_v4 }
 0x295   : > { %482 = vst.msk [vmem:[%s301_s7 + $0x4] sm:$0xf] %vm480_vm5, %v479_v5 }
 0x296 PF: > { %s13_s16 = sadd.s32 1, %s744_s16   ;;  %s855_s12 = smov %s736_s14 }
 0x297   : > { %p10_p7 = scmp.ge.s32.totalorder %s13_s16, 10   ;;  %s856_s13 = smov %s740_s15 }
 0x298   : > { %s857_s14 = smov %s860_s17  ;;  %s858_s15 = smov %s864_s18 }
 0x299   :  { %12 = sbr.rel (!%p10_p7) target bundleno = 3 (0x3), region = 76 }

// kernel: decoder_forward_pallas.12
= control target key start
LH: loop header
LB: loop body
LE: loop exit
PB: predicated region body
PF: predicated region fallthrough
CT: control target
= control target key end

     0   :  { %15 = vsyncpa [#allocation3], 0  ;;  %s954_s0 = inlined_call_operand.vmem [shape: f32[32,32], index: 0, kind: input, shape index: {}]   ;;  %s955_s1 = inlined_call_operand.vmem [shape: bf16[32,32], index: 1, kind: input, shape index: {}]   ;;  %s956_s2 = inlined_call_operand.hbm [shape: bf16[32,32], index: 2, kind: input, shape index: {}]   ;;  %s957_s3 = inlined_call_operand.hbm [shape: bf16[32,32], index: 3, kind: input, shape index: {}]   ;;  %s958_s4 = inlined_call_operand.vmem [shape: f32[1,32], index: 4, kind: input, shape index: {}]   ;;  %s959_s5 = inlined_call_operand.vmem [shape: f32[1,32], index: 5, kind: input, shape index: {}]   ;;  %s960_s6 = inlined_call_operand.vmem [shape: f32[1,32], index: 6, kind: input, shape index: {}]   ;;  %s961_s7 = inlined_call_operand.vmem [shape: bf16[32,32], index: 7, kind: output, shape index: {0}]   ;;  %s962_s8 = inlined_call_operand.vmem [shape: bf16[32,32], index: 8, kind: output, shape index: {1}]   ;;  %s963_s9 = inlined_call_operand.vmem [shape: bf16[32,32], index: 9, kind: output, shape index: {2}]  }
   0x1   :  { %16 = vsyncpa [#allocation5], 0  ;;  %s882_s30 = smov 0  }
   0x2 LB: > { %s271_s12 = sshll.u32 %s956_s2, 4  ;;  %s666_s13 = sadd.s32 4294967295, %s826_s30   ;;  %s826_s30 = sphi %s882_s30, %s22_s30   ;;  %s272_s12 = int_to_ptr.hbm [resolvable:$true] %s271_s12 }
   0x3   : > { %p668_p0 = scmp.ge.s32.totalorder %s826_s30, 1  ;;  %p257_p1 = scmp.lt.s32.totalorder %s826_s30, 3 }
   0x4   : > { %p893_p2 = scmp.eq.s32.totalorder %s666_s13, 0  ;;  %s828_s16 = smov [#allocation2]  }
   0x5   : > { %p897_p3 = pnand %p668_p0, %p257_p1  ;;  %s273_s17 = sshll.u32 %s828_s16, 4  ;;  %s274_s17 = int_to_ptr.vmem [resolvable:$true] %s273_s17 }
   0x6   : > { %s285_s20 = sshll.u32 %s957_s3, 4  ;;  %s829_s21 = smov [#allocation4]   ;;  %s286_s20 = int_to_ptr.hbm [resolvable:$true] %s285_s20 }
   0x7   : > { %p726_p4 = pneg %p897_p3  ;;  %s287_s22 = sshll.u32 %s829_s21, 4  ;;  %s288_s22 = int_to_ptr.vmem [resolvable:$true] %s287_s22 }
   0x8   : > { %s830_s23 = smov 64   ;;  %s831_s24 = smov 4  }
   0x9   : > { %p727_p5 = pnand %p893_p2, %p726_p4  ;;  %321 = sbr.rel (%p897_p3) target bundleno = 172 (0xac), region = 48 }
   0xb   : > { %729 = dma.hbm_to_vmem [thread:$0]  (!%p727_p5), %s272_s12, 256, %s274_s17, [#allocation3], %s830_s23, %s830_s23, %s831_s24  }
   0xc   : > { %732 = dma.hbm_to_vmem [thread:$0]  (!%p727_p5), %s286_s20, 256, %s288_s22, [#allocation5], %s830_s23, %s830_s23, %s831_s24  }
   0xe   : > { %817 = dma.done.wait (%p893_p2), [#allocation3], 256  }
   0xf   : > { %819 = vsyncadd (%p893_p2), [#allocation3], 4294967040 }
  0x10   : > { %821 = dma.done.wait (%p893_p2), [#allocation5], 256  }
  0x11   : > { %823 = vsyncadd (%p893_p2), [#allocation5], 4294967040  ;;  %s675_s25 = sshll.u32 %s666_s13, 1  ;;  %v713_v0 = vld [vmem:[%s955_s1 + $0x8] sm:$0xff]  ;;  %v717_v2 = vld [vmem:[#allocation4 + $0x8] sm:$0xff]  ;;  %vm421_vm0 = vcmask 261120  }
  0x12   : > { %p374_p6 = scmp.lt.s32.totalorder %s675_s25, 3  ;;  %v715_v1 = vld [vmem:[#allocation2 + $0x8] sm:$0xff]  ;;  %v712_v3 = vld [vmem:[%s955_s1] sm:$0xff]  ;;  %431 = vmatpush.bf16.msra.mxu0 %v713_v0  ;;  %508 = vmatpush.bf16.msra.mxu2 %v717_v2  ;;  %v716_v7 = vld [vmem:[#allocation4] sm:$0xff]  ;;  %vm441_vm1 = vcmask 257024  }
  0x13   : > { %v714_v4 = vld [vmem:[#allocation2] sm:$0xff]  ;;  %470 = vmatpush.bf16.msra.mxu1 %v715_v1 }
  0x14   : > { %s967_s25 = smov (!%p374_p6, %s675_s25), 3  ;;  %v749_v9 = vld [vmem:[%s958_s4] ss:$0 sm:$0xff] }
  0x15   : > { %s676_s26 = sshll.u32 %s967_s25, 3  ;;  %v750_v10 = vld [vmem:[%s959_s5] ss:$0 sm:$0xff]  ;;  %s678_s18 = sshll.u32 %s967_s25, 2 }
  0x16   : > { %s377_s29 = scalar_lea.vmem %s954_s0, %s676_s26  ;;  %432 = vmatpush.bf16.msra.mxu0 %v712_v3  ;;  %509 = vmatpush.bf16.msra.mxu2 %v716_v7  ;;  %s383_s21 = scalar_lea.vmem %s961_s7, %s678_s18  ;;  %v751_v17 = vld [vmem:[%s960_s6] ss:$0 sm:$0xff] }
  0x17   : > { %v398_v5 = vld [vmem:[%s377_s29] sm:$0xff]  ;;  %v399_v6 = vld [vmem:[%s377_s29 + $0x8] sm:$0xff]  ;;  %471 = vmatpush.bf16.msra.mxu1 %v714_v4  ;;  %s389_s24 = scalar_lea.vmem %s962_s8, %s678_s18  ;;  %s395_s29 = scalar_lea.vmem %s963_s9, %s678_s18 }
  0x18   : > { %v400_v8 = vpack.c.bf16 %v399_v6, %v398_v5 }
  0x1a   : > { %691 = vmatmul.msk.bf16.vlgmr.msra.gmra.mxu0 %vm421_vm0, %v400_v8  ;;  %700 = vmatmul.msk.bf16.vlgmr.msra.gmra.mxu1 %vm421_vm0, %v400_v8 }
  0x1b   : > { %709 = vmatmul.msk.bf16.vlgmr.msra.gmra.mxu2 %vm421_vm0, %v400_v8 }
  0x97   : > { %v434_v11 = vpop.f32.mrf.mxu0  ;;  %v473_v12 = vpop.f32.mrf.mxu1 }
  0x98   : > { %v435_v13 = vadd.f32 %v749_v9, %v434_v11  ;;  %v474_v14 = vadd.f32 %v750_v10, %v473_v12 }
  0x9a   : > { %v439_v15 = vpack.c.bf16 %v435_v13, %v435_v13  ;;  %v478_v16 = vpack.c.bf16 %v474_v14, %v474_v14 }
  0x9c   : > { %442 = vst.msk [vmem:[%s383_s21] sm:$0xf] %vm441_vm1, %v439_v15 }
  0x9d   : > { %480 = vst.msk [vmem:[%s389_s24] sm:$0xf] %vm441_vm1, %v478_v16 }
  0x9e   : > { %v511_v18 = vpop.f32.mrf.mxu2 }
  0x9f   : > { %v512_v19 = vadd.f32 %v751_v17, %v511_v18  ;;  %v436_v20 = vpop.f32.mrf.mxu0  ;;  %v475_v21 = vpop.f32.mrf.mxu1 }
  0xa0   : > { %v437_v22 = vadd.f32 %v749_v9, %v436_v20  ;;  %v476_v23 = vadd.f32 %v750_v10, %v475_v21 }
  0xa1   : > { %v516_v24 = vpack.c.bf16 %v512_v19, %v512_v19 }
  0xa2   : > { %v440_v25 = vpack.c.bf16 %v437_v22, %v437_v22  ;;  %v479_v26 = vpack.c.bf16 %v476_v23, %v476_v23 }
  0xa3   : > { %518 = vst.msk [vmem:[%s395_s29] sm:$0xf] %vm441_vm1, %v516_v24 }
  0xa4   : > { %443 = vst.msk [vmem:[%s383_s21 + $0x4] sm:$0xf] %vm441_vm1, %v440_v25 }
  0xa5   : > { %481 = vst.msk [vmem:[%s389_s24 + $0x4] sm:$0xf] %vm441_vm1, %v479_v26 }
  0xa6   : > { %v513_v27 = vpop.f32.mrf.mxu2 }
  0xa7   : > { %v514_v28 = vadd.f32 %v751_v17, %v513_v27 }
  0xa9   : > { %v517_v29 = vpack.c.bf16 %v514_v28, %v514_v28 }
  0xab   : > { %519 = vst.msk [vmem:[%s395_s29 + $0x4] sm:$0xf] %vm441_vm1, %v517_v29 }
  0xac PF: > { %s22_s30 = sadd.s32 1, %s826_s30  }
  0xad   : > { %p19_p7 = scmp.ge.s32.totalorder %s22_s30, 4  }
  0xaf   :  { %21 = sbr.rel (!%p19_p7) target bundleno = 2 (0x2), region = 111 }
  0xb4   :  { %576 = vsyncpa [#allocation3], 1 }
  0xb5   :  { %578 = vsyncpa [#allocation3 + $0x1], 1 }
  0xb6   :  { %579 = vsyncpa [#allocation5], 1 }

// kernel: decoder_forward_pallas.14
= control target key start
LH: loop header
LB: loop body
LE: loop exit
PB: predicated region body
PF: predicated region fallthrough
CT: control target
= control target key end

     0   :  { %s752_s30 = smov 0   ;;  %s819_s0 = inlined_call_operand.vmem [shape: bf16[32,32], index: 0, kind: input, shape index: {}]   ;;  %s820_s1 = inlined_call_operand.vmem [shape: f32[32,32], index: 1, kind: input, shape index: {}]   ;;  %s821_s2 = inlined_call_operand.vmem [shape: bf16[32,32], index: 2, kind: input, shape index: {}]   ;;  %s822_s3 = inlined_call_operand.vmem [shape: f32[1,32], index: 3, kind: input, shape index: {}]   ;;  %s823_s4 = inlined_call_operand.vmem [shape: f32[1,32], index: 4, kind: input, shape index: {}]   ;;  %s824_s5 = inlined_call_operand.vmem [shape: f32[1,32], index: 5, kind: input, shape index: {}]   ;;  %s825_s6 = inlined_call_operand.vmem [shape: bf16[32,32], index: 6, kind: input, shape index: {}]   ;;  %s826_s7 = inlined_call_operand.vmem [shape: f32[1,32], index: 7, kind: input, shape index: {}]   ;;  %s827_s8 = inlined_call_operand.vmem [shape: f32[32,32], index: 8, kind: output, shape index: {0}]   ;;  %s828_s9 = inlined_call_operand.vmem [shape: bf16[32,32], index: 9, kind: output, shape index: {1}]  }
   0x1 LB: > { %s632_s10 = sadd.s32 4294967295, %s699_s30   ;;  %p636_p0 = scmp.ge.s32.totalorder %s699_s30, 1  ;;  %s699_s30 = sphi %s752_s30, %s20_s30  }
   0x2   : > { %p302_p1 = scmp.lt.s32.totalorder %s699_s30, 3 }
   0x4   : > { %p303_p2 = pnand %p636_p0, %p302_p1 }
   0x5   : > { %s637_s13 = sshll.u32 (!%p303_p2), %s632_s10, 1 }
   0x6   : > { %306 = sbr.rel (%p303_p2) target bundleno = 566 (0x236), region = 52  ;;  %p349_p3 = scmp.lt.s32.totalorder (!%p303_p2), %s637_s13, 3 }
   0xb   : > { %v671_v0 = vld [vmem:[%s821_s2 + $0x8] sm:$0xff]  ;;  %v670_v1 = vld [vmem:[%s821_s2] sm:$0xff]  ;;  %s830_s13 = smov (!%p349_p3, %s637_s13), 3  ;;  %vm400_vm0 = vcmask 261120   ;;  %v701_v14 = vmov 32.0   ;;  %vm527_vm8 = vcmask 257024  }
   0xc   : > { %410 = vmatpush.bf16.msra.mxu0 %v671_v0  ;;  %s638_s16 = sshll.u32 %s830_s13, 2  ;;  %s640_s20 = sshll.u32 %s830_s13, 3  ;;  %v683_v3 = vld [vmem:[%s822_s3] ss:$0 sm:$0xff]  ;;  %687 = vrcp.f32 %v701_v14  ;;  %v673_v31 = vld [vmem:[%s825_s6 + $0x8] sm:$0xff] }
   0xd   : > { %s352_s19 = scalar_lea.vmem %s819_s0, %s638_s16  ;;  %s358_s25 = scalar_lea.vmem %s820_s1, %s640_s20  ;;  %517 = vmatpush.bf16.msra.mxu1 %v673_v31  ;;  %v672_v33 = vld [vmem:[%s825_s6] sm:$0xff] }
   0xe   : > { %v669_v2 = vld [vmem:[%s352_s19] sm:$0xff]  ;;  %v419_v10 = vld [vmem:[%s358_s25 + $0x8] sm:$0xff]  ;;  %s364_s18 = scalar_lea.vmem %s827_s8, %s640_s20  ;;  %s370_s23 = scalar_lea.vmem %s828_s9, %s638_s16 }
   0xf   : > { %v418_v5 = vld [vmem:[%s358_s25] sm:$0xff] }
  0x10   : > { %411 = vmatpush.bf16.msra.mxu0 %v670_v1  ;;  %v684_v47 = vld [vmem:[%s823_s4] ss:$0 sm:$0xff] }
  0x11   : > { %518 = vmatpush.bf16.msra.mxu1 %v672_v33  ;;  %v685_v51 = vld [vmem:[%s824_s5] ss:$0 sm:$0xff] }
  0x12   : > { %v688_v15 = vpop.eup %687  ;;  %v686_v62 = vld [vmem:[%s826_s7] ss:$0 sm:$0xff] }
  0x13   : > { %657 = vmatmul.msk.bf16.vlgmr.msra.gmra.mxu0 %vm400_vm0, %v669_v2  ;;  %v431_v16 = vmul.f32 32.0, %v688_v15  ;;  %vm435_vm1 = vweird.f32 %v688_v15 }
  0x15   : > { %v432_v17 = vsub.f32 1.0, %v431_v16 }
  0x17   : > { %v433_v18 = vmul.f32 %v688_v15, %v432_v17 }
  0x19   : > { %v434_v19 = vadd.f32 %v688_v15, %v433_v18 }
  0x1b   : > { %v436_v20 = vsel %vm435_vm1, %v688_v15, %v434_v19 }
  0x90   : > { %v413_v4 = vpop.f32.mrf.mxu0 }
  0x91   : > { %v414_v6 = vadd.f32 %v683_v3, %v413_v4 }
  0x93   : > { %v420_v7 = vadd.f32 %v418_v5, %v414_v6 }
  0x95   : > { %v424_v8 = vsel %vm400_vm0, %v420_v7, 0.0 }
  0x96   : > { %425 = vadd.xlane.f32.xlu0 %v424_v8 }
  0x98   : > { %v415_v9 = vpop.f32.mrf.mxu0 }
  0x99   : > { %v416_v11 = vadd.f32 %v683_v3, %v415_v9 }
  0x9b   : > { %v421_v12 = vadd.f32 %v419_v10, %v416_v11 }
  0x9d   : > { %v427_v13 = vsel %vm400_vm0, %v421_v12, 0.0 }
  0x9e   : > { %428 = vadd.xlane.f32.xlu0 %v427_v13 }
 0x109   : > { %v426_v21 = vpop.xlane.xlu0 %425 }
 0x10a   : > { %v437_v22 = vmul.f32 %v436_v20, %v426_v21 }
 0x10c   : > { %v439_v23 = vsub.f32 %v420_v7, %v437_v22 }
 0x10e   : > { %v441_v24 = vmul.f32 %v439_v23, %v439_v23 }
 0x110   : > { %v443_v25 = vsel %vm400_vm0, %v441_v24, 0.0 }
 0x111   : > { %444 = vadd.xlane.f32.xlu1 %v443_v25  ;;  %v429_v26 = vpop.xlane.xlu0 %428 }
 0x112   : > { %v438_v27 = vmul.f32 %v436_v20, %v429_v26 }
 0x114   : > { %v440_v28 = vsub.f32 %v421_v12, %v438_v27 }
 0x116   : > { %v442_v29 = vmul.f32 %v440_v28, %v440_v28 }
 0x118   : > { %v446_v30 = vsel %vm400_vm0, %v442_v29, 0.0 }
 0x119   : > { %447 = vadd.xlane.f32.xlu1 %v446_v30 }
 0x184   : > { %v445_v32 = vpop.xlane.xlu1 %444 }
 0x185   : > { %v449_v34 = vmul.f32 %v445_v32, %v436_v20 }
 0x187   : > { %v451_v35 = vadd.f32 1e-05, %v449_v34 }
 0x189   : > { %689 = vrsqrt.f32 %v451_v35  ;;  %vm459_vm3 = vweird.f32 %v451_v35 }
 0x18c   : > { %v448_v36 = vpop.xlane.xlu1 %447 }
 0x18d   : > { %v450_v37 = vmul.f32 %v448_v36, %v436_v20 }
 0x18f   : > { %v690_v38 = vpop.eup %689  ;;  %v452_v39 = vadd.f32 1e-05, %v450_v37 }
 0x190   : > { %v454_v40 = vmul.f32 %v690_v38, %v451_v35  ;;  %vm460_vm2 = vweird.f32 %v690_v38 }
 0x191   : > { %691 = vrsqrt.f32 %v452_v39  ;;  %vm461_vm4 = vmor %vm459_vm3, %vm460_vm2  ;;  %vm469_vm6 = vweird.f32 %v452_v39 }
 0x192   : > { %v455_v41 = vmul.f32 %v690_v38, %v454_v40 }
 0x194   : > { %v456_v42 = vmul.f32 0.5, %v455_v41 }
 0x196   : > { %v457_v43 = vsub.f32 1.5, %v456_v42 }
 0x197   : > { %v692_v44 = vpop.eup %691 }
 0x198   : > { %v458_v45 = vmul.f32 %v690_v38, %v457_v43  ;;  %v464_v46 = vmul.f32 %v692_v44, %v452_v39  ;;  %vm470_vm5 = vweird.f32 %v692_v44 }
 0x199   : > { %vm471_vm7 = vmor %vm469_vm6, %vm470_vm5 }
 0x19a   : > { %v462_v48 = vsel %vm461_vm4, %v690_v38, %v458_v45  ;;  %v465_v49 = vmul.f32 %v692_v44, %v464_v46 }
 0x19b   : > { %v473_v50 = vmul.f32 %v462_v48, %v439_v23 }
 0x19c   : > { %v466_v52 = vmul.f32 0.5, %v465_v49 }
 0x19d   : > { %v478_v53 = vmul.f32 %v684_v47, %v473_v50 }
 0x19e   : > { %v467_v54 = vsub.f32 1.5, %v466_v52 }
 0x19f   : > { %v483_v55 = vadd.f32 %v685_v51, %v478_v53 }
 0x1a0   : > { %v468_v56 = vmul.f32 %v692_v44, %v467_v54 }
 0x1a1   : > { %485 = vst.msk [vmem:[%s364_s18] sm:$0xff] %vm400_vm0, %v483_v55 }
 0x1a2   : > { %v472_v57 = vsel %vm471_vm7, %v692_v44, %v468_v56 }
 0x1a3   : > { %v474_v58 = vmul.f32 %v472_v57, %v440_v28 }
 0x1a5   : > { %v479_v59 = vmul.f32 %v684_v47, %v474_v58 }
 0x1a7   : > { %v484_v60 = vadd.f32 %v685_v51, %v479_v59 }
 0x1a9   : > { %486 = vst.msk [vmem:[%s364_s18 + $0x8] sm:$0xff] %vm400_vm0, %v484_v60  ;;  %v487_v61 = vpack.c.bf16 %v484_v60, %v483_v55 }
 0x1ab   : > { %666 = vmatmul.msk.bf16.vlgmr.msra.gmra.mxu1 %vm400_vm0, %v487_v61 }
 0x228   : > { %v520_v63 = vpop.f32.mrf.mxu1 }
 0x229   : > { %v521_v0 = vadd.f32 %v686_v62, %v520_v63 }
 0x22b   : > { %v525_v1 = vpack.c.bf16 %v521_v0, %v521_v0 }
 0x22d   : > { %528 = vst.msk [vmem:[%s370_s23] sm:$0xf] %vm527_vm8, %v525_v1 }
 0x230   : > { %v522_v2 = vpop.f32.mrf.mxu1 }
 0x231   : > { %v523_v3 = vadd.f32 %v686_v62, %v522_v2 }
 0x233   : > { %v526_v4 = vpack.c.bf16 %v523_v3, %v523_v3 }
 0x235   : > { %529 = vst.msk [vmem:[%s370_s23 + $0x4] sm:$0xf] %vm527_vm8, %v526_v4 }
 0x236 PF: > { %s20_s30 = sadd.s32 1, %s699_s30  }
 0x237   : > { %p17_p4 = scmp.ge.s32.totalorder %s20_s30, 4  }
 0x239   :  { %19 = sbr.rel (!%p17_p4) target bundleno = 1 (0x1), region = 97 }

// kernel: decoder_forward_pallas.11
= control target key start
LH: loop header
LB: loop body
LE: loop exit
PB: predicated region body
PF: predicated region fallthrough
CT: control target
= control target key end

     0   :  { %s922_s21 = smov 0   ;;  %s992_s0 = inlined_call_operand.vmem [shape: f32[32,32], index: 0, kind: input, shape index: {}]   ;;  %s993_s1 = inlined_call_operand.vmem [shape: bf16[32,32], index: 1, kind: input, shape index: {}]   ;;  %s994_s2 = inlined_call_operand.vmem [shape: bf16[32,32], index: 2, kind: input, shape index: {}]   ;;  %s995_s3 = inlined_call_operand.vmem [shape: bf16[32,32], index: 3, kind: input, shape index: {}]   ;;  %s996_s4 = inlined_call_operand.vmem [shape: bf16[32,32], index: 4, kind: input, shape index: {}]   ;;  %s997_s5 = inlined_call_operand.vmem [shape: f32[1,32], index: 5, kind: input, shape index: {}]   ;;  %s998_s6 = inlined_call_operand.vmem [shape: f32[1,32], index: 6, kind: input, shape index: {}]   ;;  %s999_s7 = inlined_call_operand.vmem [shape: f32[1,32], index: 7, kind: input, shape index: {}]   ;;  %s1000_s8 = inlined_call_operand.vmem [shape: f32[1,32], index: 8, kind: input, shape index: {}]   ;;  %s1001_s9 = inlined_call_operand.vmem [shape: bf16[32,32], index: 9, kind: output, shape index: {0}]   ;;  %s1002_s10 = inlined_call_operand.vmem [shape: bf16[32,32], index: 10, kind: output, shape index: {1}]   ;;  %s1003_s11 = inlined_call_operand.vmem [shape: bf16[32,32], index: 11, kind: output, shape index: {2}]   ;;  %s1004_s12 = inlined_call_operand.vmem [shape: bf16[32,32], index: 12, kind: output, shape index: {3}]  }
   0x1 LB: > { %s776_s22 = sadd.s32 4294967295, %s855_s21   ;;  %p780_p0 = scmp.ge.s32.totalorder %s855_s21, 1  ;;  %s855_s21 = sphi %s922_s21, %s23_s21  }
   0x2   : > { %p370_p1 = scmp.lt.s32.totalorder %s855_s21, 3 }
   0x4   : > { %p371_p2 = pnand %p780_p0, %p370_p1 }
   0x5   : > { %s781_s29 = sshll.u32 (!%p371_p2), %s776_s22, 1 }
   0x6   : > { %374 = sbr.rel (%p371_p2) target bundleno = 167 (0xa7), region = 56  ;;  %p428_p3 = scmp.lt.s32.totalorder (!%p371_p2), %s781_s29, 3 }
   0xb   : > { %v830_v0 = vld [vmem:[%s993_s1 + $0x8] sm:$0xff]  ;;  %v829_v4 = vld [vmem:[%s993_s1] sm:$0xff]  ;;  %s1006_s29 = smov (!%p428_p3, %s781_s29), 3  ;;  %vm481_vm0 = vcmask 261120   ;;  %vm501_vm1 = vcmask 257024  }
   0xc   : > { %v832_v1 = vld [vmem:[%s994_s2 + $0x8] sm:$0xff]  ;;  %491 = vmatpush.bf16.msra.mxu0 %v830_v0  ;;  %v831_v5 = vld [vmem:[%s994_s2] sm:$0xff]  ;;  %s782_s23 = sshll.u32 %s1006_s29, 3  ;;  %s784_s14 = sshll.u32 %s1006_s29, 2 }
   0xd   : > { %v834_v2 = vld [vmem:[%s995_s3 + $0x8] sm:$0xff]  ;;  %530 = vmatpush.bf16.msra.mxu1 %v832_v1  ;;  %v833_v6 = vld [vmem:[%s995_s3] sm:$0xff]  ;;  %s431_s26 = scalar_lea.vmem %s992_s0, %s782_s23  ;;  %s437_s17 = scalar_lea.vmem %s1001_s9, %s784_s14 }
   0xe   : > { %v836_v3 = vld [vmem:[%s996_s4 + $0x8] sm:$0xff]  ;;  %568 = vmatpush.bf16.msra.mxu2 %v834_v2  ;;  %v835_v7 = vld [vmem:[%s996_s4] sm:$0xff]  ;;  %s443_s20 = scalar_lea.vmem %s1002_s10, %s784_s14  ;;  %s449_s27 = scalar_lea.vmem %s1003_s11, %s784_s14 }
   0xf   : > { %606 = vmatpush.bf16.msra.mxu3 %v836_v3  ;;  %v458_v8 = vld [vmem:[%s431_s26] sm:$0xff]  ;;  %v459_v9 = vld [vmem:[%s431_s26 + $0x8] sm:$0xff]  ;;  %s455_s13 = scalar_lea.vmem %s1004_s12, %s784_s14 }
  0x10   : > { %492 = vmatpush.bf16.msra.mxu0 %v829_v4  ;;  %v460_v10 = vpack.c.bf16 %v459_v9, %v458_v8  ;;  %v845_v11 = vld [vmem:[%s997_s5] ss:$0 sm:$0xff] }
  0x11   : > { %531 = vmatpush.bf16.msra.mxu1 %v831_v5  ;;  %v846_v12 = vld [vmem:[%s998_s6] ss:$0 sm:$0xff] }
  0x12   : > { %569 = vmatpush.bf16.msra.mxu2 %v833_v6  ;;  %v847_v19 = vld [vmem:[%s999_s7] ss:$0 sm:$0xff] }
  0x13   : > { %607 = vmatpush.bf16.msra.mxu3 %v835_v7  ;;  %799 = vmatmul.msk.bf16.vlgmr.msra.gmra.mxu0 %vm481_vm0, %v460_v10  ;;  %v848_v20 = vld [vmem:[%s1000_s8] ss:$0 sm:$0xff] }
  0x14   : > { %808 = vmatmul.msk.bf16.vlgmr.msra.gmra.mxu1 %vm481_vm0, %v460_v10 }
  0x15   : > { %817 = vmatmul.msk.bf16.vlgmr.msra.gmra.mxu2 %vm481_vm0, %v460_v10 }
  0x16   : > { %826 = vmatmul.msk.bf16.vlgmr.msra.gmra.mxu3 %vm481_vm0, %v460_v10 }
  0x90   : > { %v494_v13 = vpop.f32.mrf.mxu0 }
  0x91   : > { %v533_v14 = vpop.f32.mrf.mxu1  ;;  %v495_v15 = vadd.f32 %v845_v11, %v494_v13 }
  0x92   : > { %v534_v16 = vadd.f32 %v846_v12, %v533_v14 }
  0x93   : > { %v499_v17 = vpack.c.bf16 %v495_v15, %v495_v15 }
  0x94   : > { %v538_v18 = vpack.c.bf16 %v534_v16, %v534_v16 }
  0x95   : > { %502 = vst.msk [vmem:[%s437_s17] sm:$0xf] %vm501_vm1, %v499_v17 }
  0x96   : > { %540 = vst.msk [vmem:[%s443_s20] sm:$0xf] %vm501_vm1, %v538_v18 }
  0x98   : > { %v571_v21 = vpop.f32.mrf.mxu2  ;;  %v496_v25 = vpop.f32.mrf.mxu0 }
  0x99   : > { %v609_v22 = vpop.f32.mrf.mxu3  ;;  %v572_v23 = vadd.f32 %v847_v19, %v571_v21  ;;  %v535_v26 = vpop.f32.mrf.mxu1  ;;  %v497_v27 = vadd.f32 %v845_v11, %v496_v25 }
  0x9a   : > { %v610_v24 = vadd.f32 %v848_v20, %v609_v22  ;;  %v536_v28 = vadd.f32 %v846_v12, %v535_v26 }
  0x9b   : > { %v576_v29 = vpack.c.bf16 %v572_v23, %v572_v23  ;;  %v500_v31 = vpack.c.bf16 %v497_v27, %v497_v27 }
  0x9c   : > { %v614_v30 = vpack.c.bf16 %v610_v24, %v610_v24  ;;  %v539_v32 = vpack.c.bf16 %v536_v28, %v536_v28 }
  0x9d   : > { %578 = vst.msk [vmem:[%s449_s27] sm:$0xf] %vm501_vm1, %v576_v29 }
  0x9e   : > { %616 = vst.msk [vmem:[%s455_s13] sm:$0xf] %vm501_vm1, %v614_v30 }
  0x9f   : > { %503 = vst.msk [vmem:[%s437_s17 + $0x4] sm:$0xf] %vm501_vm1, %v500_v31 }
  0xa0   : > { %541 = vst.msk [vmem:[%s443_s20 + $0x4] sm:$0xf] %vm501_vm1, %v539_v32  ;;  %v573_v33 = vpop.f32.mrf.mxu2 }
  0xa1   : > { %v611_v34 = vpop.f32.mrf.mxu3  ;;  %v574_v35 = vadd.f32 %v847_v19, %v573_v33 }
  0xa2   : > { %v612_v36 = vadd.f32 %v848_v20, %v611_v34 }
  0xa3   : > { %v577_v37 = vpack.c.bf16 %v574_v35, %v574_v35 }
  0xa4   : > { %v615_v38 = vpack.c.bf16 %v612_v36, %v612_v36 }
  0xa5   : > { %579 = vst.msk [vmem:[%s449_s27 + $0x4] sm:$0xf] %vm501_vm1, %v577_v37 }
  0xa6   : > { %617 = vst.msk [vmem:[%s455_s13 + $0x4] sm:$0xf] %vm501_vm1, %v615_v38 }
  0xa7 PF: > { %s23_s21 = sadd.s32 1, %s855_s21  }
  0xa8   : > { %p20_p4 = scmp.ge.s32.totalorder %s23_s21, 4  }
  0xaa   :  { %22 = sbr.rel (!%p20_p4) target bundleno = 1 (0x1), region = 122 }

// kernel: decoder_forward_pallas.15
= control target key start
LH: loop header
LB: loop body
LE: loop exit
PB: predicated region body
PF: predicated region fallthrough
CT: control target
= control target key end

     0   :  { %s757_s12 = smov 0   ;;  %s759_s13 = smov 0   ;;  %s839_s0 = inlined_call_operand.vmem [shape: bf16[2,64,8], index: 0, kind: input, shape index: {}]   ;;  %s840_s1 = inlined_call_operand.vmem [shape: bf16[2,64,8], index: 1, kind: input, shape index: {}]   ;;  %s841_s2 = inlined_call_operand.vmem [shape: bf16[2,64,8], index: 2, kind: input, shape index: {}]   ;;  %s842_s3 = inlined_call_operand.vmem [shape: bf16[2,64,8], index: 3, kind: output, shape index: {}]  }
   0x1   :  { %s761_s14 = smov 0   ;;  %s763_s15 = smov 0  }
   0x2   :  { %s765_s16 = smov 0  }
   0x3 LB: > { %s28_s17 = sadd.s32 1, %s724_s14  ;;  %s32_s18 = sadd.s32 1, %s728_s15  ;;  %s732_s16 = sphi %s765_s16, %s13_s16   ;;  %s728_s15 = sphi %s763_s15, %s846_s15   ;;  %s724_s14 = sphi %s761_s14, %s845_s14   ;;  %s720_s13 = sphi %s759_s13, %s844_s13   ;;  %s716_s12 = sphi %s757_s12, %s843_s12  }
   0x4   : > { %p30_p0 = scmp.ge.s32.totalorder %s28_s17, 4  ;;  %p604_p1 = scmp.ge.s32.totalorder %s732_s16, 1 }
   0x5   : > { %p207_p2 = scmp.lt.s32.totalorder %s732_s16, 9 }
   0x6   : > { %s848_s17 = smov (%p30_p0, %s28_s17), 0  ;;  %s850_s18 = smov (!%p30_p0, %s32_s18), %s728_s15 }
   0x7   : > { %p208_p3 = pnand %p604_p1, %p207_p2  ;;  %p34_p4 = scmp.ge.s32.totalorder %s850_s18, 2 }
   0x8   : > { %s605_s19 = sshll.u32 (!%p208_p3), %s716_s12, 1  ;;  %p260_p5 = scmp.lt.s32.totalorder (!%p208_p3), %s720_s13, 1 }
   0x9   : > { %s852_s18 = smov (%p34_p4, %s850_s18), 0  ;;  %211 = sbr.rel (%p208_p3) target bundleno = 661 (0x295), region = 32 }
   0xa   : > { %p262_p6 = scmp.lt.s32.totalorder (!%p208_p3), %s605_s19, 7 }
   0xe   : > { %vm313_vm0 = vcmask 64512   ;;  %v734_v0 = vmov 0.0   ;;  %s854_s13 = smov (!%p260_p5, %s720_s13), 1  ;;  %s856_s19 = smov (!%p262_p6, %s605_s19), 7  ;;  %vm308_vm1 = vcmask 7168   ;;  %vm355_vm2 = vcmask 130048  }
   0xf   : > { %314 = vst.msk [vmem:[#allocation4] sm:$0xff] %vm313_vm0, %v734_v0  ;;  %s606_s20 = sshll.u32 %s854_s13, 3  ;;  %v735_v4 = vmov -1e+30   ;;  %v736_v9 = vmov 0   ;;  %vm468_vm3 = vcmask 60416  }
  0x10   : > { %315 = vst.msk [vmem:[#allocation4 + $0x8] sm:$0xff] %vm313_vm0, %v734_v0  ;;  %s265_s21 = sadd.s32 %s606_s20, %s856_s19  ;;  %679 = vset.pattern.permute.xlu1 %v736_v9  ;;  %680 = vset.pattern.permute.xlu0 %v736_v9 }
  0x11   : > { %s789_s22 = sshll.u32 %s265_s21, 2  ;;  %309 = vst.msk [vmem:[#allocation2] sm:$0xff] %vm308_vm1, %v735_v4  ;;  %681 = vset.pattern.permute.xlu2 %v736_v9 }
  0x12   : > { %s278_s25 = scalar_lea.vmem %s840_s1, %s789_s22  ;;  %s267_s28 = scalar_lea.vmem %s839_s0, %s789_s22  ;;  %310 = vst.msk [vmem:[#allocation2 + $0x8] sm:$0xff] %vm308_vm1, %v735_v4 }
  0x13   : > { %v634_v1 = vld [vmem:[%s278_s25] sm:$0xff]  ;;  %311 = vst.msk [vmem:[#allocation3] sm:$0xff] %vm308_vm1, %v734_v0  ;;  %s290_s4 = scalar_lea.vmem %s841_s2, %s789_s22  ;;  %s301_s7 = scalar_lea.vmem %s842_s3, %s789_s22 }
  0x14   : > { %v337_v2 = vsel %vm313_vm0, %v634_v1, 0  ;;  %v633_v3 = vld [vmem:[%s267_s28] sm:$0xff]  ;;  %312 = vst.msk [vmem:[#allocation3 + $0x8] sm:$0xff] %vm308_vm1, %v734_v0 }
  0x15   : > { %346 = vmatpush.bf16.xpose.msra.mxu0 %v337_v2  ;;  %v635_v22 = vld [vmem:[%s290_s4] sm:$0xff] }
  0x16   : > { %432 = vmatpush.bf16.msra.mxu1 %v635_v22  ;;  %v401_v43 = vld [vmem:[#allocation4] sm:$0xff] }
  0x17   : > { %v402_v50 = vld [vmem:[#allocation4 + $0x8] sm:$0xff] }
  0x18   : > { %v353_v10 = vld [vmem:[#allocation2] sm:$0xff] }
  0x19   : > { %v354_v15 = vld [vmem:[#allocation2 + $0x8] sm:$0xff] }
  0x1a   : > { %v386_v34 = vld [vmem:[#allocation3] sm:$0xff] }
  0x1b   : > { %v387_v38 = vld [vmem:[#allocation3 + $0x8] sm:$0xff] }
  0x1c   : > { %625 = vmatmul.msk.bf16.vlgmr.msra.gmra.mxu0 %vm313_vm0, %v633_v3 }
  0x99   : > { %v348_v5 = vpop.f32.mrf.mxu0 }
  0x9a   : > { %v356_v6 = vsel %vm355_vm2, %v348_v5, -inf }
  0x9b   : > { %357 = vmax.xlane.f32.xlu0 %v356_v6 }
  0xa1   : > { %v350_v7 = vpop.f32.mrf.mxu0 }
  0xa2   : > { %v359_v8 = vsel %vm355_vm2, %v350_v7, -inf }
  0xa3   : > { %360 = vmax.xlane.f32.xlu0 %v359_v8 }
 0x10e   : > { %v358_v11 = vpop.xlane.xlu0 %357 }
 0x10f   : > { %v362_v12 = vmax.f32 %v353_v10, %v358_v11 }
 0x111   : > { %v364_v13 = vsub.f32 %v353_v10, %v362_v12  ;;  %443 = vst.msk [vmem:[#allocation2] sm:$0xff] %vm308_vm1, %v362_v12  ;;  %372 = vperm.xlu1 %679, %v362_v12  }
 0x113   : > { %v366_v14 = vmul.f32 1.442695, %v364_v13 }
 0x115   : > { %682 = vpow2.f32 %v366_v14 }
 0x116   : > { %v361_v16 = vpop.xlane.xlu0 %360 }
 0x117   : > { %v363_v17 = vmax.f32 %v354_v15, %v361_v16 }
 0x119   : > { %v365_v18 = vsub.f32 %v354_v15, %v363_v17  ;;  %444 = vst.msk [vmem:[#allocation2 + $0x8] sm:$0xff] %vm308_vm1, %v363_v17  ;;  %377 = vperm.xlu1 %679, %v363_v17  }
 0x11b   : > { %v683_v19 = vpop.eup %682  ;;  %v368_v20 = vmul.f32 1.442695, %v365_v18 }
 0x11c   : > { %405 = vperm.xlu0 %680, %v683_v19   ;;  %v388_v35 = vmul.f32 %v683_v19, %v386_v34 }
 0x11d   : > { %684 = vpow2.f32 %v368_v20 }
 0x123   : > { %v685_v21 = vpop.eup %684 }
 0x124   : > { %410 = vperm.xlu1 %679, %v685_v21   ;;  %v389_v39 = vmul.f32 %v685_v21, %v387_v38 }
 0x183   : > { %v373_v23 = vpop.permute.xlu1 %372 }
 0x184   : > { %v380_v24 = vsub.f32 %v348_v5, %v373_v23 }
 0x186   : > { %v382_v25 = vmul.f32 1.442695, %v380_v24 }
 0x188   : > { %686 = vpow2.f32 %v382_v25 }
 0x18b   : > { %v378_v26 = vpop.permute.xlu1 %377 }
 0x18c   : > { %v381_v27 = vsub.f32 %v350_v7, %v378_v26 }
 0x18e   : > { %v687_v28 = vpop.eup %686  ;;  %v384_v29 = vmul.f32 1.442695, %v381_v27  ;;  %v406_v44 = vpop.permute.xlu0 %405 }
 0x18f   : > { %v390_v30 = vsel %vm355_vm2, %v687_v28, 0.0  ;;  %v413_v46 = vmul.f32 %v406_v44, %v401_v43 }
 0x190   : > { %688 = vpow2.f32 %v384_v29  ;;  %391 = vadd.xlane.f32.xlu2 %v390_v30 }
 0x196   : > { %v689_v31 = vpop.eup %688  ;;  %v411_v51 = vpop.permute.xlu1 %410 }
 0x197   : > { %v393_v32 = vsel %vm355_vm2, %v689_v31, 0.0  ;;  %v415_v33 = vpack.c.bf16 %v689_v31, %v687_v28  ;;  %v414_v53 = vmul.f32 %v411_v51, %v402_v50 }
 0x198   : > { %394 = vadd.xlane.f32.xlu2 %v393_v32 }
 0x199   : > { %630 = vmatmul.msk.bf16.vlgmr.msra.gmra.mxu1 %vm355_vm2, %v415_v33 }
 0x203   : > { %v392_v36 = vpop.xlane.xlu2 %391 }
 0x204   : > { %v396_v37 = vadd.f32 %v392_v36, %v388_v35 }
 0x206   : > { %399 = vst.msk [vmem:[#allocation3] sm:$0xff] %vm308_vm1, %v396_v37 }
 0x20b   : > { %v395_v40 = vpop.xlane.xlu2 %394 }
 0x20c   : > { %v397_v41 = vadd.f32 %v395_v40, %v389_v39 }
 0x20d   : > { %v450_v42 = vld [vmem:[#allocation3] sm:$0xff] }
 0x20e   : > { %400 = vst.msk [vmem:[#allocation3 + $0x8] sm:$0xff] %vm308_vm1, %v397_v41  ;;  %690 = vrcp.f32 %v450_v42 }
 0x214   : > { %v691_v45 = vpop.eup %690 }
 0x215   : > { %456 = vperm.xlu2 %681, %v691_v45   ;;  %v451_v47 = vld [vmem:[#allocation3 + $0x8] sm:$0xff] }
 0x216   : > { %v434_v48 = vpop.f32.mrf.mxu1  ;;  %692 = vrcp.f32 %v451_v47 }
 0x217   : > { %v439_v49 = vadd.f32 %v434_v48, %v413_v46 }
 0x219   : > { %441 = vst.msk [vmem:[#allocation4] sm:$0xff] %vm313_vm0, %v439_v49 }
 0x21c   : > { %v693_v52 = vpop.eup %692 }
 0x21d   : > { %461 = vperm.xlu1 %679, %v693_v52  }
 0x21e   : > { %v436_v54 = vpop.f32.mrf.mxu1 }
 0x21f   : > { %v440_v55 = vadd.f32 %v436_v54, %v414_v53 }
 0x220   : > { %v448_v57 = vld [vmem:[#allocation4] sm:$0xff] }
 0x221   : > { %442 = vst.msk [vmem:[#allocation4 + $0x8] sm:$0xff] %vm313_vm0, %v440_v55 }
 0x228   : > { %v449_v60 = vld [vmem:[#allocation4 + $0x8] sm:$0xff] }
 0x26f   : > { %v457_v56 = vpop.permute.xlu2 %456 }
 0x270   : > { %v464_v58 = vmul.f32 %v457_v56, %v448_v57 }
 0x272   : > { %v466_v59 = vpack.c.bf16 %v464_v58, %v464_v58 }
 0x274   : > { %469 = vst.msk [vmem:[%s301_s7] sm:$0xf] %vm468_vm3, %v466_v59 }
 0x28f   : > { %v462_v61 = vpop.permute.xlu1 %461 }
 0x290   : > { %v465_v62 = vmul.f32 %v462_v61, %v449_v60 }
 0x292   : > { %v467_v63 = vpack.c.bf16 %v465_v62, %v465_v62 }
 0x294   : > { %470 = vst.msk [vmem:[%s301_s7 + $0x4] sm:$0xf] %vm468_vm3, %v467_v63 }
 0x295 PF: > { %s13_s16 = sadd.s32 1, %s732_s16   ;;  %s843_s12 = smov %s724_s14 }
 0x296   : > { %p10_p7 = scmp.ge.s32.totalorder %s13_s16, 10   ;;  %s844_s13 = smov %s728_s15 }
 0x297   : > { %s845_s14 = smov %s848_s17  ;;  %s846_s15 = smov %s852_s18 }
 0x298   :  { %12 = sbr.rel (!%p10_p7) target bundleno = 3 (0x3), region = 76 }

// kernel: decoder_forward_pallas.17
= control target key start
LH: loop header
LB: loop body
LE: loop exit
PB: predicated region body
PF: predicated region fallthrough
CT: control target
= control target key end

     0   :  { %s727_s30 = smov 0   ;;  %s783_s0 = inlined_call_operand.vmem [shape: f32[32,32], index: 0, kind: input, shape index: {}]   ;;  %s784_s1 = inlined_call_operand.vmem [shape: bf16[32,32], index: 1, kind: input, shape index: {}]   ;;  %s785_s2 = inlined_call_operand.vmem [shape: bf16[32,32], index: 2, kind: input, shape index: {}]   ;;  %s786_s3 = inlined_call_operand.vmem [shape: bf16[32,32], index: 3, kind: input, shape index: {}]   ;;  %s787_s4 = inlined_call_operand.vmem [shape: f32[1,32], index: 4, kind: input, shape index: {}]   ;;  %s788_s5 = inlined_call_operand.vmem [shape: f32[1,32], index: 5, kind: input, shape index: {}]   ;;  %s789_s6 = inlined_call_operand.vmem [shape: f32[1,32], index: 6, kind: input, shape index: {}]   ;;  %s790_s7 = inlined_call_operand.vmem [shape: bf16[32,32], index: 7, kind: output, shape index: {0}]   ;;  %s791_s8 = inlined_call_operand.vmem [shape: bf16[32,32], index: 8, kind: output, shape index: {1}]   ;;  %s792_s9 = inlined_call_operand.vmem [shape: bf16[32,32], index: 9, kind: output, shape index: {2}]  }
   0x1 LB: > { %s610_s10 = sadd.s32 4294967295, %s675_s30   ;;  %p614_p0 = scmp.ge.s32.totalorder %s675_s30, 1  ;;  %s675_s30 = sphi %s727_s30, %s20_s30  }
   0x2   : > { %p293_p1 = scmp.lt.s32.totalorder %s675_s30, 3 }
   0x4   : > { %p294_p2 = pnand %p614_p0, %p293_p1 }
   0x5   : > { %s615_s17 = sshll.u32 (!%p294_p2), %s610_s10, 1 }
   0x6   : > { %297 = sbr.rel (%p294_p2) target bundleno = 166 (0xa6), region = 48  ;;  %p340_p3 = scmp.lt.s32.totalorder (!%p294_p2), %s615_s17, 3 }
   0xb   : > { %v653_v0 = vld [vmem:[%s784_s1 + $0x8] sm:$0xff]  ;;  %v652_v3 = vld [vmem:[%s784_s1] sm:$0xff]  ;;  %s794_s17 = smov (!%p340_p3, %s615_s17), 3  ;;  %vm387_vm0 = vcmask 261120   ;;  %vm407_vm1 = vcmask 257024  }
   0xc   : > { %v655_v1 = vld [vmem:[%s785_s2 + $0x8] sm:$0xff]  ;;  %397 = vmatpush.bf16.msra.mxu0 %v653_v0  ;;  %v654_v4 = vld [vmem:[%s785_s2] sm:$0xff]  ;;  %s616_s24 = sshll.u32 %s794_s17, 3  ;;  %s618_s12 = sshll.u32 %s794_s17, 2 }
   0xd   : > { %v657_v2 = vld [vmem:[%s786_s3 + $0x8] sm:$0xff]  ;;  %436 = vmatpush.bf16.msra.mxu1 %v655_v1  ;;  %v656_v5 = vld [vmem:[%s786_s3] sm:$0xff]  ;;  %s343_s27 = scalar_lea.vmem %s783_s0, %s616_s24  ;;  %s349_s15 = scalar_lea.vmem %s790_s7, %s618_s12 }
   0xe   : > { %474 = vmatpush.bf16.msra.mxu2 %v657_v2  ;;  %v364_v6 = vld [vmem:[%s343_s27] sm:$0xff]  ;;  %v365_v7 = vld [vmem:[%s343_s27 + $0x8] sm:$0xff]  ;;  %s355_s19 = scalar_lea.vmem %s791_s8, %s618_s12  ;;  %s361_s23 = scalar_lea.vmem %s792_s9, %s618_s12 }
   0xf   : > { %v366_v8 = vpack.c.bf16 %v365_v7, %v364_v6  ;;  %v666_v9 = vld [vmem:[%s787_s4] ss:$0 sm:$0xff] }
  0x10   : > { %398 = vmatpush.bf16.msra.mxu0 %v652_v3  ;;  %v667_v10 = vld [vmem:[%s788_s5] ss:$0 sm:$0xff] }
  0x11   : > { %437 = vmatpush.bf16.msra.mxu1 %v654_v4  ;;  %v668_v17 = vld [vmem:[%s789_s6] ss:$0 sm:$0xff] }
  0x12   : > { %475 = vmatpush.bf16.msra.mxu2 %v656_v5 }
  0x13   : > { %631 = vmatmul.msk.bf16.vlgmr.msra.gmra.mxu0 %vm387_vm0, %v366_v8 }
  0x14   : > { %640 = vmatmul.msk.bf16.vlgmr.msra.gmra.mxu1 %vm387_vm0, %v366_v8 }
  0x15   : > { %649 = vmatmul.msk.bf16.vlgmr.msra.gmra.mxu2 %vm387_vm0, %v366_v8 }
  0x90   : > { %v400_v11 = vpop.f32.mrf.mxu0 }
  0x91   : > { %v439_v12 = vpop.f32.mrf.mxu1  ;;  %v401_v13 = vadd.f32 %v666_v9, %v400_v11 }
  0x92   : > { %v440_v14 = vadd.f32 %v667_v10, %v439_v12 }
  0x93   : > { %v405_v15 = vpack.c.bf16 %v401_v13, %v401_v13 }
  0x94   : > { %v444_v16 = vpack.c.bf16 %v440_v14, %v440_v14 }
  0x95   : > { %408 = vst.msk [vmem:[%s349_s15] sm:$0xf] %vm407_vm1, %v405_v15 }
  0x96   : > { %446 = vst.msk [vmem:[%s355_s19] sm:$0xf] %vm407_vm1, %v444_v16 }
  0x98   : > { %v477_v18 = vpop.f32.mrf.mxu2  ;;  %v402_v20 = vpop.f32.mrf.mxu0 }
  0x99   : > { %v478_v19 = vadd.f32 %v668_v17, %v477_v18  ;;  %v441_v21 = vpop.f32.mrf.mxu1  ;;  %v403_v22 = vadd.f32 %v666_v9, %v402_v20 }
  0x9a   : > { %v442_v23 = vadd.f32 %v667_v10, %v441_v21 }
  0x9b   : > { %v482_v24 = vpack.c.bf16 %v478_v19, %v478_v19  ;;  %v406_v25 = vpack.c.bf16 %v403_v22, %v403_v22 }
  0x9c   : > { %v445_v26 = vpack.c.bf16 %v442_v23, %v442_v23 }
  0x9d   : > { %484 = vst.msk [vmem:[%s361_s23] sm:$0xf] %vm407_vm1, %v482_v24 }
  0x9e   : > { %409 = vst.msk [vmem:[%s349_s15 + $0x4] sm:$0xf] %vm407_vm1, %v406_v25 }
  0x9f   : > { %447 = vst.msk [vmem:[%s355_s19 + $0x4] sm:$0xf] %vm407_vm1, %v445_v26 }
  0xa0   : > { %v479_v27 = vpop.f32.mrf.mxu2 }
  0xa1   : > { %v480_v28 = vadd.f32 %v668_v17, %v479_v27 }
  0xa3   : > { %v483_v29 = vpack.c.bf16 %v480_v28, %v480_v28 }
  0xa5   : > { %485 = vst.msk [vmem:[%s361_s23 + $0x4] sm:$0xf] %vm407_vm1, %v483_v29 }
  0xa6 PF: > { %s20_s30 = sadd.s32 1, %s675_s30  }
  0xa7   : > { %p17_p4 = scmp.ge.s32.totalorder %s20_s30, 4  }
  0xa9   :  { %19 = sbr.rel (!%p17_p4) target bundleno = 1 (0x1), region = 102 }

// kernel: decoder_forward_pallas.16
= control target key start
LH: loop header
LB: loop body
LE: loop exit
PB: predicated region body
PF: predicated region fallthrough
CT: control target
= control target key end

     0   :  { %s936_s21 = smov 0   ;;  %s1031_s0 = inlined_call_operand.vmem [shape: bf16[32,32], index: 0, kind: input, shape index: {}]   ;;  %s1032_s1 = inlined_call_operand.vmem [shape: f32[32,32], index: 1, kind: input, shape index: {}]   ;;  %s1033_s2 = inlined_call_operand.vmem [shape: bf16[32,32], index: 2, kind: input, shape index: {}]   ;;  %s1034_s3 = inlined_call_operand.vmem [shape: f32[1,32], index: 3, kind: input, shape index: {}]   ;;  %s1035_s4 = inlined_call_operand.vmem [shape: f32[1,32], index: 4, kind: input, shape index: {}]   ;;  %s1036_s5 = inlined_call_operand.vmem [shape: f32[1,32], index: 5, kind: input, shape index: {}]   ;;  %s1037_s6 = inlined_call_operand.vmem [shape: bf16[32,64], index: 6, kind: input, shape index: {}]   ;;  %s1038_s7 = inlined_call_operand.vmem [shape: f32[1,64], index: 7, kind: input, shape index: {}]   ;;  %s1039_s8 = inlined_call_operand.vmem [shape: bf16[64,32], index: 8, kind: input, shape index: {}]   ;;  %s1040_s9 = inlined_call_operand.vmem [shape: f32[1,32], index: 9, kind: input, shape index: {}]   ;;  %s1041_s10 = inlined_call_operand.vmem [shape: f32[1,32], index: 10, kind: input, shape index: {}]   ;;  %s1042_s11 = inlined_call_operand.vmem [shape: f32[1,32], index: 11, kind: input, shape index: {}]   ;;  %s1043_s12 = inlined_call_operand.vmem [shape: f32[32,32], index: 12, kind: output, shape index: {}]  }
   0x1 LB: > { %s775_s22 = sadd.s32 4294967295, %s868_s21   ;;  %p779_p0 = scmp.ge.s32.totalorder %s868_s21, 1  ;;  %s868_s21 = sphi %s936_s21, %s22_s21  }
   0x2   : > { %p374_p1 = scmp.lt.s32.totalorder %s868_s21, 3 }
   0x4   : > { %p375_p2 = pnand %p779_p0, %p374_p1 }
   0x5   : > { %s780_s25 = sshll.u32 (!%p375_p2), %s775_s22, 1 }
   0x6   : > { %378 = sbr.rel (%p375_p2) target bundleno = 980 (0x3d4), region = 68  ;;  %p422_p3 = scmp.lt.s32.totalorder (!%p375_p2), %s780_s25, 3 }
   0xb   : > { %v829_v0 = vld [vmem:[%s1033_s2 + $0x8] sm:$0xff]  ;;  %v828_v1 = vld [vmem:[%s1033_s2] sm:$0xff]  ;;  %s1045_s25 = smov (!%p422_p3, %s780_s25), 3  ;;  %vm467_vm0 = vcmask 261120   ;;  %v870_v14 = vmov 32.0   ;;  %v835_v62 = vld [vmem:[%s1039_s8 + $0x18] sm:$0xff] }
   0xc   : > { %477 = vmatpush.bf16.msra.mxu0 %v829_v0  ;;  %s781_s28 = sshll.u32 %s1045_s25, 2  ;;  %s783_s14 = sshll.u32 %s1045_s25, 3  ;;  %v845_v3 = vld [vmem:[%s1034_s3] ss:$0 sm:$0xff]  ;;  %852 = vrcp.f32 %v870_v14  ;;  %v831_v31 = vld [vmem:[%s1037_s6 + $0x8] sm:$0xff]  ;;  %637 = vmatpush.bf16.msra.mxu2 %v835_v62  ;;  %v834_v63 = vld [vmem:[%s1039_s8 + $0x10] sm:$0xff] }
   0xd   : > { %s425_s13 = scalar_lea.vmem %s1031_s0, %s781_s28  ;;  %s431_s19 = scalar_lea.vmem %s1032_s1, %s783_s14  ;;  %582 = vmatpush.bf16.msra.mxu1 %v831_v31  ;;  %v830_v33 = vld [vmem:[%s1037_s6] sm:$0xff]  ;;  %v833_v0 = vld [vmem:[%s1039_s8 + $0x8] sm:$0xff]  ;;  %vm629_vm8 = vcmask 523264  }
   0xe   : > { %v827_v2 = vld [vmem:[%s425_s13] sm:$0xff]  ;;  %v486_v10 = vld [vmem:[%s431_s19 + $0x8] sm:$0xff]  ;;  %s437_s16 = scalar_lea.vmem %s1043_s12, %s783_s14 }
   0xf   : > { %v485_v5 = vld [vmem:[%s431_s19] sm:$0xff] }
  0x10   : > { %478 = vmatpush.bf16.msra.mxu0 %v828_v1  ;;  %v846_v52 = vld [vmem:[%s1035_s4] ss:$0 sm:$0xff]  ;;  %638 = vmatpush.bf16.msra.mxu2 %v834_v63 }
  0x11   : > { %583 = vmatpush.bf16.msra.mxu1 %v830_v33  ;;  %v847_v57 = vld [vmem:[%s1036_s5] ss:$0 sm:$0xff] }
  0x12   : > { %v853_v15 = vpop.eup %852  ;;  %v832_v1 = vld [vmem:[%s1039_s8] sm:$0xff] }
  0x13   : > { %798 = vmatmul.msk.bf16.vlgmr.msra.gmra.mxu0 %vm467_vm0, %v827_v2  ;;  %v498_v16 = vmul.f32 32.0, %v853_v15  ;;  %vm502_vm1 = vweird.f32 %v853_v15 }
  0x14   : > { %639 = vmatpush.bf16.msra.mxu2 %v833_v0 }
  0x15   : > { %v499_v17 = vsub.f32 1.0, %v498_v16 }
  0x17   : > { %v500_v18 = vmul.f32 %v853_v15, %v499_v17 }
  0x18   : > { %640 = vmatpush.bf16.msra.mxu2 %v832_v1 }
  0x19   : > { %v501_v19 = vadd.f32 %v853_v15, %v500_v18 }
  0x1b   : > { %v968_v20 = vsel %vm502_vm1, %v853_v15, %v501_v19 }
  0x90   : > { %v480_v4 = vpop.f32.mrf.mxu0 }
  0x91   : > { %v481_v6 = vadd.f32 %v845_v3, %v480_v4 }
  0x93   : > { %v487_v7 = vadd.f32 %v485_v5, %v481_v6 }
  0x95   : > { %v491_v8 = vsel %vm467_vm0, %v487_v7, 0.0 }
  0x96   : > { %492 = vadd.xlane.f32.xlu0 %v491_v8 }
  0x98   : > { %v482_v9 = vpop.f32.mrf.mxu0 }
  0x99   : > { %v483_v11 = vadd.f32 %v845_v3, %v482_v9  ;;  %v848_v3 = vld [vmem:[%s1038_s7] ss:$0 sm:$0xff] }
  0x9b   : > { %v488_v12 = vadd.f32 %v486_v10, %v483_v11  ;;  %v849_v10 = vld [vmem:[%s1040_s9] ss:$0 sm:$0xff] }
  0x9d   : > { %v494_v13 = vsel %vm467_vm0, %v488_v12, 0.0 }
  0x9e   : > { %495 = vadd.xlane.f32.xlu0 %v494_v13 }
 0x109   : > { %v493_v21 = vpop.xlane.xlu0 %492 }
 0x10a   : > { %v504_v22 = vmul.f32 %v968_v20, %v493_v21 }
 0x10c   : > { %v506_v23 = vsub.f32 %v487_v7, %v504_v22 }
 0x10e   : > { %v508_v24 = vmul.f32 %v506_v23, %v506_v23 }
 0x110   : > { %v510_v25 = vsel %vm467_vm0, %v508_v24, 0.0 }
 0x111   : > { %511 = vadd.xlane.f32.xlu1 %v510_v25  ;;  %v496_v26 = vpop.xlane.xlu0 %495 }
 0x112   : > { %v505_v27 = vmul.f32 %v968_v20, %v496_v26 }
 0x114   : > { %v507_v28 = vsub.f32 %v488_v12, %v505_v27 }
 0x116   : > { %v509_v29 = vmul.f32 %v507_v28, %v507_v28 }
 0x118   : > { %v513_v30 = vsel %vm467_vm0, %v509_v29, 0.0 }
 0x119   : > { %514 = vadd.xlane.f32.xlu1 %v513_v30 }
 0x184   : > { %v512_v32 = vpop.xlane.xlu1 %511 }
 0x185   : > { %v516_v34 = vmul.f32 %v512_v32, %v968_v20 }
 0x187   : > { %v518_v35 = vadd.f32 1e-05, %v516_v34 }
 0x189   : > { %854 = vrsqrt.f32 %v518_v35  ;;  %vm526_vm3 = vweird.f32 %v518_v35 }
 0x18c   : > { %v515_v36 = vpop.xlane.xlu1 %514 }
 0x18d   : > { %v517_v37 = vmul.f32 %v515_v36, %v968_v20 }
 0x18f   : > { %v855_v38 = vpop.eup %854  ;;  %v519_v39 = vadd.f32 1e-05, %v517_v37 }
 0x190   : > { %v521_v40 = vmul.f32 %v855_v38, %v518_v35  ;;  %vm527_vm2 = vweird.f32 %v855_v38 }
 0x191   : > { %856 = vrsqrt.f32 %v519_v39  ;;  %vm528_vm4 = vmor %vm526_vm3, %vm527_vm2  ;;  %vm536_vm6 = vweird.f32 %v519_v39 }
 0x192   : > { %v522_v41 = vmul.f32 %v855_v38, %v521_v40 }
 0x194   : > { %v523_v42 = vmul.f32 0.5, %v522_v41 }
 0x196   : > { %v524_v43 = vsub.f32 1.5, %v523_v42 }
 0x197   : > { %v857_v44 = vpop.eup %856 }
 0x198   : > { %v525_v45 = vmul.f32 %v855_v38, %v524_v43  ;;  %v531_v46 = vmul.f32 %v857_v44, %v519_v39  ;;  %vm537_vm5 = vweird.f32 %v857_v44 }
 0x199   : > { %vm538_vm7 = vmor %vm536_vm6, %vm537_vm5 }
 0x19a   : > { %v532_v47 = vmul.f32 %v857_v44, %v531_v46  ;;  %v529_v48 = vsel %vm528_vm4, %v855_v38, %v525_v45  ;;  %v851_v46 = vld [vmem:[%s1042_s11] ss:$0 sm:$0xff] }
 0x19b   : > { %v540_v51 = vmul.f32 %v529_v48, %v506_v23 }
 0x19c   : > { %v533_v49 = vmul.f32 0.5, %v532_v47 }
 0x19d   : > { %v545_v56 = vmul.f32 %v846_v52, %v540_v51 }
 0x19e   : > { %v534_v50 = vsub.f32 1.5, %v533_v49 }
 0x19f   : > { %v550_v59 = vadd.f32 %v847_v57, %v545_v56 }
 0x1a0   : > { %v535_v53 = vmul.f32 %v857_v44, %v534_v50 }
 0x1a2   : > { %v539_v54 = vsel %vm538_vm7, %v857_v44, %v535_v53  ;;  %v850_v44 = vld [vmem:[%s1041_s10] ss:$0 sm:$0xff] }
 0x1a3   : > { %v541_v55 = vmul.f32 %v539_v54, %v507_v28 }
 0x1a5   : > { %v546_v58 = vmul.f32 %v846_v52, %v541_v55 }
 0x1a7   : > { %v551_v60 = vadd.f32 %v847_v57, %v546_v58 }
 0x1a9   : > { %v552_v61 = vpack.c.bf16 %v551_v60, %v550_v59 }
 0x1ab   : > { %807 = vmatmul.msk.bf16.vlgmr.msra.gmra.mxu1 %vm467_vm0, %v552_v61 }
 0x228   : > { %v585_v2 = vpop.f32.mrf.mxu1 }
 0x229   : > { %v586_v4 = vadd.f32 %v848_v3, %v585_v2 }
 0x22b   : > { %v590_v7 = vmax.f32 %v586_v4, 0.0 }
 0x230   : > { %v587_v5 = vpop.f32.mrf.mxu1 }
 0x231   : > { %v588_v6 = vadd.f32 %v848_v3, %v587_v5 }
 0x233   : > { %v591_v8 = vmax.f32 %v588_v6, 0.0 }
 0x235   : > { %v592_v9 = vpack.c.bf16 %v591_v8, %v590_v7 }
 0x237   : > { %824 = vmatmul.msk.bf16.vlgmr.msra.gmra.mxu2 %vm629_vm8, %v592_v9 }
 0x2ba   : > { %v642_v11 = vpop.f32.mrf.mxu2 }
 0x2bb   : > { %v643_v12 = vadd.f32 %v849_v10, %v642_v11 }
 0x2bd   : > { %v647_v13 = vadd.f32 %v643_v12, %v550_v59 }
 0x2bf   : > { %v651_v14 = vsel %vm467_vm0, %v647_v13, 0.0 }
 0x2c0   : > { %652 = vadd.xlane.f32.xlu2 %v651_v14 }
 0x2c2   : > { %v644_v15 = vpop.f32.mrf.mxu2 }
 0x2c3   : > { %v645_v16 = vadd.f32 %v849_v10, %v644_v15 }
 0x2c5   : > { %v648_v17 = vadd.f32 %v645_v16, %v551_v60 }
 0x2c7   : > { %v654_v18 = vsel %vm467_vm0, %v648_v17, 0.0 }
 0x2c8   : > { %655 = vadd.xlane.f32.xlu2 %v654_v18 }
 0x333   : > { %v653_v19 = vpop.xlane.xlu2 %652 }
 0x334   : > { %v657_v21 = vmul.f32 %v653_v19, %v968_v20 }
 0x336   : > { %v659_v22 = vsub.f32 %v647_v13, %v657_v21 }
 0x338   : > { %v661_v23 = vmul.f32 %v659_v22, %v659_v22 }
 0x33a   : > { %v663_v24 = vsel %vm467_vm0, %v661_v23, 0.0 }
 0x33b   : > { %664 = vadd.xlane.f32.xlu0 %v663_v24  ;;  %v656_v25 = vpop.xlane.xlu2 %655 }
 0x33c   : > { %v658_v26 = vmul.f32 %v656_v25, %v968_v20 }
 0x33e   : > { %v660_v27 = vsub.f32 %v648_v17, %v658_v26 }
 0x340   : > { %v662_v28 = vmul.f32 %v660_v27, %v660_v27 }
 0x342   : > { %v666_v29 = vsel %vm467_vm0, %v662_v28, 0.0 }
 0x343   : > { %667 = vadd.xlane.f32.xlu1 %v666_v29 }
 0x3ae   : > { %v665_v30 = vpop.xlane.xlu0 %664 }
 0x3af   : > { %v669_v31 = vmul.f32 %v665_v30, %v968_v20 }
 0x3b1   : > { %v671_v32 = vadd.f32 1e-05, %v669_v31 }
 0x3b3   : > { %858 = vrsqrt.f32 %v671_v32  ;;  %vm679_vm10 = vweird.f32 %v671_v32 }
 0x3b6   : > { %v668_v33 = vpop.xlane.xlu1 %667 }
 0x3b7   : > { %v670_v34 = vmul.f32 %v668_v33, %v968_v20 }
 0x3b9   : > { %v859_v35 = vpop.eup %858  ;;  %v672_v36 = vadd.f32 1e-05, %v670_v34 }
 0x3ba   : > { %v674_v37 = vmul.f32 %v859_v35, %v671_v32  ;;  %vm680_vm9 = vweird.f32 %v859_v35 }
 0x3bb   : > { %860 = vrsqrt.f32 %v672_v36  ;;  %vm681_vm11 = vmor %vm679_vm10, %vm680_vm9  ;;  %vm689_vm13 = vweird.f32 %v672_v36 }
 0x3bc   : > { %v675_v38 = vmul.f32 %v859_v35, %v674_v37 }
 0x3be   : > { %v676_v39 = vmul.f32 0.5, %v675_v38 }
 0x3c0   : > { %v677_v40 = vsub.f32 1.5, %v676_v39 }
 0x3c1   : > { %v861_v41 = vpop.eup %860 }
 0x3c2   : > { %v678_v42 = vmul.f32 %v859_v35, %v677_v40  ;;  %v684_v43 = vmul.f32 %v861_v41, %v672_v36  ;;  %vm690_vm12 = vweird.f32 %v861_v41 }
 0x3c3   : > { %vm691_vm14 = vmor %vm689_vm13, %vm690_vm12 }
 0x3c4   : > { %v682_v45 = vsel %vm681_vm11, %v859_v35, %v678_v42  ;;  %v685_v20 = vmul.f32 %v861_v41, %v684_v43 }
 0x3c5   : > { %v693_v47 = vmul.f32 %v682_v45, %v659_v22 }
 0x3c6   : > { %v686_v48 = vmul.f32 0.5, %v685_v20 }
 0x3c7   : > { %v698_v49 = vmul.f32 %v850_v44, %v693_v47 }
 0x3c8   : > { %v687_v50 = vsub.f32 1.5, %v686_v48 }
 0x3c9   : > { %v703_v51 = vadd.f32 %v851_v46, %v698_v49 }
 0x3ca   : > { %v688_v52 = vmul.f32 %v861_v41, %v687_v50 }
 0x3cb   : > { %705 = vst.msk [vmem:[%s437_s16] sm:$0xff] %vm467_vm0, %v703_v51 }
 0x3cc   : > { %v692_v53 = vsel %vm691_vm14, %v861_v41, %v688_v52 }
 0x3cd   : > { %v694_v54 = vmul.f32 %v692_v53, %v660_v27 }
 0x3cf   : > { %v699_v55 = vmul.f32 %v850_v44, %v694_v54 }
 0x3d1   : > { %v704_v56 = vadd.f32 %v851_v46, %v699_v55 }
 0x3d3   : > { %706 = vst.msk [vmem:[%s437_s16 + $0x8] sm:$0xff] %vm467_vm0, %v704_v56 }
 0x3d4 PF: > { %s22_s21 = sadd.s32 1, %s868_s21  }
 0x3d5   : > { %p19_p4 = scmp.ge.s32.totalorder %s22_s21, 4  }
 0x3d7   :  { %21 = sbr.rel (!%p19_p4) target bundleno = 1 (0x1), region = 101 }

// kernel: decoder_forward_pallas.21
= control target key start
LH: loop header
LB: loop body
LE: loop exit
PB: predicated region body
PF: predicated region fallthrough
CT: control target
= control target key end

     0   :  { %s1203_s0 = inlined_call_operand.vmem [shape: bf16[32,32], index: 0, kind: input, shape index: {}]   ;;  %s1204_s1 = inlined_call_operand.vmem [shape: f32[32,32], index: 1, kind: input, shape index: {}]   ;;  %s1205_s2 = inlined_call_operand.vmem [shape: bf16[32,32], index: 2, kind: input, shape index: {}]   ;;  %s1206_s3 = inlined_call_operand.vmem [shape: f32[1,32], index: 3, kind: input, shape index: {}]   ;;  %s1207_s4 = inlined_call_operand.vmem [shape: f32[1,32], index: 4, kind: input, shape index: {}]   ;;  %s1208_s5 = inlined_call_operand.vmem [shape: f32[1,32], index: 5, kind: input, shape index: {}]   ;;  %s1209_s6 = inlined_call_operand.vmem [shape: bf16[32,64], index: 6, kind: input, shape index: {}]   ;;  %s1210_s7 = inlined_call_operand.vmem [shape: f32[1,64], index: 7, kind: input, shape index: {}]   ;;  %s1211_s8 = inlined_call_operand.vmem [shape: bf16[64,32], index: 8, kind: input, shape index: {}]   ;;  %s1212_s9 = inlined_call_operand.vmem [shape: f32[1,32], index: 9, kind: input, shape index: {}]   ;;  %s1213_s10 = inlined_call_operand.vmem [shape: f32[1,32], index: 10, kind: input, shape index: {}]   ;;  %s1214_s11 = inlined_call_operand.vmem [shape: f32[1,32], index: 11, kind: input, shape index: {}]   ;;  %s1215_s12 = inlined_call_operand.hbm [shape: f32[32,32], index: 12, kind: output, shape index: {}]  }
   0x1   :  { %1216 = sst [smem:[#allocation6_spill]] %s1205_s2 }
   0x2   :  { %17 = vsyncpa [#allocation3], 0 }
   0x3   :  { %19 = vsyncpa [#allocation3 + $0x1], 0  ;;  %s1049_s21 = smov 0   ;;  %s1051_s22 = smov 0  }
   0x4   :  { %s1053_s23 = smov 0   ;;  %s1055_s24 = smov 0  }
   0x5 LB: > { %s1070_s25 = sadd.s32 4294967295, %s979_s24   ;;  %s795_s26 = sadd.s32 4294967294, %s979_s24   ;;  %s979_s24 = sphi %s1055_s24, %s1225_s24   ;;  %s975_s23 = sphi %s1053_s23, %s1224_s23   ;;  %s971_s22 = sphi %s1051_s22, %s1223_s22   ;;  %s967_s21 = sphi %s1049_s21, %s1222_s21  }
   0x6   : > { %s1074_s27 = sadd.s32 1, %s979_s24   ;;  %s294_s28 = sadd.s32 1, %s975_s23 }
   0x7   : > { %s291_s29 = ssub.s32 %s979_s24, %s1074_s27  ;;  %p304_p0 = scmp.ne.s32.totalorder %s975_s23, %s971_s22 }
   0x8   : > { %p292_p1 = scmp.eq.s32.totalorder %s291_s29, 0  ;;  %p305_p2 = scmp.eq.s32.totalorder %s1070_s25, 1 }
   0x9   : > { %p310_p3 = scmp.ne.s32.totalorder %s971_s22, %s967_s21  ;;  %p311_p4 = scmp.eq.s32.totalorder %s795_s26, 1 }
   0xa   : > { %s1085_s30 = scalar_select %p292_p1, %s975_s23, %s294_s28  }
   0xb   : > { %p1087_p5 = por %p305_p2, %p304_p0  ;;  %p1091_p6 = por %p311_p4, %p310_p3 }
   0xc   : > { %1217 = sst [smem:[#allocation5_spill]] %s1085_s30  ;;  %p798_p7 = scmp.ge.s32.totalorder %s979_s24, 1 }
   0xd   : > { %p377_p8 = scmp.lt.s32.totalorder %s979_s24, 3 }
   0xf   : > { %p378_p9 = pnand %p798_p7, %p377_p8 }
  0x10   : > { %s1220_s2 = sld [smem:[#allocation6_spill]] (!%p378_p9)  ;;  %s800_s17 = sshll.u32 (!%p378_p9), %s1070_s25, 1 }
  0x11   : > { %381 = sbr.rel (%p378_p9) target bundleno = 994 (0x3e2), region = 68  ;;  %p425_p10 = scmp.lt.s32.totalorder (!%p378_p9), %s800_s17, 3 }
  0x12   : > { %s421_s18 = sand.u32 (!%p378_p9), 1, %s971_s22   ;;  %s857_s26 = sshll.u32 (!%p378_p9), %s1070_s25, 4 }
  0x13   : > { %s706_s25 = scalar_lea.sflag (!%p378_p9), [#allocation3], %s421_s18  ;;  %s937_s28 = scalar_lea.hbm (!%p378_p9), %s1215_s12, 32 }
  0x16   : > { %v850_v0 = vld [vmem:[%s1220_s2 + $0x8] sm:$0xff]  ;;  %v849_v1 = vld [vmem:[%s1220_s2] sm:$0xff]  ;;  %s1227_s17 = smov (!%p425_p10, %s800_s17), 3  ;;  %vm465_vm0 = vcmask 261120   ;;  %v981_v14 = vmov 32.0   ;;  %v856_v62 = vld [vmem:[%s1211_s8 + $0x18] sm:$0xff] }
  0x17   : > { %475 = vmatpush.bf16.msra.mxu0 %v850_v0  ;;  %s801_s20 = sshll.u32 %s1227_s17, 2  ;;  %s803_s15 = sshll.u32 %s1227_s17, 3  ;;  %v900_v3 = vld [vmem:[%s1206_s3] ss:$0 sm:$0xff]  ;;  %907 = vrcp.f32 %v981_v14  ;;  %v852_v31 = vld [vmem:[%s1209_s6 + $0x8] sm:$0xff]  ;;  %635 = vmatpush.bf16.msra.mxu2 %v856_v62  ;;  %v855_v63 = vld [vmem:[%s1211_s8 + $0x10] sm:$0xff] }
  0x18   : > { %s428_s29 = scalar_lea.vmem %s1203_s0, %s801_s20  ;;  %s434_s2 = scalar_lea.vmem %s1204_s1, %s803_s15  ;;  %580 = vmatpush.bf16.msra.mxu1 %v852_v31  ;;  %v851_v33 = vld [vmem:[%s1209_s6] sm:$0xff]  ;;  %v854_v0 = vld [vmem:[%s1211_s8 + $0x8] sm:$0xff]  ;;  %vm627_vm8 = vcmask 523264  }
  0x19   : > { %v848_v2 = vld [vmem:[%s428_s29] sm:$0xff]  ;;  %v484_v10 = vld [vmem:[%s434_s2 + $0x8] sm:$0xff]  ;;  %s799_s20 = sshll.u32 %s421_s18, 4  ;;  %s717_s15 = scalar_lea.hbm %s1215_s12, %s857_s26 }
  0x1a   : > { %v483_v5 = vld [vmem:[%s434_s2] sm:$0xff]  ;;  %s423_s16 = scalar_lea.vmem [#allocation2], %s799_s20  ;;  %s720_s2 = sshll.u32 %s717_s15, 4  ;;  %s721_s2 = int_to_ptr.hbm [resolvable:$true] %s720_s2 }
  0x1b   : > { %476 = vmatpush.bf16.msra.mxu0 %v849_v1  ;;  %v901_v52 = vld [vmem:[%s1207_s4] ss:$0 sm:$0xff]  ;;  %636 = vmatpush.bf16.msra.mxu2 %v855_v63  ;;  %s718_s19 = sshll.u32 %s423_s16, 4  ;;  %s931_s30 = sshra.s32 %s721_s2, 4  ;;  %s719_s19 = int_to_ptr.vmem [resolvable:$true] %s718_s19  ;;  %s932_s30 = int_to_ptr.hbm [resolvable:$true] %s931_s30 }
  0x1c   : > { %581 = vmatpush.bf16.msra.mxu1 %v851_v33  ;;  %v902_v57 = vld [vmem:[%s1208_s5] ss:$0 sm:$0xff]  ;;  %s933_s17 = scalar_lea.hbm %s932_s30, 16  ;;  %p938_p0 = scmp.lt.s32.totalorder %s932_s30, %s1215_s12 }
  0x1d   : > { %v908_v15 = vpop.eup %907  ;;  %v853_v1 = vld [vmem:[%s1211_s8] sm:$0xff]  ;;  %p934_p11 = scmp.ne.s32.totalorder %s932_s30, %s933_s17  ;;  %p939_p1 = scmp.lt.s32.totalorder %s937_s28, %s933_s17 }
  0x1e   : > { %816 = vmatmul.msk.bf16.vlgmr.msra.gmra.mxu0 %vm465_vm0, %v848_v2  ;;  %v496_v16 = vmul.f32 32.0, %v908_v15  ;;  %vm500_vm1 = vweird.f32 %v908_v15 }
  0x1f   : > { %637 = vmatpush.bf16.msra.mxu2 %v854_v0  ;;  %p935_p12 = pnand %p934_p11, %p1087_p5  ;;  %p940_p2 = por %p939_p1, %p938_p0 }
  0x20   : > { %v497_v17 = vsub.f32 1.0, %v496_v16 }
  0x21   : > { %p936_p13 = pneg %p935_p12 }
  0x22   : > { %v498_v18 = vmul.f32 %v908_v15, %v497_v17 }
  0x23   : > { %638 = vmatpush.bf16.msra.mxu2 %v853_v1  ;;  %p941_p3 = pnand %p940_p2, %p936_p13 }
  0x24   : > { %v499_v19 = vadd.f32 %v908_v15, %v498_v18 }
  0x26   : > { %v1116_v20 = vsel %vm500_vm1, %v908_v15, %v499_v19 }
  0x9b   : > { %v478_v4 = vpop.f32.mrf.mxu0 }
  0x9c   : > { %v479_v6 = vadd.f32 %v900_v3, %v478_v4 }
  0x9e   : > { %v485_v7 = vadd.f32 %v483_v5, %v479_v6 }
  0xa0   : > { %v489_v8 = vsel %vm465_vm0, %v485_v7, 0.0 }
  0xa1   : > { %490 = vadd.xlane.f32.xlu0 %v489_v8 }
  0xa3   : > { %v480_v9 = vpop.f32.mrf.mxu0 }
  0xa4   : > { %v481_v11 = vadd.f32 %v900_v3, %v480_v9  ;;  %v903_v3 = vld [vmem:[%s1210_s7] ss:$0 sm:$0xff] }
  0xa6   : > { %v486_v12 = vadd.f32 %v484_v10, %v481_v11  ;;  %v904_v10 = vld [vmem:[%s1212_s9] ss:$0 sm:$0xff] }
  0xa8   : > { %v492_v13 = vsel %vm465_vm0, %v486_v12, 0.0 }
  0xa9   : > { %493 = vadd.xlane.f32.xlu0 %v492_v13 }
 0x114   : > { %v491_v21 = vpop.xlane.xlu0 %490 }
 0x115   : > { %v502_v22 = vmul.f32 %v1116_v20, %v491_v21 }
 0x117   : > { %v504_v23 = vsub.f32 %v485_v7, %v502_v22 }
 0x119   : > { %v506_v24 = vmul.f32 %v504_v23, %v504_v23 }
 0x11b   : > { %v508_v25 = vsel %vm465_vm0, %v506_v24, 0.0 }
 0x11c   : > { %509 = vadd.xlane.f32.xlu1 %v508_v25  ;;  %v494_v26 = vpop.xlane.xlu0 %493 }
 0x11d   : > { %v503_v27 = vmul.f32 %v1116_v20, %v494_v26 }
 0x11f   : > { %v505_v28 = vsub.f32 %v486_v12, %v503_v27 }
 0x121   : > { %v507_v29 = vmul.f32 %v505_v28, %v505_v28 }
 0x123   : > { %v511_v30 = vsel %vm465_vm0, %v507_v29, 0.0 }
 0x124   : > { %512 = vadd.xlane.f32.xlu1 %v511_v30 }
 0x18f   : > { %v510_v32 = vpop.xlane.xlu1 %509 }
 0x190   : > { %v514_v34 = vmul.f32 %v510_v32, %v1116_v20 }
 0x192   : > { %v516_v35 = vadd.f32 1e-05, %v514_v34 }
 0x194   : > { %909 = vrsqrt.f32 %v516_v35  ;;  %vm524_vm3 = vweird.f32 %v516_v35 }
 0x197   : > { %v513_v36 = vpop.xlane.xlu1 %512 }
 0x198   : > { %v515_v37 = vmul.f32 %v513_v36, %v1116_v20 }
 0x19a   : > { %v910_v38 = vpop.eup %909  ;;  %v517_v39 = vadd.f32 1e-05, %v515_v37 }
 0x19b   : > { %v519_v40 = vmul.f32 %v910_v38, %v516_v35  ;;  %vm525_vm2 = vweird.f32 %v910_v38 }
 0x19c   : > { %911 = vrsqrt.f32 %v517_v39  ;;  %vm526_vm4 = vmor %vm524_vm3, %vm525_vm2  ;;  %vm534_vm6 = vweird.f32 %v517_v39 }
 0x19d   : > { %v520_v41 = vmul.f32 %v910_v38, %v519_v40 }
 0x19f   : > { %v521_v42 = vmul.f32 0.5, %v520_v41 }
 0x1a1   : > { %v522_v43 = vsub.f32 1.5, %v521_v42 }
 0x1a2   : > { %v912_v44 = vpop.eup %911 }
 0x1a3   : > { %v523_v45 = vmul.f32 %v910_v38, %v522_v43  ;;  %v529_v46 = vmul.f32 %v912_v44, %v517_v39  ;;  %vm535_vm5 = vweird.f32 %v912_v44 }
 0x1a4   : > { %vm536_vm7 = vmor %vm534_vm6, %vm535_vm5 }
 0x1a5   : > { %v530_v47 = vmul.f32 %v912_v44, %v529_v46  ;;  %v527_v48 = vsel %vm526_vm4, %v910_v38, %v523_v45  ;;  %v906_v46 = vld [vmem:[%s1214_s11] ss:$0 sm:$0xff] }
 0x1a6   : > { %v538_v51 = vmul.f32 %v527_v48, %v504_v23 }
 0x1a7   : > { %v531_v49 = vmul.f32 0.5, %v530_v47 }
 0x1a8   : > { %v543_v56 = vmul.f32 %v901_v52, %v538_v51 }
 0x1a9   : > { %v532_v50 = vsub.f32 1.5, %v531_v49 }
 0x1aa   : > { %v548_v59 = vadd.f32 %v902_v57, %v543_v56 }
 0x1ab   : > { %v533_v53 = vmul.f32 %v912_v44, %v532_v50 }
 0x1ad   : > { %v537_v54 = vsel %vm536_vm7, %v912_v44, %v533_v53  ;;  %v905_v44 = vld [vmem:[%s1213_s10] ss:$0 sm:$0xff] }
 0x1ae   : > { %v539_v55 = vmul.f32 %v537_v54, %v505_v28 }
 0x1b0   : > { %v544_v58 = vmul.f32 %v901_v52, %v539_v55 }
 0x1b2   : > { %v549_v60 = vadd.f32 %v902_v57, %v544_v58 }
 0x1b4   : > { %v550_v61 = vpack.c.bf16 %v549_v60, %v548_v59 }
 0x1b6   : > { %825 = vmatmul.msk.bf16.vlgmr.msra.gmra.mxu1 %vm465_vm0, %v550_v61 }
 0x233   : > { %v583_v2 = vpop.f32.mrf.mxu1 }
 0x234   : > { %v584_v4 = vadd.f32 %v903_v3, %v583_v2 }
 0x236   : > { %v588_v7 = vmax.f32 %v584_v4, 0.0 }
 0x23b   : > { %v585_v5 = vpop.f32.mrf.mxu1 }
 0x23c   : > { %v586_v6 = vadd.f32 %v903_v3, %v585_v5 }
 0x23e   : > { %v589_v8 = vmax.f32 %v586_v6, 0.0 }
 0x240   : > { %v590_v9 = vpack.c.bf16 %v589_v8, %v588_v7 }
 0x242   : > { %842 = vmatmul.msk.bf16.vlgmr.msra.gmra.mxu2 %vm627_vm8, %v590_v9 }
 0x2c5   : > { %v640_v11 = vpop.f32.mrf.mxu2 }
 0x2c6   : > { %v641_v12 = vadd.f32 %v904_v10, %v640_v11 }
 0x2c8   : > { %v645_v13 = vadd.f32 %v641_v12, %v548_v59 }
 0x2ca   : > { %v649_v14 = vsel %vm465_vm0, %v645_v13, 0.0 }
 0x2cb   : > { %650 = vadd.xlane.f32.xlu2 %v649_v14 }
 0x2cd   : > { %v642_v15 = vpop.f32.mrf.mxu2 }
 0x2ce   : > { %v643_v16 = vadd.f32 %v904_v10, %v642_v15 }
 0x2d0   : > { %v646_v17 = vadd.f32 %v643_v16, %v549_v60 }
 0x2d2   : > { %v652_v18 = vsel %vm465_vm0, %v646_v17, 0.0 }
 0x2d3   : > { %653 = vadd.xlane.f32.xlu2 %v652_v18 }
 0x33e   : > { %v651_v19 = vpop.xlane.xlu2 %650 }
 0x33f   : > { %v655_v21 = vmul.f32 %v651_v19, %v1116_v20 }
 0x341   : > { %v657_v22 = vsub.f32 %v645_v13, %v655_v21 }
 0x343   : > { %v659_v23 = vmul.f32 %v657_v22, %v657_v22 }
 0x345   : > { %v661_v24 = vsel %vm465_vm0, %v659_v23, 0.0 }
 0x346   : > { %662 = vadd.xlane.f32.xlu0 %v661_v24  ;;  %v654_v25 = vpop.xlane.xlu2 %653 }
 0x347   : > { %v656_v26 = vmul.f32 %v654_v25, %v1116_v20 }
 0x349   : > { %v658_v27 = vsub.f32 %v646_v17, %v656_v26 }
 0x34b   : > { %v660_v28 = vmul.f32 %v658_v27, %v658_v27 }
 0x34d   : > { %v664_v29 = vsel %vm465_vm0, %v660_v28, 0.0 }
 0x34e   : > { %665 = vadd.xlane.f32.xlu1 %v664_v29 }
 0x3b9   : > { %v663_v30 = vpop.xlane.xlu0 %662 }
 0x3ba   : > { %v667_v31 = vmul.f32 %v663_v30, %v1116_v20 }
 0x3bc   : > { %v669_v32 = vadd.f32 1e-05, %v667_v31 }
 0x3be   : > { %913 = vrsqrt.f32 %v669_v32  ;;  %vm677_vm10 = vweird.f32 %v669_v32 }
 0x3c1   : > { %v666_v33 = vpop.xlane.xlu1 %665 }
 0x3c2   : > { %v668_v34 = vmul.f32 %v666_v33, %v1116_v20 }
 0x3c4   : > { %v914_v35 = vpop.eup %913  ;;  %v670_v36 = vadd.f32 1e-05, %v668_v34 }
 0x3c5   : > { %v672_v37 = vmul.f32 %v914_v35, %v669_v32  ;;  %vm678_vm9 = vweird.f32 %v914_v35 }
 0x3c6   : > { %915 = vrsqrt.f32 %v670_v36  ;;  %vm679_vm11 = vmor %vm677_vm10, %vm678_vm9  ;;  %vm687_vm13 = vweird.f32 %v670_v36 }
 0x3c7   : > { %v673_v38 = vmul.f32 %v914_v35, %v672_v37 }
 0x3c9   : > { %v674_v39 = vmul.f32 0.5, %v673_v38 }
 0x3cb   : > { %v675_v40 = vsub.f32 1.5, %v674_v39 }
 0x3cc   : > { %v916_v41 = vpop.eup %915 }
 0x3cd   : > { %v676_v42 = vmul.f32 %v914_v35, %v675_v40  ;;  %v682_v43 = vmul.f32 %v916_v41, %v670_v36  ;;  %vm688_vm12 = vweird.f32 %v916_v41 }
 0x3ce   : > { %vm689_vm14 = vmor %vm687_vm13, %vm688_vm12 }
 0x3cf   : > { %v680_v20 = vsel %vm679_vm11, %v914_v35, %v676_v42  ;;  %v683_v45 = vmul.f32 %v916_v41, %v682_v43 }
 0x3d0   : > { %v691_v47 = vmul.f32 %v680_v20, %v657_v22 }
 0x3d1   : > { %v684_v48 = vmul.f32 0.5, %v683_v45 }
 0x3d2   : > { %v696_v49 = vmul.f32 %v905_v44, %v691_v47 }
 0x3d3   : > { %v685_v50 = vsub.f32 1.5, %v684_v48 }
 0x3d4   : > { %v701_v51 = vadd.f32 %v906_v46, %v696_v49 }
 0x3d5   : > { %v686_v52 = vmul.f32 %v916_v41, %v685_v50 }
 0x3d6   : > { %703 = vst.msk [vmem:[%s423_s16] sm:$0xff] %vm465_vm0, %v701_v51 }
 0x3d7   : > { %v690_v53 = vsel %vm689_vm14, %v916_v41, %v686_v52 }
 0x3d8   : > { %v692_v54 = vmul.f32 %v690_v53, %v658_v27 }
 0x3da   : > { %v697_v55 = vmul.f32 %v905_v44, %v692_v54 }
 0x3dc   : > { %v702_v56 = vadd.f32 %v906_v46, %v697_v55 }
 0x3de   : > { %704 = vst.msk [vmem:[%s423_s16 + $0x8] sm:$0xff] %vm465_vm0, %v702_v56 }
 0x3df   : > { %944 = shalt.err (!%p941_p3)
}
 0x3e0   : > { %s982_s18 = smov 128   ;;  %s983_s16 = smov 8  }
 0x3e1   : > { %858 = dma.vmem_to_hbm [thread:$0]  (%p1087_p5), %s719_s19, 256, %s721_s2, %s706_s25, %s982_s18, %s982_s18, %s983_s16  }
 0x3e2 PF: > { %p864_p4 = scmp.ge.s32.totalorder %s979_s24, 2  ;;  %s735_s20 = sand.u32 1, %s967_s21  }
 0x3e3   : > { %s736_s26 = scalar_lea.sflag [#allocation3], %s735_s20 }
 0x3e4   : > { %p861_p7 = pnand %p864_p4, %p1091_p6 }
 0x3e6   : > { %p862_p8 = pneg %p861_p7 }
 0x3e8   : > { %962 = dma.done.wait (%p862_p8), %s736_s26, 256  }
 0x3e9   : > { %964 = vsyncadd (%p862_p8), %s736_s26, 4294967040  ;;  %s1221_s30 = sld [smem:[#allocation5_spill]]  ;;  %p22_p9 = scmp.ge.s32.totalorder %s1074_s27, 4  }
 0x3ea   : > { %s1222_s21 = smov %s971_s22  ;;  %s1223_s22 = smov %s975_s23 }
 0x3eb   : > { %s1225_s24 = smov %s1074_s27  ;;  %24 = sbr.rel (!%p22_p9) target bundleno = 5 (0x5), region = 106 }
 0x3ef   : > { %s1224_s23 = smov %s1221_s30 }
 0x3f0   :  { %742 = vsyncpa [#allocation3], 1 }
 0x3f1   :  { %744 = vsyncpa [#allocation3 + $0x1], 1 }

</bundles_post_ra>
